<compile_context>
chip_gen: v7x
topology: tpu7x:2x2x1
jax: 0.10.0
libtpu: 0.0.40
codegen_flags: <defaults>
</compile_context>

<pallas_src>
import functools

import jax
import jax.numpy as jnp
from jax.experimental import pallas as pl
from jax.experimental.pallas import tpu as pltpu

_BN_EPS = 1e-5
_TOP = 8  # sublane-aligned start row of the activation inside each pad slab


# ----------------------------------------------------------------------------
# Fused Pallas kernel (one grid step = B batch elements)
# ----------------------------------------------------------------------------

def _convbot_kernel(pos_ref, x_ref,
                    s1_ref, t1_ref, w1_ref, b1_ref,
                    s2_ref, t2_ref, w2_ref, b2_ref,
                    s3_ref, t3_ref, w3_ref, b3_ref,
                    hv_ref, hb_ref,
                    o_ref,
                    pad1, col1, pad2, col2, pad3, col3,
                    *, L, B):
    BL = x_ref.shape[0]
    pos = pos_ref[...]                       # (BL, 1) int32: position within batch element

    def ic_conv_relu(a, s_ref, t_ref, w_ref, b_ref, pad_ref, col_ref, K):
        """relu(Conv1d_same(BN_eval(a))): (BL, C_in) f32 -> (BL, C_out) f32, 1 MXU matmul."""
        C_in = a.shape[1]
        left = (K - 1) // 2                  # PyTorch 'same': extra pad goes to the right
        right = K - 1 - left

        # IC layer: BatchNorm (running stats folded), Dropout = identity in eval.
        y = a * s_ref[...] + t_ref[...]      # f32 VPU, lane-major params

        # Zero-haloed pad slab; activation rows start at the aligned offset _TOP.
        if left:
            pad_ref[_TOP - left:_TOP, :] = jnp.zeros((left, C_in), jnp.float32)
        pad_ref[_TOP:_TOP + BL, :] = y
        if right:
            pad_ref[_TOP + BL:_TOP + BL + right, :] = jnp.zeros((right, C_in), jnp.float32)

        # im2col taps; pos mask kills cross-batch-element leakage inside the tile
        # (equivalently re-creates PyTorch's per-element zero padding).
        taps = []
        for j in range(K):
            d = j - left
            if d == 0:
                win = y
            else:
                win = pad_ref[_TOP + d:_TOP + d + BL, :]
                valid = (pos + d >= 0) & (pos + d < L)          # (BL, 1)
                win = jnp.where(valid, win, 0.0)
            taps.append(win.astype(jnp.bfloat16))               # im2col scratch is bf16

        # Lane-dense stores: group consecutive taps so each store is ~128 lanes wide.
        group = max(1, 128 // C_in)
        for start in range(0, K, group):
            chunk = taps[start:start + group]
            val = chunk[0] if len(chunk) == 1 else jnp.concatenate(chunk, axis=1)
            c0 = start * C_in
            col_ref[:, c0:c0 + val.shape[1]] = val

        # Single MXU matmul: bf16 operands, f32 accumulation; bias + ReLU in f32.
        out = jnp.dot(col_ref[...], w_ref[...], preferred_element_type=jnp.float32)
        return jnp.maximum(out + b_ref[...], 0.0)

    a = x_ref[...]                                                            # (BL, nf)
    a = ic_conv_relu(a, s1_ref, t1_ref, w1_ref, b1_ref, pad1, col1, K=3)      # (BL, 64)
    a = ic_conv_relu(a, s2_ref, t2_ref, w2_ref, b2_ref, pad2, col2, K=5)      # (BL, 128)
    a = ic_conv_relu(a, s3_ref, t3_ref, w3_ref, b3_ref, pad3, col3, K=8)      # (BL, 64)

    # Head: ic4 (BN) + mean-over-L + fc1 folded into one (1,64) vector `hv` and a
    # scalar bias `hb` (exact — all ops after conv3/relu are affine-linear).
    rid = jax.lax.broadcasted_iota(jnp.int32, (B, BL), 0)
    cid = jax.lax.broadcasted_iota(jnp.int32, (B, BL), 1)
    pool = jnp.where((cid >= rid * L) & (cid < (rid + 1) * L),
                     jnp.float32(1.0 / L), jnp.float32(0.0))                   # (B, BL)
    pooled = jnp.dot(pool, a, preferred_element_type=jnp.float32)              # (B, 64)
    logits = jnp.sum(pooled * hv_ref[...], axis=-1, keepdims=True) + hb_ref[...]
    o_ref[...] = jax.nn.sigmoid(logits)


# ----------------------------------------------------------------------------
# Wrapper
# ----------------------------------------------------------------------------

def convbot_binary_ic_forward(x, params, *, batch_tile=8):
    """x: (N, n_features, L) f32 (PyTorch layout) -> (N, 1) sigmoid probabilities."""
    N, C0, L = x.shape
    B = batch_tile                              # batch elements per grid step (multiple of 8)
    n_tiles = -(-N // B)
    N_pad = n_tiles * B
    if N_pad != N:                              # pad batch to a whole number of tiles
        x = jnp.concatenate([x, jnp.zeros((N_pad - N, C0, L), x.dtype)], axis=0)
    BL = B * L

    # (N, C, L) -> (N*L, C): rows = batch*length, channels on the lane axis.
    x2 = jnp.transpose(x, (0, 2, 1)).reshape(N_pad * L, C0).astype(jnp.float32)
    # Per-row position within its batch element (same for every tile -> constant spec).
    pos = jnp.tile(jnp.arange(L, dtype=jnp.int32), B).reshape(BL, 1)

    p = params
    args = (pos, x2,
            p['ic1_scale'], p['ic1_shift'], p['conv1_w'], p['conv1_b'],
            p['ic2_scale'], p['ic2_shift'], p['conv2_w'], p['conv2_b'],
            p['ic3_scale'], p['ic3_shift'], p['conv3_w'], p['conv3_b'],
            p['head_v'], p['head_b'])

    def const_spec(arr):                        # fetched once; same block every grid step
        return pl.BlockSpec(arr.shape, lambda i: (0, 0))

    in_specs = ([const_spec(pos),
                 pl.BlockSpec((BL, C0), lambda i: (i, 0))]
                + [const_spec(a) for a in args[2:]])
    out_specs = pl.BlockSpec((B, 1), lambda i: (i, 0))

    scratch = [
        pltpu.VMEM((BL + 2 * _TOP, C0), jnp.float32),    # pad slab conv1 (K=3)
        pltpu.VMEM((BL, 3 * C0), jnp.bfloat16),          # im2col conv1
        pltpu.VMEM((BL + 2 * _TOP, 64), jnp.float32),    # pad slab conv2 (K=5)
        pltpu.VMEM((BL, 5 * 64), jnp.bfloat16),          # im2col conv2
        pltpu.VMEM((BL + 2 * _TOP, 128), jnp.float32),   # pad slab conv3 (K=8)
        pltpu.VMEM((BL, 8 * 128), jnp.bfloat16),         # im2col conv3
    ]

    out = pl.pallas_call(
        functools.partial(_convbot_kernel, L=L, B=B),
        out_shape=jax.ShapeDtypeStruct((N_pad, 1), jnp.float32),
        grid_spec=pltpu.PrefetchScalarGridSpec(
            num_scalar_prefetch=0,
            grid=(n_tiles,),
            in_specs=in_specs,
            out_specs=out_specs,
            scratch_shapes=scratch),
        compiler_params=pltpu.CompilerParams(
            dimension_semantics=("parallel",),          # shard batch tiles across TCs (v7x)
            vmem_limit_bytes=32 * 1024 * 1024),         # << v7x 64 MiB physical ceiling
    )(*args)
    return out[:N]


# ----------------------------------------------------------------------------
# Deterministic synthetic parameters (PyTorch-layout "raw" + kernel-layout "prepped")
# ----------------------------------------------------------------------------

def _bn_raw(key, c):
    k1, k2, k3, k4 = jax.random.split(key, 4)
    return dict(gamma=jax.random.uniform(k1, (c,), jnp.float32, 0.5, 1.5),
                beta=jax.random.normal(k2, (c,), jnp.float32) * 0.1,
                mean=jax.random.normal(k3, (c,), jnp.float32) * 0.1,
                var=jax.random.uniform(k4, (c,), jnp.float32, 0.5, 1.5))


def _conv_raw(key, c_out, c_in, k):
    k1, k2 = jax.random.split(key)
    return dict(w=jax.random.normal(k1, (c_out, c_in, k), jnp.float32) * 0.1,
                b=jax.random.normal(k2, (c_out,), jnp.float32) * 0.1)


def init_raw_params(key, n_features):
    ks = jax.random.split(key, 9)
    return dict(
        ic1=_bn_raw(ks[0], n_features), conv1=_conv_raw(ks[1], 64, n_features, 3),
        ic2=_bn_raw(ks[2], 64),         conv2=_conv_raw(ks[3], 128, 64, 5),
        ic3=_bn_raw(ks[4], 128),        conv3=_conv_raw(ks[5], 64, 128, 8),
        ic4=_bn_raw(ks[6], 64),
        fc1_w=jax.random.normal(ks[7], (1, 64), jnp.float32) * 0.1,
        fc1_b=jax.random.normal(ks[8], (1,), jnp.float32) * 0.1)


def _fold_bn(bn):
    scale = bn['gamma'] / jnp.sqrt(bn['var'] + _BN_EPS)
    shift = bn['beta'] - bn['mean'] * scale
    return scale[None, :].astype(jnp.float32), shift[None, :].astype(jnp.float32)


def _prep_conv_w(w):  # torch (C_out, C_in, K) -> (K*C_in, C_out) bf16 for the im2col matmul
    c_out, c_in, k = w.shape
    return jnp.transpose(w, (2, 1, 0)).reshape(k * c_in, c_out).astype(jnp.bfloat16)


def prep_params(raw):
    p = {}
    for i, (ic, cv) in enumerate((('ic1', 'conv1'), ('ic2', 'conv2'), ('ic3', 'conv3')), 1):
        p[f'ic{i}_scale'], p[f'ic{i}_shift'] = _fold_bn(raw[ic])
        p[f'conv{i}_w'] = _prep_conv_w(raw[cv]['w'])
        p[f'conv{i}_b'] = raw[cv]['b'][None, :].astype(jnp.float32)
    # Fold ic4 (BN) + mean-pool + fc1: logits = mean_L(a) @ (s4*w)^T + (sum(t4*w) + b).
    s4, t4 = _fold_bn(raw['ic4'])                               # (1, 64)
    fcw = raw['fc1_w'].astype(jnp.float32)                      # (1, 64)
    p['head_v'] = (s4 * fcw).astype(jnp.float32)                # (1, 64)
    p['head_b'] = (jnp.sum(t4 * fcw) + raw['fc1_b'][0]).reshape(1, 1).astype(jnp.float32)
    return p


# ----------------------------------------------------------------------------
# Pure-JAX (XLA) reference for correctness checking
# ----------------------------------------------------------------------------

def _ref_forward(x, raw):
    def bn(h, b):
        scale = b['gamma'] / jnp.sqrt(b['var'] + _BN_EPS)
        shift = b['beta'] - b['mean'] * scale
        return h * scale[None, :, None] + shift[None, :, None]

    def conv_same(h, c):
        k = c['w'].shape[2]
        left = (k - 1) // 2
        out = jax.lax.conv_general_dilated(
            h, c['w'], window_strides=(1,), padding=[(left, k - 1 - left)],
            dimension_numbers=('NCH', 'OIH', 'NCH'))
        return out + c['b'][None, :, None]

    h = jax.nn.relu(conv_same(bn(x, raw['ic1']), raw['conv1']))
    h = jax.nn.relu(conv_same(bn(h, raw['ic2']), raw['conv2']))
    h = jax.nn.relu(conv_same(bn(h, raw['ic3']), raw['conv3']))
    h = bn(h, raw['ic4'])
    pooled = jnp.mean(h, axis=2)                                # (N, 64)
    logits = pooled @ raw['fc1_w'].T + raw['fc1_b'][None, :]
    return jax.nn.sigmoid(logits)


# ----------------------------------------------------------------------------
# Demo
# ----------------------------------------------------------------------------

if __name__ == "__main__":
    key = jax.random.PRNGKey(0)
    kx, kp = jax.random.split(key)

    N, n_features, L = 12, 6, 16        # N not a multiple of the batch tile -> exercises padding
    x = jax.random.normal(kx, (N, n_features, L), dtype=jnp.float32)

    raw = init_raw_params(kp, n_features)
    params = prep_params(raw)

    fwd = jax.jit(functools.partial(convbot_binary_ic_forward, batch_tile=8))
    y = jax.block_until_ready(fwd(x, params))

    assert y.shape == (N, 1)
    assert bool(jnp.all(jnp.isfinite(y)))
    assert bool(jnp.all((y >= 0.0) & (y <= 1.0)))

    # Reference check (bf16 matmul operands with f32 accumulation -> loose tolerance).
    y_ref = _ref_forward(x, raw)
    assert bool(jnp.allclose(y, y_ref, atol=2e-2, rtol=0.0)), (y, y_ref)

    print("KERNEL_OK")
</pallas_src>

<mosaic_0001>
module attributes {stable_mosaic.version = 11 : i64} {
  func.func @_convbot_kernel(%arg0: i32, %arg1: memref<128x1xi32, #tpu.memory_space<vmem>>, %arg2: memref<128x6xf32, #tpu.memory_space<vmem>>, %arg3: memref<1x6xf32, #tpu.memory_space<vmem>>, %arg4: memref<1x6xf32, #tpu.memory_space<vmem>>, %arg5: memref<18x64xbf16, #tpu.memory_space<vmem>>, %arg6: memref<1x64xf32, #tpu.memory_space<vmem>>, %arg7: memref<1x64xf32, #tpu.memory_space<vmem>>, %arg8: memref<1x64xf32, #tpu.memory_space<vmem>>, %arg9: memref<320x128xbf16, #tpu.memory_space<vmem>>, %arg10: memref<1x128xf32, #tpu.memory_space<vmem>>, %arg11: memref<1x128xf32, #tpu.memory_space<vmem>>, %arg12: memref<1x128xf32, #tpu.memory_space<vmem>>, %arg13: memref<1024x64xbf16, #tpu.memory_space<vmem>>, %arg14: memref<1x64xf32, #tpu.memory_space<vmem>>, %arg15: memref<1x64xf32, #tpu.memory_space<vmem>>, %arg16: memref<1x1xf32, #tpu.memory_space<vmem>>, %arg17: memref<8x1xf32, #tpu.memory_space<vmem>>, %arg18: memref<144x6xf32, #tpu.memory_space<vmem>>, %arg19: memref<128x18xbf16, #tpu.memory_space<vmem>>, %arg20: memref<144x64xf32, #tpu.memory_space<vmem>>, %arg21: memref<128x320xbf16, #tpu.memory_space<vmem>>, %arg22: memref<144x128xf32, #tpu.memory_space<vmem>>, %arg23: memref<128x1024xbf16, #tpu.memory_space<vmem>>) attributes {dimension_semantics = [#tpu.dimension_semantics<parallel>], iteration_bounds = array<i64: 2>, scalar_prefetch = 0 : i64, scratch_operands = 6 : i64, tpu.core_type = #tpu.core_type<tc>, window_params = [{pipeline_mode = #tpu.pipeline_mode<synchronous>, transform_indices = @transform_0, window_bounds = array<i64: 128, 1>}, {transform_indices = @transform_1, window_bounds = array<i64: 128, 6>}, {pipeline_mode = #tpu.pipeline_mode<synchronous>, transform_indices = @transform_2, window_bounds = array<i64: 1, 6>}, {pipeline_mode = #tpu.pipeline_mode<synchronous>, transform_indices = @transform_3, window_bounds = array<i64: 1, 6>}, {pipeline_mode = #tpu.pipeline_mode<synchronous>, transform_indices = @transform_4, window_bounds = array<i64: 18, 64>}, {pipeline_mode = #tpu.pipeline_mode<synchronous>, transform_indices = @transform_5, window_bounds = array<i64: 1, 64>}, {pipeline_mode = #tpu.pipeline_mode<synchronous>, transform_indices = @transform_6, window_bounds = array<i64: 1, 64>}, {pipeline_mode = #tpu.pipeline_mode<synchronous>, transform_indices = @transform_7, window_bounds = array<i64: 1, 64>}, {pipeline_mode = #tpu.pipeline_mode<synchronous>, transform_indices = @transform_8, window_bounds = array<i64: 320, 128>}, {pipeline_mode = #tpu.pipeline_mode<synchronous>, transform_indices = @transform_9, window_bounds = array<i64: 1, 128>}, {pipeline_mode = #tpu.pipeline_mode<synchronous>, transform_indices = @transform_10, window_bounds = array<i64: 1, 128>}, {pipeline_mode = #tpu.pipeline_mode<synchronous>, transform_indices = @transform_11, window_bounds = array<i64: 1, 128>}, {pipeline_mode = #tpu.pipeline_mode<synchronous>, transform_indices = @transform_12, window_bounds = array<i64: 1024, 64>}, {pipeline_mode = #tpu.pipeline_mode<synchronous>, transform_indices = @transform_13, window_bounds = array<i64: 1, 64>}, {pipeline_mode = #tpu.pipeline_mode<synchronous>, transform_indices = @transform_14, window_bounds = array<i64: 1, 64>}, {pipeline_mode = #tpu.pipeline_mode<synchronous>, transform_indices = @transform_15, window_bounds = array<i64: 1, 1>}, {transform_indices = @transform_16, window_bounds = array<i64: 8, 1>}]} {
    %c0 = arith.constant 0 : index
    %c0_0 = arith.constant 0 : index
    %0 = vector.load %arg1[%c0, %c0_0] : memref<128x1xi32, #tpu.memory_space<vmem>>, vector<128x1xi32>
    %c0_1 = arith.constant 0 : index
    %c0_2 = arith.constant 0 : index
    %1 = vector.load %arg2[%c0_1, %c0_2] : memref<128x6xf32, #tpu.memory_space<vmem>>, vector<128x6xf32>
    %c0_3 = arith.constant 0 : index
    %c0_4 = arith.constant 0 : index
    %2 = vector.load %arg3[%c0_3, %c0_4] : memref<1x6xf32, #tpu.memory_space<vmem>>, vector<1x6xf32>
    %3 = vector.broadcast %2 : vector<1x6xf32> to vector<128x6xf32>
    %4 = arith.mulf %1, %3 : vector<128x6xf32>
    %c0_5 = arith.constant 0 : index
    %c0_6 = arith.constant 0 : index
    %5 = vector.load %arg4[%c0_5, %c0_6] : memref<1x6xf32, #tpu.memory_space<vmem>>, vector<1x6xf32>
    %6 = vector.broadcast %5 : vector<1x6xf32> to vector<128x6xf32>
    %7 = arith.addf %4, %6 : vector<128x6xf32>
    %cst = arith.constant 0.000000e+00 : f32
    %8 = vector.broadcast %cst : f32 to vector<1x6xf32>
    %c7 = arith.constant 7 : index
    %c0_7 = arith.constant 0 : index
    %9 = vector.load %arg18[%c7, %c0_7] : memref<144x6xf32, #tpu.memory_space<vmem>>, vector<1x6xf32>
    tpu.vector_store %arg18[%c7, %c0_7], %8 {strides = array<i32>} : memref<144x6xf32, #tpu.memory_space<vmem>>, vector<1x6xf32>,
    %c8 = arith.constant 8 : index
    %c0_8 = arith.constant 0 : index
    %10 = vector.load %arg18[%c8, %c0_8] : memref<144x6xf32, #tpu.memory_space<vmem>>, vector<128x6xf32>
    tpu.vector_store %arg18[%c8, %c0_8], %7 {strides = array<i32>} : memref<144x6xf32, #tpu.memory_space<vmem>>, vector<128x6xf32>,
    %cst_9 = arith.constant 0.000000e+00 : f32
    %11 = vector.broadcast %cst_9 : f32 to vector<1x6xf32>
    %c136 = arith.constant 136 : index
    %c0_10 = arith.constant 0 : index
    %12 = vector.load %arg18[%c136, %c0_10] : memref<144x6xf32, #tpu.memory_space<vmem>>, vector<1x6xf32>
    tpu.vector_store %arg18[%c136, %c0_10], %11 {strides = array<i32>} : memref<144x6xf32, #tpu.memory_space<vmem>>, vector<1x6xf32>,
    %c7_11 = arith.constant 7 : index
    %c0_12 = arith.constant 0 : index
    %13 = vector.load %arg18[%c7_11, %c0_12] : memref<144x6xf32, #tpu.memory_space<vmem>>, vector<128x6xf32>
    %c-1_i32 = arith.constant -1 : i32
    %14 = vector.broadcast %c-1_i32 : i32 to vector<128x1xi32>
    %15 = arith.addi %0, %14 : vector<128x1xi32>
    %c0_i32 = arith.constant 0 : i32
    %16 = vector.broadcast %c0_i32 : i32 to vector<128x1xi32>
    %17 = arith.cmpi sge, %15, %16 : vector<128x1xi32>
    %c-1_i32_13 = arith.constant -1 : i32
    %18 = vector.broadcast %c-1_i32_13 : i32 to vector<128x1xi32>
    %19 = arith.addi %0, %18 : vector<128x1xi32>
    %c16_i32 = arith.constant 16 : i32
    %20 = vector.broadcast %c16_i32 : i32 to vector<128x1xi32>
    %21 = arith.cmpi slt, %19, %20 : vector<128x1xi32>
    %22 = arith.andi %17, %21 : vector<128x1xi1>
    %cst_14 = arith.constant 0.000000e+00 : f32
    %23 = vector.shape_cast %22 : vector<128x1xi1> to vector<128x1xi1>
    %24 = vector.broadcast %23 : vector<128x1xi1> to vector<128x6xi1>
    %25 = vector.broadcast %cst_14 : f32 to vector<128x6xf32>
    %26 = arith.select %24, %13, %25 : vector<128x6xi1>, vector<128x6xf32>
    %27 = arith.truncf %26 : vector<128x6xf32> to vector<128x6xbf16>
    %28 = arith.truncf %7 : vector<128x6xf32> to vector<128x6xbf16>
    %c9 = arith.constant 9 : index
    %c0_15 = arith.constant 0 : index
    %29 = vector.load %arg18[%c9, %c0_15] : memref<144x6xf32, #tpu.memory_space<vmem>>, vector<128x6xf32>
    %c1_i32 = arith.constant 1 : i32
    %30 = vector.broadcast %c1_i32 : i32 to vector<128x1xi32>
    %31 = arith.addi %0, %30 : vector<128x1xi32>
    %c0_i32_16 = arith.constant 0 : i32
    %32 = vector.broadcast %c0_i32_16 : i32 to vector<128x1xi32>
    %33 = arith.cmpi sge, %31, %32 : vector<128x1xi32>
    %c1_i32_17 = arith.constant 1 : i32
    %34 = vector.broadcast %c1_i32_17 : i32 to vector<128x1xi32>
    %35 = arith.addi %0, %34 : vector<128x1xi32>
    %c16_i32_18 = arith.constant 16 : i32
    %36 = vector.broadcast %c16_i32_18 : i32 to vector<128x1xi32>
    %37 = arith.cmpi slt, %35, %36 : vector<128x1xi32>
    %38 = arith.andi %33, %37 : vector<128x1xi1>
    %cst_19 = arith.constant 0.000000e+00 : f32
    %39 = vector.shape_cast %38 : vector<128x1xi1> to vector<128x1xi1>
    %40 = vector.broadcast %39 : vector<128x1xi1> to vector<128x6xi1>
    %41 = vector.broadcast %cst_19 : f32 to vector<128x6xf32>
    %42 = arith.select %40, %29, %41 : vector<128x6xi1>, vector<128x6xf32>
    %43 = arith.truncf %42 : vector<128x6xf32> to vector<128x6xbf16>
    %44 = tpu.concatenate %27, %28, %43 in 1 : vector<128x6xbf16>, vector<128x6xbf16>, vector<128x6xbf16> -> vector<128x18xbf16>
    %c0_20 = arith.constant 0 : index
    %c0_21 = arith.constant 0 : index
    %45 = vector.load %arg19[%c0_20, %c0_21] : memref<128x18xbf16, #tpu.memory_space<vmem>>, vector<128x18xbf16>
    tpu.vector_store %arg19[%c0_20, %c0_21], %44 {strides = array<i32>} : memref<128x18xbf16, #tpu.memory_space<vmem>>, vector<128x18xbf16>,
    %c0_22 = arith.constant 0 : index
    %c0_23 = arith.constant 0 : index
    %46 = vector.load %arg19[%c0_22, %c0_23] : memref<128x18xbf16, #tpu.memory_space<vmem>>, vector<128x18xbf16>
    %c0_24 = arith.constant 0 : index
    %c0_25 = arith.constant 0 : index
    %47 = vector.load %arg5[%c0_24, %c0_25] : memref<18x64xbf16, #tpu.memory_space<vmem>>, vector<18x64xbf16>
    %cst_26 = arith.constant dense<0.000000e+00> : vector<128x64xf32>
    %48 = tpu.matmul %46, %47, %cst_26 {dimension_numbers = #tpu.dot_dimension_numbers<[1], [0], [0], [1], [0, 0, 1, 1], [], []>} : vector<128x18xbf16>, vector<18x64xbf16>, vector<128x64xf32> -> vector<128x64xf32>
    %c0_27 = arith.constant 0 : index
    %c0_28 = arith.constant 0 : index
    %49 = vector.load %arg6[%c0_27, %c0_28] : memref<1x64xf32, #tpu.memory_space<vmem>>, vector<1x64xf32>
    %50 = vector.broadcast %49 : vector<1x64xf32> to vector<128x64xf32>
    %51 = arith.addf %48, %50 : vector<128x64xf32>
    %cst_29 = arith.constant 0.000000e+00 : f32
    %52 = vector.broadcast %cst_29 : f32 to vector<128x64xf32>
    %53 = arith.maximumf %51, %52 : vector<128x64xf32>
    %c0_30 = arith.constant 0 : index
    %c0_31 = arith.constant 0 : index
    %54 = vector.load %arg7[%c0_30, %c0_31] : memref<1x64xf32, #tpu.memory_space<vmem>>, vector<1x64xf32>
    %55 = vector.broadcast %54 : vector<1x64xf32> to vector<128x64xf32>
    %56 = arith.mulf %53, %55 : vector<128x64xf32>
    %c0_32 = arith.constant 0 : index
    %c0_33 = arith.constant 0 : index
    %57 = vector.load %arg8[%c0_32, %c0_33] : memref<1x64xf32, #tpu.memory_space<vmem>>, vector<1x64xf32>
    %58 = vector.broadcast %57 : vector<1x64xf32> to vector<128x64xf32>
    %59 = arith.addf %56, %58 : vector<128x64xf32>
    %cst_34 = arith.constant 0.000000e+00 : f32
    %60 = vector.broadcast %cst_34 : f32 to vector<2x64xf32>
    %c6 = arith.constant 6 : index
    %c0_35 = arith.constant 0 : index
    %61 = vector.load %arg20[%c6, %c0_35] : memref<144x64xf32, #tpu.memory_space<vmem>>, vector<2x64xf32>
    tpu.vector_store %arg20[%c6, %c0_35], %60 {strides = array<i32>} : memref<144x64xf32, #tpu.memory_space<vmem>>, vector<2x64xf32>,
    %c8_36 = arith.constant 8 : index
    %c0_37 = arith.constant 0 : index
    %62 = vector.load %arg20[%c8_36, %c0_37] : memref<144x64xf32, #tpu.memory_space<vmem>>, vector<128x64xf32>
    tpu.vector_store %arg20[%c8_36, %c0_37], %59 {strides = array<i32>} : memref<144x64xf32, #tpu.memory_space<vmem>>, vector<128x64xf32>,
    %cst_38 = arith.constant 0.000000e+00 : f32
    %63 = vector.broadcast %cst_38 : f32 to vector<2x64xf32>
    %c136_39 = arith.constant 136 : index
    %c0_40 = arith.constant 0 : index
    %64 = vector.load %arg20[%c136_39, %c0_40] : memref<144x64xf32, #tpu.memory_space<vmem>>, vector<2x64xf32>
    tpu.vector_store %arg20[%c136_39, %c0_40], %63 {strides = array<i32>} : memref<144x64xf32, #tpu.memory_space<vmem>>, vector<2x64xf32>,
    %c6_41 = arith.constant 6 : index
    %c0_42 = arith.constant 0 : index
    %65 = vector.load %arg20[%c6_41, %c0_42] : memref<144x64xf32, #tpu.memory_space<vmem>>, vector<128x64xf32>
    %c-2_i32 = arith.constant -2 : i32
    %66 = vector.broadcast %c-2_i32 : i32 to vector<128x1xi32>
    %67 = arith.addi %0, %66 : vector<128x1xi32>
    %c0_i32_43 = arith.constant 0 : i32
    %68 = vector.broadcast %c0_i32_43 : i32 to vector<128x1xi32>
    %69 = arith.cmpi sge, %67, %68 : vector<128x1xi32>
    %c-2_i32_44 = arith.constant -2 : i32
    %70 = vector.broadcast %c-2_i32_44 : i32 to vector<128x1xi32>
    %71 = arith.addi %0, %70 : vector<128x1xi32>
    %c16_i32_45 = arith.constant 16 : i32
    %72 = vector.broadcast %c16_i32_45 : i32 to vector<128x1xi32>
    %73 = arith.cmpi slt, %71, %72 : vector<128x1xi32>
    %74 = arith.andi %69, %73 : vector<128x1xi1>
    %cst_46 = arith.constant 0.000000e+00 : f32
    %75 = vector.shape_cast %74 : vector<128x1xi1> to vector<128x1xi1>
    %76 = vector.broadcast %75 : vector<128x1xi1> to vector<128x64xi1>
    %77 = vector.broadcast %cst_46 : f32 to vector<128x64xf32>
    %78 = arith.select %76, %65, %77 : vector<128x64xi1>, vector<128x64xf32>
    %79 = arith.truncf %78 : vector<128x64xf32> to vector<128x64xbf16>
    %c7_47 = arith.constant 7 : index
    %c0_48 = arith.constant 0 : index
    %80 = vector.load %arg20[%c7_47, %c0_48] : memref<144x64xf32, #tpu.memory_space<vmem>>, vector<128x64xf32>
    %c-1_i32_49 = arith.constant -1 : i32
    %81 = vector.broadcast %c-1_i32_49 : i32 to vector<128x1xi32>
    %82 = arith.addi %0, %81 : vector<128x1xi32>
    %c0_i32_50 = arith.constant 0 : i32
    %83 = vector.broadcast %c0_i32_50 : i32 to vector<128x1xi32>
    %84 = arith.cmpi sge, %82, %83 : vector<128x1xi32>
    %c-1_i32_51 = arith.constant -1 : i32
    %85 = vector.broadcast %c-1_i32_51 : i32 to vector<128x1xi32>
    %86 = arith.addi %0, %85 : vector<128x1xi32>
    %c16_i32_52 = arith.constant 16 : i32
    %87 = vector.broadcast %c16_i32_52 : i32 to vector<128x1xi32>
    %88 = arith.cmpi slt, %86, %87 : vector<128x1xi32>
    %89 = arith.andi %84, %88 : vector<128x1xi1>
    %cst_53 = arith.constant 0.000000e+00 : f32
    %90 = vector.shape_cast %89 : vector<128x1xi1> to vector<128x1xi1>
    %91 = vector.broadcast %90 : vector<128x1xi1> to vector<128x64xi1>
    %92 = vector.broadcast %cst_53 : f32 to vector<128x64xf32>
    %93 = arith.select %91, %80, %92 : vector<128x64xi1>, vector<128x64xf32>
    %94 = arith.truncf %93 : vector<128x64xf32> to vector<128x64xbf16>
    %95 = arith.truncf %59 : vector<128x64xf32> to vector<128x64xbf16>
    %c9_54 = arith.constant 9 : index
    %c0_55 = arith.constant 0 : index
    %96 = vector.load %arg20[%c9_54, %c0_55] : memref<144x64xf32, #tpu.memory_space<vmem>>, vector<128x64xf32>
    %c1_i32_56 = arith.constant 1 : i32
    %97 = vector.broadcast %c1_i32_56 : i32 to vector<128x1xi32>
    %98 = arith.addi %0, %97 : vector<128x1xi32>
    %c0_i32_57 = arith.constant 0 : i32
    %99 = vector.broadcast %c0_i32_57 : i32 to vector<128x1xi32>
    %100 = arith.cmpi sge, %98, %99 : vector<128x1xi32>
    %c1_i32_58 = arith.constant 1 : i32
    %101 = vector.broadcast %c1_i32_58 : i32 to vector<128x1xi32>
    %102 = arith.addi %0, %101 : vector<128x1xi32>
    %c16_i32_59 = arith.constant 16 : i32
    %103 = vector.broadcast %c16_i32_59 : i32 to vector<128x1xi32>
    %104 = arith.cmpi slt, %102, %103 : vector<128x1xi32>
    %105 = arith.andi %100, %104 : vector<128x1xi1>
    %cst_60 = arith.constant 0.000000e+00 : f32
    %106 = vector.shape_cast %105 : vector<128x1xi1> to vector<128x1xi1>
    %107 = vector.broadcast %106 : vector<128x1xi1> to vector<128x64xi1>
    %108 = vector.broadcast %cst_60 : f32 to vector<128x64xf32>
    %109 = arith.select %107, %96, %108 : vector<128x64xi1>, vector<128x64xf32>
    %110 = arith.truncf %109 : vector<128x64xf32> to vector<128x64xbf16>
    %c10 = arith.constant 10 : index
    %c0_61 = arith.constant 0 : index
    %111 = vector.load %arg20[%c10, %c0_61] : memref<144x64xf32, #tpu.memory_space<vmem>>, vector<128x64xf32>
    %c2_i32 = arith.constant 2 : i32
    %112 = vector.broadcast %c2_i32 : i32 to vector<128x1xi32>
    %113 = arith.addi %0, %112 : vector<128x1xi32>
    %c0_i32_62 = arith.constant 0 : i32
    %114 = vector.broadcast %c0_i32_62 : i32 to vector<128x1xi32>
    %115 = arith.cmpi sge, %113, %114 : vector<128x1xi32>
    %c2_i32_63 = arith.constant 2 : i32
    %116 = vector.broadcast %c2_i32_63 : i32 to vector<128x1xi32>
    %117 = arith.addi %0, %116 : vector<128x1xi32>
    %c16_i32_64 = arith.constant 16 : i32
    %118 = vector.broadcast %c16_i32_64 : i32 to vector<128x1xi32>
    %119 = arith.cmpi slt, %117, %118 : vector<128x1xi32>
    %120 = arith.andi %115, %119 : vector<128x1xi1>
    %cst_65 = arith.constant 0.000000e+00 : f32
    %121 = vector.shape_cast %120 : vector<128x1xi1> to vector<128x1xi1>
    %122 = vector.broadcast %121 : vector<128x1xi1> to vector<128x64xi1>
    %123 = vector.broadcast %cst_65 : f32 to vector<128x64xf32>
    %124 = arith.select %122, %111, %123 : vector<128x64xi1>, vector<128x64xf32>
    %125 = arith.truncf %124 : vector<128x64xf32> to vector<128x64xbf16>
    %126 = tpu.concatenate %79, %94 in 1 : vector<128x64xbf16>, vector<128x64xbf16> -> vector<128x128xbf16>
    %c0_66 = arith.constant 0 : index
    %c0_67 = arith.constant 0 : index
    %127 = vector.load %arg21[%c0_66, %c0_67] : memref<128x320xbf16, #tpu.memory_space<vmem>>, vector<128x128xbf16>
    tpu.vector_store %arg21[%c0_66, %c0_67], %126 {strides = array<i32>} : memref<128x320xbf16, #tpu.memory_space<vmem>>, vector<128x128xbf16>,
    %128 = tpu.concatenate %95, %110 in 1 : vector<128x64xbf16>, vector<128x64xbf16> -> vector<128x128xbf16>
    %c0_68 = arith.constant 0 : index
    %c128 = arith.constant 128 : index
    %129 = vector.load %arg21[%c0_68, %c128] : memref<128x320xbf16, #tpu.memory_space<vmem>>, vector<128x128xbf16>
    tpu.vector_store %arg21[%c0_68, %c128], %128 {strides = array<i32>} : memref<128x320xbf16, #tpu.memory_space<vmem>>, vector<128x128xbf16>,
    %c0_69 = arith.constant 0 : index
    %c256 = arith.constant 256 : index
    %130 = vector.load %arg21[%c0_69, %c256] : memref<128x320xbf16, #tpu.memory_space<vmem>>, vector<128x64xbf16>
    tpu.vector_store %arg21[%c0_69, %c256], %125 {strides = array<i32>} : memref<128x320xbf16, #tpu.memory_space<vmem>>, vector<128x64xbf16>,
    %c0_70 = arith.constant 0 : index
    %c0_71 = arith.constant 0 : index
    %131 = vector.load %arg21[%c0_70, %c0_71] : memref<128x320xbf16, #tpu.memory_space<vmem>>, vector<128x320xbf16>
    %c0_72 = arith.constant 0 : index
    %c0_73 = arith.constant 0 : index
    %132 = vector.load %arg9[%c0_72, %c0_73] : memref<320x128xbf16, #tpu.memory_space<vmem>>, vector<320x128xbf16>
    %cst_74 = arith.constant dense<0.000000e+00> : vector<128x128xf32>
    %133 = tpu.matmul %131, %132, %cst_74 {dimension_numbers = #tpu.dot_dimension_numbers<[1], [0], [0], [1], [0, 0, 1, 1], [], []>} : vector<128x320xbf16>, vector<320x128xbf16>, vector<128x128xf32> -> vector<128x128xf32>
    %c0_75 = arith.constant 0 : index
    %c0_76 = arith.constant 0 : index
    %134 = vector.load %arg10[%c0_75, %c0_76] : memref<1x128xf32, #tpu.memory_space<vmem>>, vector<1x128xf32>
    %135 = vector.broadcast %134 : vector<1x128xf32> to vector<128x128xf32>
    %136 = arith.addf %133, %135 : vector<128x128xf32>
    %cst_77 = arith.constant 0.000000e+00 : f32
    %137 = vector.broadcast %cst_77 : f32 to vector<128x128xf32>
    %138 = arith.maximumf %136, %137 : vector<128x128xf32>
    %c0_78 = arith.constant 0 : index
    %c0_79 = arith.constant 0 : index
    %139 = vector.load %arg11[%c0_78, %c0_79] : memref<1x128xf32, #tpu.memory_space<vmem>>, vector<1x128xf32>
    %140 = vector.broadcast %139 : vector<1x128xf32> to vector<128x128xf32>
    %141 = arith.mulf %138, %140 : vector<128x128xf32>
    %c0_80 = arith.constant 0 : index
    %c0_81 = arith.constant 0 : index
    %142 = vector.load %arg12[%c0_80, %c0_81] : memref<1x128xf32, #tpu.memory_space<vmem>>, vector<1x128xf32>
    %143 = vector.broadcast %142 : vector<1x128xf32> to vector<128x128xf32>
    %144 = arith.addf %141, %143 : vector<128x128xf32>
    %cst_82 = arith.constant 0.000000e+00 : f32
    %145 = vector.broadcast %cst_82 : f32 to vector<3x128xf32>
    %c5 = arith.constant 5 : index
    %c0_83 = arith.constant 0 : index
    %146 = vector.load %arg22[%c5, %c0_83] : memref<144x128xf32, #tpu.memory_space<vmem>>, vector<3x128xf32>
    tpu.vector_store %arg22[%c5, %c0_83], %145 {strides = array<i32>} : memref<144x128xf32, #tpu.memory_space<vmem>>, vector<3x128xf32>,
    %c8_84 = arith.constant 8 : index
    %c0_85 = arith.constant 0 : index
    %147 = vector.load %arg22[%c8_84, %c0_85] : memref<144x128xf32, #tpu.memory_space<vmem>>, vector<128x128xf32>
    tpu.vector_store %arg22[%c8_84, %c0_85], %144 {strides = array<i32>} : memref<144x128xf32, #tpu.memory_space<vmem>>, vector<128x128xf32>,
    %cst_86 = arith.constant 0.000000e+00 : f32
    %148 = vector.broadcast %cst_86 : f32 to vector<4x128xf32>
    %c136_87 = arith.constant 136 : index
    %c0_88 = arith.constant 0 : index
    %149 = vector.load %arg22[%c136_87, %c0_88] : memref<144x128xf32, #tpu.memory_space<vmem>>, vector<4x128xf32>
    tpu.vector_store %arg22[%c136_87, %c0_88], %148 {strides = array<i32>} : memref<144x128xf32, #tpu.memory_space<vmem>>, vector<4x128xf32>,
    %c5_89 = arith.constant 5 : index
    %c0_90 = arith.constant 0 : index
    %150 = vector.load %arg22[%c5_89, %c0_90] : memref<144x128xf32, #tpu.memory_space<vmem>>, vector<128x128xf32>
    %c-3_i32 = arith.constant -3 : i32
    %151 = vector.broadcast %c-3_i32 : i32 to vector<128x1xi32>
    %152 = arith.addi %0, %151 : vector<128x1xi32>
    %c0_i32_91 = arith.constant 0 : i32
    %153 = vector.broadcast %c0_i32_91 : i32 to vector<128x1xi32>
    %154 = arith.cmpi sge, %152, %153 : vector<128x1xi32>
    %c-3_i32_92 = arith.constant -3 : i32
    %155 = vector.broadcast %c-3_i32_92 : i32 to vector<128x1xi32>
    %156 = arith.addi %0, %155 : vector<128x1xi32>
    %c16_i32_93 = arith.constant 16 : i32
    %157 = vector.broadcast %c16_i32_93 : i32 to vector<128x1xi32>
    %158 = arith.cmpi slt, %156, %157 : vector<128x1xi32>
    %159 = arith.andi %154, %158 : vector<128x1xi1>
    %cst_94 = arith.constant 0.000000e+00 : f32
    %160 = vector.shape_cast %159 : vector<128x1xi1> to vector<128x1xi1>
    %161 = vector.broadcast %160 : vector<128x1xi1> to vector<128x128xi1>
    %162 = vector.broadcast %cst_94 : f32 to vector<128x128xf32>
    %163 = arith.select %161, %150, %162 : vector<128x128xi1>, vector<128x128xf32>
    %164 = arith.truncf %163 : vector<128x128xf32> to vector<128x128xbf16>
    %c6_95 = arith.constant 6 : index
    %c0_96 = arith.constant 0 : index
    %165 = vector.load %arg22[%c6_95, %c0_96] : memref<144x128xf32, #tpu.memory_space<vmem>>, vector<128x128xf32>
    %c-2_i32_97 = arith.constant -2 : i32
    %166 = vector.broadcast %c-2_i32_97 : i32 to vector<128x1xi32>
    %167 = arith.addi %0, %166 : vector<128x1xi32>
    %c0_i32_98 = arith.constant 0 : i32
    %168 = vector.broadcast %c0_i32_98 : i32 to vector<128x1xi32>
    %169 = arith.cmpi sge, %167, %168 : vector<128x1xi32>
    %c-2_i32_99 = arith.constant -2 : i32
    %170 = vector.broadcast %c-2_i32_99 : i32 to vector<128x1xi32>
    %171 = arith.addi %0, %170 : vector<128x1xi32>
    %c16_i32_100 = arith.constant 16 : i32
    %172 = vector.broadcast %c16_i32_100 : i32 to vector<128x1xi32>
    %173 = arith.cmpi slt, %171, %172 : vector<128x1xi32>
    %174 = arith.andi %169, %173 : vector<128x1xi1>
    %cst_101 = arith.constant 0.000000e+00 : f32
    %175 = vector.shape_cast %174 : vector<128x1xi1> to vector<128x1xi1>
    %176 = vector.broadcast %175 : vector<128x1xi1> to vector<128x128xi1>
    %177 = vector.broadcast %cst_101 : f32 to vector<128x128xf32>
    %178 = arith.select %176, %165, %177 : vector<128x128xi1>, vector<128x128xf32>
    %179 = arith.truncf %178 : vector<128x128xf32> to vector<128x128xbf16>
    %c7_102 = arith.constant 7 : index
    %c0_103 = arith.constant 0 : index
    %180 = vector.load %arg22[%c7_102, %c0_103] : memref<144x128xf32, #tpu.memory_space<vmem>>, vector<128x128xf32>
    %c-1_i32_104 = arith.constant -1 : i32
    %181 = vector.broadcast %c-1_i32_104 : i32 to vector<128x1xi32>
    %182 = arith.addi %0, %181 : vector<128x1xi32>
    %c0_i32_105 = arith.constant 0 : i32
    %183 = vector.broadcast %c0_i32_105 : i32 to vector<128x1xi32>
    %184 = arith.cmpi sge, %182, %183 : vector<128x1xi32>
    %c-1_i32_106 = arith.constant -1 : i32
    %185 = vector.broadcast %c-1_i32_106 : i32 to vector<128x1xi32>
    %186 = arith.addi %0, %185 : vector<128x1xi32>
    %c16_i32_107 = arith.constant 16 : i32
    %187 = vector.broadcast %c16_i32_107 : i32 to vector<128x1xi32>
    %188 = arith.cmpi slt, %186, %187 : vector<128x1xi32>
    %189 = arith.andi %184, %188 : vector<128x1xi1>
    %cst_108 = arith.constant 0.000000e+00 : f32
    %190 = vector.shape_cast %189 : vector<128x1xi1> to vector<128x1xi1>
    %191 = vector.broadcast %190 : vector<128x1xi1> to vector<128x128xi1>
    %192 = vector.broadcast %cst_108 : f32 to vector<128x128xf32>
    %193 = arith.select %191, %180, %192 : vector<128x128xi1>, vector<128x128xf32>
    %194 = arith.truncf %193 : vector<128x128xf32> to vector<128x128xbf16>
    %195 = arith.truncf %144 : vector<128x128xf32> to vector<128x128xbf16>
    %c9_109 = arith.constant 9 : index
    %c0_110 = arith.constant 0 : index
    %196 = vector.load %arg22[%c9_109, %c0_110] : memref<144x128xf32, #tpu.memory_space<vmem>>, vector<128x128xf32>
    %c1_i32_111 = arith.constant 1 : i32
    %197 = vector.broadcast %c1_i32_111 : i32 to vector<128x1xi32>
    %198 = arith.addi %0, %197 : vector<128x1xi32>
    %c0_i32_112 = arith.constant 0 : i32
    %199 = vector.broadcast %c0_i32_112 : i32 to vector<128x1xi32>
    %200 = arith.cmpi sge, %198, %199 : vector<128x1xi32>
    %c1_i32_113 = arith.constant 1 : i32
    %201 = vector.broadcast %c1_i32_113 : i32 to vector<128x1xi32>
    %202 = arith.addi %0, %201 : vector<128x1xi32>
    %c16_i32_114 = arith.constant 16 : i32
    %203 = vector.broadcast %c16_i32_114 : i32 to vector<128x1xi32>
    %204 = arith.cmpi slt, %202, %203 : vector<128x1xi32>
    %205 = arith.andi %200, %204 : vector<128x1xi1>
    %cst_115 = arith.constant 0.000000e+00 : f32
    %206 = vector.shape_cast %205 : vector<128x1xi1> to vector<128x1xi1>
    %207 = vector.broadcast %206 : vector<128x1xi1> to vector<128x128xi1>
    %208 = vector.broadcast %cst_115 : f32 to vector<128x128xf32>
    %209 = arith.select %207, %196, %208 : vector<128x128xi1>, vector<128x128xf32>
    %210 = arith.truncf %209 : vector<128x128xf32> to vector<128x128xbf16>
    %c10_116 = arith.constant 10 : index
    %c0_117 = arith.constant 0 : index
    %211 = vector.load %arg22[%c10_116, %c0_117] : memref<144x128xf32, #tpu.memory_space<vmem>>, vector<128x128xf32>
    %c2_i32_118 = arith.constant 2 : i32
    %212 = vector.broadcast %c2_i32_118 : i32 to vector<128x1xi32>
    %213 = arith.addi %0, %212 : vector<128x1xi32>
    %c0_i32_119 = arith.constant 0 : i32
    %214 = vector.broadcast %c0_i32_119 : i32 to vector<128x1xi32>
    %215 = arith.cmpi sge, %213, %214 : vector<128x1xi32>
    %c2_i32_120 = arith.constant 2 : i32
    %216 = vector.broadcast %c2_i32_120 : i32 to vector<128x1xi32>
    %217 = arith.addi %0, %216 : vector<128x1xi32>
    %c16_i32_121 = arith.constant 16 : i32
    %218 = vector.broadcast %c16_i32_121 : i32 to vector<128x1xi32>
    %219 = arith.cmpi slt, %217, %218 : vector<128x1xi32>
    %220 = arith.andi %215, %219 : vector<128x1xi1>
    %cst_122 = arith.constant 0.000000e+00 : f32
    %221 = vector.shape_cast %220 : vector<128x1xi1> to vector<128x1xi1>
    %222 = vector.broadcast %221 : vector<128x1xi1> to vector<128x128xi1>
    %223 = vector.broadcast %cst_122 : f32 to vector<128x128xf32>
    %224 = arith.select %222, %211, %223 : vector<128x128xi1>, vector<128x128xf32>
    %225 = arith.truncf %224 : vector<128x128xf32> to vector<128x128xbf16>
    %c11 = arith.constant 11 : index
    %c0_123 = arith.constant 0 : index
    %226 = vector.load %arg22[%c11, %c0_123] : memref<144x128xf32, #tpu.memory_space<vmem>>, vector<128x128xf32>
    %c3_i32 = arith.constant 3 : i32
    %227 = vector.broadcast %c3_i32 : i32 to vector<128x1xi32>
    %228 = arith.addi %0, %227 : vector<128x1xi32>
    %c0_i32_124 = arith.constant 0 : i32
    %229 = vector.broadcast %c0_i32_124 : i32 to vector<128x1xi32>
    %230 = arith.cmpi sge, %228, %229 : vector<128x1xi32>
    %c3_i32_125 = arith.constant 3 : i32
    %231 = vector.broadcast %c3_i32_125 : i32 to vector<128x1xi32>
    %232 = arith.addi %0, %231 : vector<128x1xi32>
    %c16_i32_126 = arith.constant 16 : i32
    %233 = vector.broadcast %c16_i32_126 : i32 to vector<128x1xi32>
    %234 = arith.cmpi slt, %232, %233 : vector<128x1xi32>
    %235 = arith.andi %230, %234 : vector<128x1xi1>
    %cst_127 = arith.constant 0.000000e+00 : f32
    %236 = vector.shape_cast %235 : vector<128x1xi1> to vector<128x1xi1>
    %237 = vector.broadcast %236 : vector<128x1xi1> to vector<128x128xi1>
    %238 = vector.broadcast %cst_127 : f32 to vector<128x128xf32>
    %239 = arith.select %237, %226, %238 : vector<128x128xi1>, vector<128x128xf32>
    %240 = arith.truncf %239 : vector<128x128xf32> to vector<128x128xbf16>
    %c12 = arith.constant 12 : index
    %c0_128 = arith.constant 0 : index
    %241 = vector.load %arg22[%c12, %c0_128] : memref<144x128xf32, #tpu.memory_space<vmem>>, vector<128x128xf32>
    %c4_i32 = arith.constant 4 : i32
    %242 = vector.broadcast %c4_i32 : i32 to vector<128x1xi32>
    %243 = arith.addi %0, %242 : vector<128x1xi32>
    %c0_i32_129 = arith.constant 0 : i32
    %244 = vector.broadcast %c0_i32_129 : i32 to vector<128x1xi32>
    %245 = arith.cmpi sge, %243, %244 : vector<128x1xi32>
    %c4_i32_130 = arith.constant 4 : i32
    %246 = vector.broadcast %c4_i32_130 : i32 to vector<128x1xi32>
    %247 = arith.addi %0, %246 : vector<128x1xi32>
    %c16_i32_131 = arith.constant 16 : i32
    %248 = vector.broadcast %c16_i32_131 : i32 to vector<128x1xi32>
    %249 = arith.cmpi slt, %247, %248 : vector<128x1xi32>
    %250 = arith.andi %245, %249 : vector<128x1xi1>
    %cst_132 = arith.constant 0.000000e+00 : f32
    %251 = vector.shape_cast %250 : vector<128x1xi1> to vector<128x1xi1>
    %252 = vector.broadcast %251 : vector<128x1xi1> to vector<128x128xi1>
    %253 = vector.broadcast %cst_132 : f32 to vector<128x128xf32>
    %254 = arith.select %252, %241, %253 : vector<128x128xi1>, vector<128x128xf32>
    %255 = arith.truncf %254 : vector<128x128xf32> to vector<128x128xbf16>
    %c0_133 = arith.constant 0 : index
    %c0_134 = arith.constant 0 : index
    %256 = vector.load %arg23[%c0_133, %c0_134] : memref<128x1024xbf16, #tpu.memory_space<vmem>>, vector<128x128xbf16>
    tpu.vector_store %arg23[%c0_133, %c0_134], %164 {strides = array<i32>} : memref<128x1024xbf16, #tpu.memory_space<vmem>>, vector<128x128xbf16>,
    %c0_135 = arith.constant 0 : index
    %c128_136 = arith.constant 128 : index
    %257 = vector.load %arg23[%c0_135, %c128_136] : memref<128x1024xbf16, #tpu.memory_space<vmem>>, vector<128x128xbf16>
    tpu.vector_store %arg23[%c0_135, %c128_136], %179 {strides = array<i32>} : memref<128x1024xbf16, #tpu.memory_space<vmem>>, vector<128x128xbf16>,
    %c0_137 = arith.constant 0 : index
    %c256_138 = arith.constant 256 : index
    %258 = vector.load %arg23[%c0_137, %c256_138] : memref<128x1024xbf16, #tpu.memory_space<vmem>>, vector<128x128xbf16>
    tpu.vector_store %arg23[%c0_137, %c256_138], %194 {strides = array<i32>} : memref<128x1024xbf16, #tpu.memory_space<vmem>>, vector<128x128xbf16>,
    %c0_139 = arith.constant 0 : index
    %c384 = arith.constant 384 : index
    %259 = vector.load %arg23[%c0_139, %c384] : memref<128x1024xbf16, #tpu.memory_space<vmem>>, vector<128x128xbf16>
    tpu.vector_store %arg23[%c0_139, %c384], %195 {strides = array<i32>} : memref<128x1024xbf16, #tpu.memory_space<vmem>>, vector<128x128xbf16>,
    %c0_140 = arith.constant 0 : index
    %c512 = arith.constant 512 : index
    %260 = vector.load %arg23[%c0_140, %c512] : memref<128x1024xbf16, #tpu.memory_space<vmem>>, vector<128x128xbf16>
    tpu.vector_store %arg23[%c0_140, %c512], %210 {strides = array<i32>} : memref<128x1024xbf16, #tpu.memory_space<vmem>>, vector<128x128xbf16>,
    %c0_141 = arith.constant 0 : index
    %c640 = arith.constant 640 : index
    %261 = vector.load %arg23[%c0_141, %c640] : memref<128x1024xbf16, #tpu.memory_space<vmem>>, vector<128x128xbf16>
    tpu.vector_store %arg23[%c0_141, %c640], %225 {strides = array<i32>} : memref<128x1024xbf16, #tpu.memory_space<vmem>>, vector<128x128xbf16>,
    %c0_142 = arith.constant 0 : index
    %c768 = arith.constant 768 : index
    %262 = vector.load %arg23[%c0_142, %c768] : memref<128x1024xbf16, #tpu.memory_space<vmem>>, vector<128x128xbf16>
    tpu.vector_store %arg23[%c0_142, %c768], %240 {strides = array<i32>} : memref<128x1024xbf16, #tpu.memory_space<vmem>>, vector<128x128xbf16>,
    %c0_143 = arith.constant 0 : index
    %c896 = arith.constant 896 : index
    %263 = vector.load %arg23[%c0_143, %c896] : memref<128x1024xbf16, #tpu.memory_space<vmem>>, vector<128x128xbf16>
    tpu.vector_store %arg23[%c0_143, %c896], %255 {strides = array<i32>} : memref<128x1024xbf16, #tpu.memory_space<vmem>>, vector<128x128xbf16>,
    %c0_144 = arith.constant 0 : index
    %c0_145 = arith.constant 0 : index
    %264 = vector.load %arg23[%c0_144, %c0_145] : memref<128x1024xbf16, #tpu.memory_space<vmem>>, vector<128x1024xbf16>
    %c0_146 = arith.constant 0 : index
    %c0_147 = arith.constant 0 : index
    %265 = vector.load %arg13[%c0_146, %c0_147] : memref<1024x64xbf16, #tpu.memory_space<vmem>>, vector<1024x64xbf16>
    %cst_148 = arith.constant dense<0.000000e+00> : vector<128x64xf32>
    %266 = tpu.matmul %264, %265, %cst_148 {dimension_numbers = #tpu.dot_dimension_numbers<[1], [0], [0], [1], [0, 0, 1, 1], [], []>} : vector<128x1024xbf16>, vector<1024x64xbf16>, vector<128x64xf32> -> vector<128x64xf32>
    %c0_149 = arith.constant 0 : index
    %c0_150 = arith.constant 0 : index
    %267 = vector.load %arg14[%c0_149, %c0_150] : memref<1x64xf32, #tpu.memory_space<vmem>>, vector<1x64xf32>
    %268 = vector.broadcast %267 : vector<1x64xf32> to vector<128x64xf32>
    %269 = arith.addf %266, %268 : vector<128x64xf32>
    %cst_151 = arith.constant 0.000000e+00 : f32
    %270 = vector.broadcast %cst_151 : f32 to vector<128x64xf32>
    %271 = arith.maximumf %269, %270 : vector<128x64xf32>
    %272 = tpu.iota {dimensions = array<i32: 0>} : vector<8x128xi32>
    %273 = tpu.iota {dimensions = array<i32: 1>} : vector<8x128xi32>
    %c16_i32_152 = arith.constant 16 : i32
    %274 = vector.broadcast %c16_i32_152 : i32 to vector<8x128xi32>
    %275 = arith.muli %272, %274 : vector<8x128xi32>
    %276 = arith.cmpi sge, %273, %275 : vector<8x128xi32>
    %c1_i32_153 = arith.constant 1 : i32
    %277 = vector.broadcast %c1_i32_153 : i32 to vector<8x128xi32>
    %278 = arith.addi %272, %277 : vector<8x128xi32>
    %c16_i32_154 = arith.constant 16 : i32
    %279 = vector.broadcast %c16_i32_154 : i32 to vector<8x128xi32>
    %280 = arith.muli %278, %279 : vector<8x128xi32>
    %281 = arith.cmpi slt, %273, %280 : vector<8x128xi32>
    %282 = arith.andi %276, %281 : vector<8x128xi1>
    %cst_155 = arith.constant 6.250000e-02 : f32
    %cst_156 = arith.constant 0.000000e+00 : f32
    %283 = vector.broadcast %cst_155 : f32 to vector<8x128xf32>
    %284 = vector.broadcast %cst_156 : f32 to vector<8x128xf32>
    %285 = arith.select %282, %283, %284 : vector<8x128xi1>, vector<8x128xf32>
    %cst_157 = arith.constant dense<0.000000e+00> : vector<8x64xf32>
    %286 = tpu.matmul %285, %271, %cst_157 {dimension_numbers = #tpu.dot_dimension_numbers<[1], [0], [0], [1], [0, 0, 1, 1], [], []>} : vector<8x128xf32>, vector<128x64xf32>, vector<8x64xf32> -> vector<8x64xf32>
    %c0_158 = arith.constant 0 : index
    %c0_159 = arith.constant 0 : index
    %287 = vector.load %arg15[%c0_158, %c0_159] : memref<1x64xf32, #tpu.memory_space<vmem>>, vector<1x64xf32>
    %288 = vector.broadcast %287 : vector<1x64xf32> to vector<8x64xf32>
    %289 = arith.mulf %286, %288 : vector<8x64xf32>
    %cst_160 = arith.constant dense<0.000000e+00> : vector<8xf32>
    %290 = vector.multi_reduction <add>, %289, %cst_160 [1] : vector<8x64xf32> to vector<8xf32>
    %291 = vector.shape_cast %290 : vector<8xf32> to vector<8x1xf32>
    %c0_161 = arith.constant 0 : index
    %c0_162 = arith.constant 0 : index
    %292 = vector.load %arg16[%c0_161, %c0_162] : memref<1x1xf32, #tpu.memory_space<vmem>>, vector<1x1xf32>
    %293 = vector.broadcast %292 : vector<1x1xf32> to vector<8x1xf32>
    %294 = arith.addf %291, %293 : vector<8x1xf32>
    %295 = arith.negf %294 : vector<8x1xf32>
    %296 = math.exp %295 : vector<8x1xf32>
    %cst_163 = arith.constant 1.000000e+00 : f32
    %297 = vector.broadcast %cst_163 : f32 to vector<8x1xf32>
    %298 = arith.addf %297, %296 : vector<8x1xf32>
    %299 = arith.divf %297, %298 : vector<8x1xf32>
    %c0_164 = arith.constant 0 : index
    %c0_165 = arith.constant 0 : index
    %300 = vector.load %arg17[%c0_164, %c0_165] : memref<8x1xf32, #tpu.memory_space<vmem>>, vector<8x1xf32>
    tpu.vector_store %arg17[%c0_164, %c0_165], %299 {strides = array<i32>} : memref<8x1xf32, #tpu.memory_space<vmem>>, vector<8x1xf32>,
    return
  }
  func.func @transform_0(%arg0: i32) -> (i32, i32) {
    %c0_i32 = arith.constant 0 : i32
    %c0_i32_0 = arith.constant 0 : i32
    %c0_i32_1 = arith.constant 0 : i32
    return %c0_i32, %c0_i32_0 : i32, i32
  }
  func.func @transform_1(%arg0: i32) -> (i32, i32) {
    %c0_i32 = arith.constant 0 : i32
    %c0_i32_0 = arith.constant 0 : i32
    return %arg0, %c0_i32 : i32, i32
  }
  func.func @transform_2(%arg0: i32) -> (i32, i32) {
    %c0_i32 = arith.constant 0 : i32
    %c0_i32_0 = arith.constant 0 : i32
    %c0_i32_1 = arith.constant 0 : i32
    return %c0_i32, %c0_i32_0 : i32, i32
  }
  func.func @transform_3(%arg0: i32) -> (i32, i32) {
    %c0_i32 = arith.constant 0 : i32
    %c0_i32_0 = arith.constant 0 : i32
    %c0_i32_1 = arith.constant 0 : i32
    return %c0_i32, %c0_i32_0 : i32, i32
  }
  func.func @transform_4(%arg0: i32) -> (i32, i32) {
    %c0_i32 = arith.constant 0 : i32
    %c0_i32_0 = arith.constant 0 : i32
    %c0_i32_1 = arith.constant 0 : i32
    return %c0_i32, %c0_i32_0 : i32, i32
  }
  func.func @transform_5(%arg0: i32) -> (i32, i32) {
    %c0_i32 = arith.constant 0 : i32
    %c0_i32_0 = arith.constant 0 : i32
    %c0_i32_1 = arith.constant 0 : i32
    return %c0_i32, %c0_i32_0 : i32, i32
  }
  func.func @transform_6(%arg0: i32) -> (i32, i32) {
    %c0_i32 = arith.constant 0 : i32
    %c0_i32_0 = arith.constant 0 : i32
    %c0_i32_1 = arith.constant 0 : i32
    return %c0_i32, %c0_i32_0 : i32, i32
  }
  func.func @transform_7(%arg0: i32) -> (i32, i32) {
    %c0_i32 = arith.constant 0 : i32
    %c0_i32_0 = arith.constant 0 : i32
    %c0_i32_1 = arith.constant 0 : i32
    return %c0_i32, %c0_i32_0 : i32, i32
  }
  func.func @transform_8(%arg0: i32) -> (i32, i32) {
    %c0_i32 = arith.constant 0 : i32
    %c0_i32_0 = arith.constant 0 : i32
    %c0_i32_1 = arith.constant 0 : i32
    return %c0_i32, %c0_i32_0 : i32, i32
  }
  func.func @transform_9(%arg0: i32) -> (i32, i32) {
    %c0_i32 = arith.constant 0 : i32
    %c0_i32_0 = arith.constant 0 : i32
    %c0_i32_1 = arith.constant 0 : i32
    return %c0_i32, %c0_i32_0 : i32, i32
  }
  func.func @transform_10(%arg0: i32) -> (i32, i32) {
    %c0_i32 = arith.constant 0 : i32
    %c0_i32_0 = arith.constant 0 : i32
    %c0_i32_1 = arith.constant 0 : i32
    return %c0_i32, %c0_i32_0 : i32, i32
  }
  func.func @transform_11(%arg0: i32) -> (i32, i32) {
    %c0_i32 = arith.constant 0 : i32
    %c0_i32_0 = arith.constant 0 : i32
    %c0_i32_1 = arith.constant 0 : i32
    return %c0_i32, %c0_i32_0 : i32, i32
  }
  func.func @transform_12(%arg0: i32) -> (i32, i32) {
    %c0_i32 = arith.constant 0 : i32
    %c0_i32_0 = arith.constant 0 : i32
    %c0_i32_1 = arith.constant 0 : i32
    return %c0_i32, %c0_i32_0 : i32, i32
  }
  func.func @transform_13(%arg0: i32) -> (i32, i32) {
    %c0_i32 = arith.constant 0 : i32
    %c0_i32_0 = arith.constant 0 : i32
    %c0_i32_1 = arith.constant 0 : i32
    return %c0_i32, %c0_i32_0 : i32, i32
  }
  func.func @transform_14(%arg0: i32) -> (i32, i32) {
    %c0_i32 = arith.constant 0 : i32
    %c0_i32_0 = arith.constant 0 : i32
    %c0_i32_1 = arith.constant 0 : i32
    return %c0_i32, %c0_i32_0 : i32, i32
  }
  func.func @transform_15(%arg0: i32) -> (i32, i32) {
    %c0_i32 = arith.constant 0 : i32
    %c0_i32_0 = arith.constant 0 : i32
    %c0_i32_1 = arith.constant 0 : i32
    return %c0_i32, %c0_i32_0 : i32, i32
  }
  func.func @transform_16(%arg0: i32) -> (i32, i32) {
    %c0_i32 = arith.constant 0 : i32
    %c0_i32_0 = arith.constant 0 : i32
    return %arg0, %c0_i32 : i32, i32
  }
}

</mosaic_0001>

<bundles_post_ra>
// kernel: tile.0
= control target key start
LH: loop header
LB: loop body
LE: loop exit
PB: predicated region body
PF: predicated region fallthrough
CT: control target
= control target key end

     0   :  { %vm3_vm0 = vcmask 7168   ;;  %s264_s8 = smov 125   ;;  %s265_s17 = smov 126   ;;  %s547_s0 = inlined_call_operand.vmem [shape: s32[8,16], index: 0, kind: input, shape index: {}]   ;;  %s548_s1 = inlined_call_operand.vmem [shape: s32[128,1], index: 1, kind: output, shape index: {}]  }
   0x1   :  { %v8_v0 = vld [vmem:[%s547_s0] sm:$0xff]   ;;  %s263_s0 = smov 127   ;;  %s266_s18 = smov 124  }
   0x2   :  { %9 = vrot.lane.b32.xlu0 %v8_v0, %s263_s0  ;;  %33 = vrot.lane.b32.xlu1 %v8_v0, %s264_s8  ;;  %4 = vst.msk [vmem:[%s548_s1] ss:$16 sm:$0x3] %vm3_vm0, %v8_v0   ;;  %5 = vst.msk [vmem:[%s548_s1] ss:$16 sm:$0xc] %vm3_vm0, %v8_v0  }
   0x3   :  { %6 = vst.msk [vmem:[%s548_s1] ss:$16 sm:$0x30] %vm3_vm0, %v8_v0   ;;  %7 = vst.msk [vmem:[%s548_s1] ss:$16 sm:$0xc0] %vm3_vm0, %v8_v0  }
   0x4   :  { %s267_s19 = smov 123   ;;  %s268_s20 = smov 122  }
   0x5   :  { %s269_s21 = smov 121   ;;  %s270_s22 = smov 120  }
   0x6   :  { %21 = vrot.lane.b32.xlu0 %v8_v0, %s265_s17  ;;  %45 = vrot.lane.b32.xlu1 %v8_v0, %s266_s18  ;;  %s271_s23 = smov 119   ;;  %s272_s24 = smov 118  }
   0x7   :  { %s273_s25 = smov 117   ;;  %s274_s26 = smov 116  }
   0x8   :  { %s275_s27 = smov 115   ;;  %s276_s28 = smov 114  }
   0x9   :  { %s277_s29 = smov 113  }
   0xa   :  { %57 = vrot.lane.b32.xlu0 %v8_v0, %s267_s19  ;;  %69 = vrot.lane.b32.xlu1 %v8_v0, %s268_s20 }
   0xe   :  { %81 = vrot.lane.b32.xlu0 %v8_v0, %s269_s21  ;;  %93 = vrot.lane.b32.xlu1 %v8_v0, %s270_s22 }
  0x12   :  { %105 = vrot.lane.b32.xlu0 %v8_v0, %s271_s23  ;;  %117 = vrot.lane.b32.xlu1 %v8_v0, %s272_s24 }
  0x16   :  { %129 = vrot.lane.b32.xlu0 %v8_v0, %s273_s25  ;;  %141 = vrot.lane.b32.xlu1 %v8_v0, %s274_s26 }
  0x1a   :  { %153 = vrot.lane.b32.xlu0 %v8_v0, %s275_s27  ;;  %165 = vrot.lane.b32.xlu1 %v8_v0, %s276_s28 }
  0x1e   :  { %177 = vrot.lane.b32.xlu0 %v8_v0, %s277_s29 }
  0x74   :  { %v10_v1 = vpop.permute.xlu0 %9   ;;  %v34_v2 = vpop.permute.xlu1 %33  }
  0x75   :  { %188 = vst.msk [vmem:[%s548_s1 + $0x1] ss:$16 sm:$0x3] %vm3_vm0, %v10_v1   ;;  %189 = vst.msk [vmem:[%s548_s1 + $0x1] ss:$16 sm:$0xc] %vm3_vm0, %v10_v1  }
  0x76   :  { %190 = vst.msk [vmem:[%s548_s1 + $0x1] ss:$16 sm:$0x30] %vm3_vm0, %v10_v1   ;;  %191 = vst.msk [vmem:[%s548_s1 + $0x1] ss:$16 sm:$0xc0] %vm3_vm0, %v10_v1  }
  0x77   :  { %196 = vst.msk [vmem:[%s548_s1 + $0x3] ss:$16 sm:$0x3] %vm3_vm0, %v34_v2   ;;  %197 = vst.msk [vmem:[%s548_s1 + $0x3] ss:$16 sm:$0xc] %vm3_vm0, %v34_v2  }
  0x78   :  { %198 = vst.msk [vmem:[%s548_s1 + $0x3] ss:$16 sm:$0x30] %vm3_vm0, %v34_v2   ;;  %199 = vst.msk [vmem:[%s548_s1 + $0x3] ss:$16 sm:$0xc0] %vm3_vm0, %v34_v2   ;;  %v22_v3 = vpop.permute.xlu0 %21   ;;  %v46_v4 = vpop.permute.xlu1 %45  }
  0x79   :  { %192 = vst.msk [vmem:[%s548_s1 + $0x2] ss:$16 sm:$0x3] %vm3_vm0, %v22_v3   ;;  %193 = vst.msk [vmem:[%s548_s1 + $0x2] ss:$16 sm:$0xc] %vm3_vm0, %v22_v3  }
  0x7a   :  { %194 = vst.msk [vmem:[%s548_s1 + $0x2] ss:$16 sm:$0x30] %vm3_vm0, %v22_v3   ;;  %195 = vst.msk [vmem:[%s548_s1 + $0x2] ss:$16 sm:$0xc0] %vm3_vm0, %v22_v3  }
  0x7b   :  { %200 = vst.msk [vmem:[%s548_s1 + $0x4] ss:$16 sm:$0x3] %vm3_vm0, %v46_v4   ;;  %201 = vst.msk [vmem:[%s548_s1 + $0x4] ss:$16 sm:$0xc] %vm3_vm0, %v46_v4  }
  0x7c   :  { %202 = vst.msk [vmem:[%s548_s1 + $0x4] ss:$16 sm:$0x30] %vm3_vm0, %v46_v4   ;;  %203 = vst.msk [vmem:[%s548_s1 + $0x4] ss:$16 sm:$0xc0] %vm3_vm0, %v46_v4   ;;  %v58_v5 = vpop.permute.xlu0 %57   ;;  %v70_v6 = vpop.permute.xlu1 %69  }
  0x7d   :  { %204 = vst.msk [vmem:[%s548_s1 + $0x5] ss:$16 sm:$0x3] %vm3_vm0, %v58_v5   ;;  %205 = vst.msk [vmem:[%s548_s1 + $0x5] ss:$16 sm:$0xc] %vm3_vm0, %v58_v5  }
  0x7e   :  { %206 = vst.msk [vmem:[%s548_s1 + $0x5] ss:$16 sm:$0x30] %vm3_vm0, %v58_v5   ;;  %207 = vst.msk [vmem:[%s548_s1 + $0x5] ss:$16 sm:$0xc0] %vm3_vm0, %v58_v5  }
  0x7f   :  { %208 = vst.msk [vmem:[%s548_s1 + $0x6] ss:$16 sm:$0x3] %vm3_vm0, %v70_v6   ;;  %209 = vst.msk [vmem:[%s548_s1 + $0x6] ss:$16 sm:$0xc] %vm3_vm0, %v70_v6  }
  0x80   :  { %210 = vst.msk [vmem:[%s548_s1 + $0x6] ss:$16 sm:$0x30] %vm3_vm0, %v70_v6   ;;  %211 = vst.msk [vmem:[%s548_s1 + $0x6] ss:$16 sm:$0xc0] %vm3_vm0, %v70_v6   ;;  %v82_v7 = vpop.permute.xlu0 %81   ;;  %v94_v8 = vpop.permute.xlu1 %93  }
  0x81   :  { %212 = vst.msk [vmem:[%s548_s1 + $0x7] ss:$16 sm:$0x3] %vm3_vm0, %v82_v7   ;;  %213 = vst.msk [vmem:[%s548_s1 + $0x7] ss:$16 sm:$0xc] %vm3_vm0, %v82_v7  }
  0x82   :  { %214 = vst.msk [vmem:[%s548_s1 + $0x7] ss:$16 sm:$0x30] %vm3_vm0, %v82_v7   ;;  %215 = vst.msk [vmem:[%s548_s1 + $0x7] ss:$16 sm:$0xc0] %vm3_vm0, %v82_v7  }
  0x83   :  { %216 = vst.msk [vmem:[%s548_s1 + $0x8] ss:$16 sm:$0x3] %vm3_vm0, %v94_v8   ;;  %217 = vst.msk [vmem:[%s548_s1 + $0x8] ss:$16 sm:$0xc] %vm3_vm0, %v94_v8  }
  0x84   :  { %218 = vst.msk [vmem:[%s548_s1 + $0x8] ss:$16 sm:$0x30] %vm3_vm0, %v94_v8   ;;  %219 = vst.msk [vmem:[%s548_s1 + $0x8] ss:$16 sm:$0xc0] %vm3_vm0, %v94_v8   ;;  %v106_v9 = vpop.permute.xlu0 %105   ;;  %v118_v10 = vpop.permute.xlu1 %117  }
  0x85   :  { %220 = vst.msk [vmem:[%s548_s1 + $0x9] ss:$16 sm:$0x3] %vm3_vm0, %v106_v9   ;;  %221 = vst.msk [vmem:[%s548_s1 + $0x9] ss:$16 sm:$0xc] %vm3_vm0, %v106_v9  }
  0x86   :  { %222 = vst.msk [vmem:[%s548_s1 + $0x9] ss:$16 sm:$0x30] %vm3_vm0, %v106_v9   ;;  %223 = vst.msk [vmem:[%s548_s1 + $0x9] ss:$16 sm:$0xc0] %vm3_vm0, %v106_v9  }
  0x87   :  { %224 = vst.msk [vmem:[%s548_s1 + $0xa] ss:$16 sm:$0x3] %vm3_vm0, %v118_v10   ;;  %225 = vst.msk [vmem:[%s548_s1 + $0xa] ss:$16 sm:$0xc] %vm3_vm0, %v118_v10  }
  0x88   :  { %226 = vst.msk [vmem:[%s548_s1 + $0xa] ss:$16 sm:$0x30] %vm3_vm0, %v118_v10   ;;  %227 = vst.msk [vmem:[%s548_s1 + $0xa] ss:$16 sm:$0xc0] %vm3_vm0, %v118_v10   ;;  %v130_v11 = vpop.permute.xlu0 %129   ;;  %v142_v12 = vpop.permute.xlu1 %141  }
  0x89   :  { %228 = vst.msk [vmem:[%s548_s1 + $0xb] ss:$16 sm:$0x3] %vm3_vm0, %v130_v11   ;;  %229 = vst.msk [vmem:[%s548_s1 + $0xb] ss:$16 sm:$0xc] %vm3_vm0, %v130_v11  }
  0x8a   :  { %230 = vst.msk [vmem:[%s548_s1 + $0xb] ss:$16 sm:$0x30] %vm3_vm0, %v130_v11   ;;  %231 = vst.msk [vmem:[%s548_s1 + $0xb] ss:$16 sm:$0xc0] %vm3_vm0, %v130_v11  }
  0x8b   :  { %232 = vst.msk [vmem:[%s548_s1 + $0xc] ss:$16 sm:$0x3] %vm3_vm0, %v142_v12   ;;  %233 = vst.msk [vmem:[%s548_s1 + $0xc] ss:$16 sm:$0xc] %vm3_vm0, %v142_v12  }
  0x8c   :  { %234 = vst.msk [vmem:[%s548_s1 + $0xc] ss:$16 sm:$0x30] %vm3_vm0, %v142_v12   ;;  %235 = vst.msk [vmem:[%s548_s1 + $0xc] ss:$16 sm:$0xc0] %vm3_vm0, %v142_v12   ;;  %v154_v13 = vpop.permute.xlu0 %153   ;;  %v166_v14 = vpop.permute.xlu1 %165  }
  0x8d   :  { %236 = vst.msk [vmem:[%s548_s1 + $0xd] ss:$16 sm:$0x3] %vm3_vm0, %v154_v13   ;;  %237 = vst.msk [vmem:[%s548_s1 + $0xd] ss:$16 sm:$0xc] %vm3_vm0, %v154_v13  }
  0x8e   :  { %238 = vst.msk [vmem:[%s548_s1 + $0xd] ss:$16 sm:$0x30] %vm3_vm0, %v154_v13   ;;  %239 = vst.msk [vmem:[%s548_s1 + $0xd] ss:$16 sm:$0xc0] %vm3_vm0, %v154_v13  }
  0x8f   :  { %240 = vst.msk [vmem:[%s548_s1 + $0xe] ss:$16 sm:$0x3] %vm3_vm0, %v166_v14   ;;  %241 = vst.msk [vmem:[%s548_s1 + $0xe] ss:$16 sm:$0xc] %vm3_vm0, %v166_v14  }
  0x90   :  { %242 = vst.msk [vmem:[%s548_s1 + $0xe] ss:$16 sm:$0x30] %vm3_vm0, %v166_v14   ;;  %243 = vst.msk [vmem:[%s548_s1 + $0xe] ss:$16 sm:$0xc0] %vm3_vm0, %v166_v14   ;;  %v178_v15 = vpop.permute.xlu0 %177  }
  0x91   :  { %244 = vst.msk [vmem:[%s548_s1 + $0xf] ss:$16 sm:$0x3] %vm3_vm0, %v178_v15   ;;  %245 = vst.msk [vmem:[%s548_s1 + $0xf] ss:$16 sm:$0xc] %vm3_vm0, %v178_v15  }
  0x92   :  { %246 = vst.msk [vmem:[%s548_s1 + $0xf] ss:$16 sm:$0x30] %vm3_vm0, %v178_v15   ;;  %247 = vst.msk [vmem:[%s548_s1 + $0xf] ss:$16 sm:$0xc0] %vm3_vm0, %v178_v15  }

// kernel: convbot_binary_ic_forward.1
= control target key start
LH: loop header
LB: loop body
LE: loop exit
PB: predicated region body
PF: predicated region fallthrough
CT: control target
= control target key end

     0   :  { %s5348_s23 = smov 0   ;;  %s7451_s0 = inlined_call_operand.vmem [shape: s32[128,1], index: 0, kind: input, shape index: {}]   ;;  %s7452_s1 = inlined_call_operand.vmem [shape: f32[256,6], index: 1, kind: input, shape index: {}]   ;;  %s7453_s2 = inlined_call_operand.vmem [shape: f32[1,6], index: 2, kind: input, shape index: {}]   ;;  %s7454_s3 = inlined_call_operand.vmem [shape: f32[1,6], index: 3, kind: input, shape index: {}]   ;;  %s7455_s4 = inlined_call_operand.vmem [shape: bf16[18,64], index: 4, kind: input, shape index: {}]   ;;  %s7456_s5 = inlined_call_operand.vmem [shape: f32[1,64], index: 5, kind: input, shape index: {}]   ;;  %s7457_s6 = inlined_call_operand.vmem [shape: f32[1,64], index: 6, kind: input, shape index: {}]   ;;  %s7458_s7 = inlined_call_operand.vmem [shape: f32[1,64], index: 7, kind: input, shape index: {}]   ;;  %s7459_s8 = inlined_call_operand.vmem [shape: bf16[320,128], index: 8, kind: input, shape index: {}]   ;;  %s7460_s9 = inlined_call_operand.vmem [shape: f32[1,128], index: 9, kind: input, shape index: {}]   ;;  %s7461_s10 = inlined_call_operand.vmem [shape: f32[1,128], index: 10, kind: input, shape index: {}]   ;;  %s7462_s11 = inlined_call_operand.vmem [shape: f32[1,128], index: 11, kind: input, shape index: {}]   ;;  %s7463_s12 = inlined_call_operand.vmem [shape: bf16[1024,64], index: 12, kind: input, shape index: {}]   ;;  %s7464_s13 = inlined_call_operand.vmem [shape: f32[1,64], index: 13, kind: input, shape index: {}]   ;;  %s7465_s14 = inlined_call_operand.vmem [shape: f32[1,64], index: 14, kind: input, shape index: {}]   ;;  %s7466_s15 = inlined_call_operand.<no memory space> [shape: f32[1,1], index: 15, kind: input, shape index: {}]   ;;  %s7467_s16 = inlined_call_operand.vmem [shape: f32[16,1], index: 16, kind: output, shape index: {}]  }
   0x1   :  { %7565 = sst [smem:[#allocation49_spill]] %s7451_s0  ;;  %v21_v0 = vstv %s7466_s15 }
   0x2   :  { %22 = vst [vmem:[#allocation8] sm:$0x1] %v21_v0 }
   0x3 LB: > { %s5354_s24 = sadd.s32 4294967295, %s5250_s23   ;;  %p4356_p0 = scmp.ge.s32.totalorder %s5250_s23, 1  ;;  %s5250_s23 = sphi %s5348_s23, %s28_s23  }
   0x4   : > { %p465_p1 = scmp.lt.s32.totalorder %s5250_s23, 3 }
   0x6   : > { %p466_p2 = pnand %p4356_p0, %p465_p1 }
   0x8   : > { %469 = sbr.rel (%p466_p2) target bundleno = 1640 (0x668), region = 84 }
   0xf   : > { %s7566_s15 = sld [smem:[#allocation49_spill]]  ;;  %v7495_v4 = vmov 0   ;;  %s4357_s22 = sshll.u32 %s5354_s24, 4  ;;  %v5487_v42 = vld [vmem:[%s7453_s2] ss:$0 sm:$0xff] }
  0x10   : > { %5125 = vset.pattern.permute.xlu1 %v7495_v4  ;;  %5124 = vset.pattern.permute.xlu0 %v7495_v4  ;;  %p515_p3 = scmp.lt.s32.totalorder %s4357_s22, 31  ;;  %v5506_v49 = vld [vmem:[%s7454_s3] ss:$0 sm:$0xff]  ;;  %s5254_s28 = smov 6  }
  0x11   : > { %s5255_s18 = smov 12   ;;  %s5256_s26 = smov 64  }
  0x12   : > { %s7790_s22 = smov (!%p515_p3, %s4357_s22), 31  ;;  %p520_p4 = scmp.lt.s32.totalorder %s5354_s24, 1 }
  0x13   : > { %s4358_s29 = sshll.u32 %s7790_s22, 3 }
  0x14   : > { %s5480_s20 = scalar_lea.vmem %s7452_s1, %s4358_s29  ;;  %s7792_s24 = smov (!%p520_p4, %s5354_s24), 1 }
  0x15   : > { %v5361_v1 = vld [vmem:[%s7566_s15 + $0x10] sm:$0xff]  ;;  %v5366_v2 = vld [vmem:[%s7566_s15] sm:$0xff]  ;;  %v5371_v3 = vld [vmem:[%s7566_s15 + $0x18] sm:$0xff] }
  0x16   : > { %v833_v5 = vadd.s32 1, %v5361_v1  ;;  %v831_v6 = vadd.s32 1, %v5366_v2  ;;  %v834_v7 = vadd.s32 1, %v5371_v3  ;;  %v5381_v8 = vld [vmem:[%s7566_s15 + $0x8] sm:$0xff]  ;;  %v5391_v10 = vld [vmem:[%s7566_s15 + $0x20] sm:$0xff]  ;;  %v5400_v14 = vld [vmem:[%s7566_s15 + $0x38] sm:$0xff] }
  0x17   : > { %v5386_v9 = vld [vmem:[%s7566_s15 + $0x28] sm:$0xff]  ;;  %v832_v11 = vadd.s32 1, %v5381_v8  ;;  %v835_v13 = vadd.s32 1, %v5391_v10  ;;  %v5405_v15 = vld [vmem:[%s7566_s15 + $0x30] sm:$0xff]  ;;  %v838_v18 = vadd.s32 1, %v5400_v14  ;;  %v5424_v22 = vld [vmem:[%s7566_s15 + $0x40] sm:$0xff] }
  0x18   : > { %v836_v12 = vadd.s32 1, %v5386_v9  ;;  %vm849_vm0 = vcmp.ge.s32.totalorder %v833_v5, 0  ;;  %vm865_vm1 = vcmp.lt.s32.totalorder %v833_v5, 16  ;;  %vm847_vm2 = vcmp.ge.s32.totalorder %v831_v6, 0  ;;  %v5414_v20 = vld [vmem:[%s7566_s15 + $0x48] sm:$0xff]  ;;  %v5432_v24 = vld [vmem:[%s7566_s15 + $0x58] sm:$0xff] }
  0x19   : > { %vm863_vm3 = vcmp.lt.s32.totalorder %v831_v6, 16  ;;  %vm881_vm4 = vmand %vm849_vm0, %vm865_vm1  ;;  %vm850_vm5 = vcmp.ge.s32.totalorder %v834_v7, 0  ;;  %vm866_vm6 = vcmp.lt.s32.totalorder %v834_v7, 16  ;;  %vm848_vm7 = vcmp.ge.s32.totalorder %v832_v11, 0  ;;  %v5439_v26 = vld [vmem:[%s7566_s15 + $0x50] sm:$0xff]  ;;  %v5449_v28 = vld [vmem:[%s7566_s15 + $0x68] sm:$0xff] }
  0x1a   : > { %vm864_vm8 = vcmp.lt.s32.totalorder %v832_v11, 16  ;;  %v897_v16 = vsel %vm881_vm4, 1, %v7495_v4  ;;  %vm879_vm9 = vmand %vm847_vm2, %vm863_vm3  ;;  %vm852_vm10 = vcmp.ge.s32.totalorder %v836_v12, 0  ;;  %vm868_vm11 = vcmp.lt.s32.totalorder %v836_v12, 16  ;;  %v5456_v31 = vld [vmem:[%s7566_s15 + $0x60] sm:$0xff]  ;;  %v5467_v36 = vld [vmem:[%s7566_s15 + $0x78] sm:$0xff] }
  0x1b   : > { %vm851_vm12 = vcmp.ge.s32.totalorder %v835_v13, 0  ;;  %918 = vperm.xlu1 %5125, %v897_v16   ;;  %v895_v17 = vsel %vm879_vm9, 1, %v7495_v4  ;;  %vm882_vm13 = vmand %vm850_vm5, %vm866_vm6  ;;  %vm867_vm14 = vcmp.lt.s32.totalorder %v835_v13, 16  ;;  %v837_v19 = vadd.s32 1, %v5405_v15  ;;  %v5473_v38 = vld [vmem:[%s7566_s15 + $0x70] sm:$0xff]  ;;  %v544_v46 = vld [vmem:[%s5480_s20 + $0x18] sm:$0xff] }
  0x1c   : > { %912 = vperm.xlu0 %5124, %v895_v17   ;;  %v898_v21 = vsel %vm882_vm13, 1, %v7495_v4  ;;  %vm880_vm15 = vmand %vm848_vm7, %vm864_vm8  ;;  %vm854_vm2 = vcmp.ge.s32.totalorder %v838_v18, 0  ;;  %vm870_vm3 = vcmp.lt.s32.totalorder %v838_v18, 16  ;;  %v840_v25 = vadd.s32 1, %v5414_v20  ;;  %v543_v45 = vld [vmem:[%s5480_s20 + $0x10] sm:$0xff]  ;;  %v541_v50 = vld [vmem:[%s5480_s20] sm:$0xff] }
  0x1d   : > { %v896_v23 = vsel %vm880_vm15, 1, %v7495_v4  ;;  %vm884_vm0 = vmand %vm852_vm10, %vm868_vm11  ;;  %vm853_vm4 = vcmp.ge.s32.totalorder %v837_v19, 0  ;;  %vm869_vm5 = vcmp.lt.s32.totalorder %v837_v19, 16  ;;  %v839_v27 = vadd.s32 1, %v5424_v22  ;;  %v542_v54 = vld [vmem:[%s5480_s20 + $0x8] sm:$0xff]  ;;  %v545_v55 = vld [vmem:[%s5480_s20 + $0x20] sm:$0xff] }
  0x1e   : > { %vm883_vm1 = vmand %vm851_vm12, %vm867_vm14  ;;  %v900_v29 = vsel %vm884_vm0, 1, %v7495_v4  ;;  %v842_v30 = vadd.s32 1, %v5432_v24  ;;  %v841_v33 = vadd.s32 1, %v5439_v26  ;;  %vm856_vm8 = vcmp.ge.s32.totalorder %v840_v25, 0  ;;  %v546_v62 = vld [vmem:[%s5480_s20 + $0x28] sm:$0xff]  ;;  %v547_v63 = vld [vmem:[%s5480_s20 + $0x30] sm:$0xff] }
  0x1f   : > { %921 = vperm.xlu1 %5125, %v898_v21   ;;  %v899_v32 = vsel %vm883_vm1, 1, %v7495_v4  ;;  %vm886_vm6 = vmand %vm854_vm2, %vm870_vm3  ;;  %vm872_vm9 = vcmp.lt.s32.totalorder %v840_v25, 16  ;;  %v844_v34 = vadd.s32 1, %v5449_v28  ;;  %vm855_vm10 = vcmp.ge.s32.totalorder %v839_v27, 0  ;;  %v549_v7 = vld [vmem:[%s5480_s20 + $0x40] sm:$0xff]  ;;  %v551_v16 = vld [vmem:[%s5480_s20 + $0x50] sm:$0xff] }
  0x20   : > { %915 = vperm.xlu0 %5124, %v896_v23   ;;  %vm885_vm7 = vmand %vm853_vm4, %vm869_vm5  ;;  %vm871_vm11 = vcmp.lt.s32.totalorder %v839_v27, 16  ;;  %v843_v35 = vadd.s32 1, %v5456_v31  ;;  %v902_v37 = vsel %vm886_vm6, 1, %v7495_v4  ;;  %vm858_vm12 = vcmp.ge.s32.totalorder %v842_v30, 0  ;;  %v552_v18 = vld [vmem:[%s5480_s20 + $0x58] sm:$0xff]  ;;  %v553_v27 = vld [vmem:[%s5480_s20 + $0x60] sm:$0xff] }
  0x21   : > { %vm874_vm13 = vcmp.lt.s32.totalorder %v842_v30, 16  ;;  %v901_v39 = vsel %vm885_vm7, 1, %v7495_v4  ;;  %vm888_vm14 = vmand %vm856_vm8, %vm872_vm9  ;;  %vm857_vm15 = vcmp.ge.s32.totalorder %v841_v33, 0  ;;  %vm873_vm0 = vcmp.lt.s32.totalorder %v841_v33, 16  ;;  %v554_v33 = vld [vmem:[%s5480_s20 + $0x68] sm:$0xff] }
  0x22   : > { %vm887_vm1 = vmand %vm855_vm10, %vm871_vm11  ;;  %vm860_vm2 = vcmp.ge.s32.totalorder %v844_v34, 0  ;;  %vm876_vm3 = vcmp.lt.s32.totalorder %v844_v34, 16  ;;  %v846_v40 = vadd.s32 1, %v5467_v36  ;;  %vm859_vm5 = vcmp.ge.s32.totalorder %v843_v35, 0 }
  0x23   : > { %927 = vperm.xlu1 %5125, %v900_v29   ;;  %vm890_vm4 = vmand %vm858_vm12, %vm874_vm13  ;;  %vm875_vm6 = vcmp.lt.s32.totalorder %v843_v35, 16  ;;  %v845_v41 = vadd.s32 1, %v5473_v38  ;;  %v904_v43 = vsel %vm888_vm14, 1, %v7495_v4  ;;  %v903_v47 = vsel %vm887_vm1, 1, %v7495_v4 }
  0x24   : > { %924 = vperm.xlu0 %5124, %v899_v32   ;;  %vm5491_vm7 = vmand %vm857_vm15, %vm873_vm0  ;;  %vm605_vm9 = vcmask 48128   ;;  %v906_v51 = vsel %vm890_vm4, 1, %v7495_v4  ;;  %vm862_vm11 = vcmp.ge.s32.totalorder %v846_v40, 0  ;;  %vm878_vm12 = vcmp.lt.s32.totalorder %v846_v40, 16 }
  0x25   : > { %vm5499_vm8 = vmand %vm860_vm2, %vm876_vm3  ;;  %v5516_v53 = vadd.s32 4294967295, %v5381_v8  ;;  %v905_v56 = vsel %vm5491_vm7, 1, %v7495_v4  ;;  %vm861_vm13 = vcmp.ge.s32.totalorder %v845_v41, 0  ;;  %v566_v57 = vmul.f32 %v5487_v42, %v543_v45  ;;  %v550_v8 = vld [vmem:[%s5480_s20 + $0x48] sm:$0xff] }
  0x26   : > { %vm5511_vm10 = vmand %vm859_vm5, %vm875_vm6  ;;  %v567_v58 = vmul.f32 %v5487_v42, %v544_v46  ;;  %v908_v59 = vsel %vm5499_vm8, 1, %v7495_v4  ;;  %vm877_vm14 = vcmp.lt.s32.totalorder %v845_v41, 16  ;;  %v639_v60 = vadd.s32 4294967295, %v5366_v2 }
  0x27   : > { %933 = vperm.xlu1 %5125, %v902_v37   ;;  %v5530_v61 = vadd.s32 4294967295, %v5371_v3  ;;  %v907_v0 = vsel %vm5511_vm10, 1, %v7495_v4  ;;  %vm5539_vm15 = vmand %vm862_vm11, %vm878_vm12  ;;  %v5544_v6 = vadd.s32 4294967295, %v5361_v1  ;;  %v5547_v2 = vadd.s32 4294967295, %v5386_v9  ;;  %v548_v3 = vld [vmem:[%s5480_s20 + $0x38] sm:$0xff] }
  0x28   : > { %930 = vperm.xlu0 %5124, %v901_v39   ;;  %vm656_vm0 = vcmp.ge.s32.totalorder %v5516_v53, 0  ;;  %v5554_v11 = vadd.f32 %v5506_v49, %v566_v57  ;;  %v5557_v12 = vadd.f32 %v5506_v49, %v567_v58  ;;  %v564_v13 = vmul.f32 %v5487_v42, %v541_v50  ;;  %vm5571_vm2 = vmand %vm861_vm13, %vm877_vm14 }
  0x29   : > { %vm672_vm1 = vcmp.lt.s32.totalorder %v5516_v53, 16  ;;  %v565_v1 = vmul.f32 %v5487_v42, %v542_v54  ;;  %v568_v9 = vmul.f32 %v5487_v42, %v545_v55  ;;  %v569_v17 = vmul.f32 %v5487_v42, %v546_v62 }
  0x2a   : > { %v910_v19 = vsel %vm5539_vm15, 1, %v7495_v4  ;;  %vm655_vm3 = vcmp.ge.s32.totalorder %v639_v60, 0  ;;  %609 = vst.msk [vmem:[#allocation2 + $0x20] sm:$0xff] %vm605_vm9, %v5557_v12  ;;  %608 = vst.msk [vmem:[#allocation2 + $0x18] sm:$0xff] %vm605_vm9, %v5554_v11  ;;  %v5580_v23 = vadd.f32 %v5506_v49, %v564_v13  ;;  %v570_v25 = vmul.f32 %v5487_v42, %v547_v63 }
  0x2b   : > { %939 = vperm.xlu1 %5125, %v904_v43   ;;  %vm671_vm4 = vcmp.lt.s32.totalorder %v639_v60, 16  ;;  %v5585_v29 = vadd.f32 %v5506_v49, %v565_v1  ;;  %v5588_v30 = vadd.f32 %v5506_v49, %v568_v9  ;;  %v5591_v32 = vadd.f32 %v5506_v49, %v569_v17  ;;  %v555_v43 = vld [vmem:[%s5480_s20 + $0x70] sm:$0xff]  ;;  %vm5632_vm6 = vmand %vm656_vm0, %vm672_vm1 }
  0x2c   : > { %936 = vperm.xlu0 %5124, %v903_v47   ;;  %606 = vst.msk [vmem:[#allocation2 + $0x8] sm:$0xff] %vm605_vm9, %v5580_v23  ;;  %v5597_v34 = vadd.f32 %v5506_v49, %v570_v25  ;;  %v571_v35 = vmul.f32 %v5487_v42, %v548_v3  ;;  %v572_v37 = vmul.f32 %v5487_v42, %v549_v7  ;;  %vm658_vm5 = vcmp.ge.s32.totalorder %v5530_v61, 0  ;;  %vm5643_vm8 = vmand %vm655_vm3, %vm671_vm4  ;;  %v5126_v25 = vld [vmem:[%s7455_s4] sm:$0xff]  }
  0x2d   : > { %v573_v39 = vmul.f32 %v5487_v42, %v550_v8  ;;  %607 = vst.msk [vmem:[#allocation2 + $0x10] sm:$0xff] %vm605_vm9, %v5585_v29  ;;  %610 = vst.msk [vmem:[#allocation2 + $0x28] sm:$0xff] %vm605_vm9, %v5588_v30  ;;  %v809_v40 = vpack.c.bf16 %v5591_v32, %v5588_v30  ;;  %v574_v41 = vmul.f32 %v5487_v42, %v551_v16  ;;  %v909_v48 = vsel %vm5571_vm2, 1, %v7495_v4 }
  0x2e   : > { %611 = vst.msk [vmem:[#allocation2 + $0x30] sm:$0xff] %vm605_vm9, %v5591_v32  ;;  %612 = vst.msk [vmem:[#allocation2 + $0x38] sm:$0xff] %vm605_vm9, %v5597_v34  ;;  %v5616_v44 = vadd.f32 %v5506_v49, %v571_v35  ;;  %v5619_v45 = vadd.f32 %v5506_v49, %v572_v37  ;;  %v575_v47 = vmul.f32 %v5487_v42, %v552_v18  ;;  %vm674_vm7 = vcmp.lt.s32.totalorder %v5530_v61, 16 }
  0x2f   : > { %945 = vperm.xlu1 %5125, %v906_v51   ;;  %v5622_v46 = vadd.f32 %v5506_v49, %v573_v39  ;;  %v5638_v51 = vadd.f32 %v5506_v49, %v574_v41  ;;  %v576_v52 = vmul.f32 %v5487_v42, %v553_v27  ;;  %v643_v53 = vadd.s32 4294967295, %v5391_v10  ;;  %vm5685_vm13 = vmand %vm658_vm5, %vm674_vm7  ;;  %5004 = vmatprep.subr.bf16.mxu0 %v5126_v25 }
  0x30   : > { %942 = vperm.xlu0 %5124, %v905_v56   ;;  %613 = vst.msk [vmem:[#allocation2 + $0x40] sm:$0xff] %vm605_vm9, %v5616_v44  ;;  %614 = vst.msk [vmem:[#allocation2 + $0x48] sm:$0xff] %vm605_vm9, %v5619_v45  ;;  %v810_v55 = vpack.c.bf16 %v5616_v44, %v5597_v34  ;;  %v5657_v56 = vadd.f32 %v5506_v49, %v575_v47  ;;  %v577_v57 = vmul.f32 %v5487_v42, %v554_v33  ;;  %vm603_vm15 = vcmask 40960  }
  0x31   : > { %615 = vst.msk [vmem:[#allocation2 + $0x50] sm:$0xff] %vm605_vm9, %v5622_v46  ;;  %vm657_vm10 = vcmp.ge.s32.totalorder %v5544_v6, 0  ;;  %vm673_vm11 = vcmp.lt.s32.totalorder %v5544_v6, 16  ;;  %616 = vst.msk [vmem:[#allocation2 + $0x58] sm:$0xff] %vm605_vm9, %v5638_v51  ;;  %v5665_v10 = vadd.f32 %v5506_v49, %v576_v52  ;;  %v578_v58 = vmul.f32 %v5487_v42, %v555_v43  ;;  %5005 = vmatpush3.bf16.msra.mxu0 %v5126_v25 }
  0x32   : > { %v704_v60 = vsel %vm5632_vm6, 1, %v7495_v4  ;;  %vm660_vm12 = vcmp.ge.s32.totalorder %v5547_v2, 0  ;;  %617 = vst.msk [vmem:[#allocation2 + $0x60] sm:$0xff] %vm605_vm9, %v5657_v56  ;;  %v5676_v62 = vadd.f32 %v5506_v49, %v577_v57  ;;  %v703_v63 = vsel %vm5643_vm8, 1, %v7495_v4  ;;  %vm5699_vm0 = vmand %vm657_vm10, %vm673_vm11 }
  0x33   : > { %951 = vperm.xlu1 %5125, %v908_v59   ;;  %v556_v59 = vld [vmem:[%s5480_s20 + $0x78] sm:$0xff]  ;;  %vm676_vm14 = vcmp.lt.s32.totalorder %v5547_v2, 16  ;;  %618 = vst.msk [vmem:[#allocation2 + $0x68] sm:$0xff] %vm605_vm9, %v5665_v10  ;;  %v5693_v5 = vadd.f32 %v5506_v49, %v578_v58  ;;  %vm659_vm1 = vcmp.ge.s32.totalorder %v643_v53, 0  ;;  %v646_v61 = vadd.s32 4294967295, %v5400_v14 }
  0x34   : > { %948 = vperm.xlu0 %5124, %v907_v0   ;;  %v645_v7 = vadd.s32 4294967295, %v5405_v15  ;;  %619 = vst.msk [vmem:[#allocation2 + $0x70] sm:$0xff] %vm605_vm9, %v5676_v62  ;;  %v579_v8 = vmul.f32 %v5487_v42, %v556_v59  ;;  %vm675_vm2 = vcmp.lt.s32.totalorder %v643_v53, 16  ;;  %v812_v6 = vpack.c.bf16 %v5657_v56, %v5638_v51  ;;  %vm692_vm3 = vmand %vm660_vm12, %vm676_vm14  ;;  %v816_v39 = vld [vmem:[#allocation2 + $0x11] sm:$0xff] }
  0x35   : > { %620 = vst.msk [vmem:[#allocation2 + $0x78] sm:$0xff] %vm605_vm9, %v5693_v5  ;;  %v811_v13 = vpack.c.bf16 %v5622_v46, %v5619_v45  ;;  %v706_v14 = vsel %vm5685_vm13, 1, %v7495_v4  ;;  %v7493_v15 = vmov 0.0   ;;  %v705_v16 = vsel %vm5699_vm0, 1, %v7495_v4  ;;  %vm691_vm4 = vmand %vm659_vm1, %vm675_vm2  ;;  %v820_v59 = vld [vmem:[#allocation2 + $0x31] sm:$0xff] }
  0x36   : > { %622 = vst.msk [vmem:[#allocation2 + $0x88] sm:$0x1] %vm603_vm15, %v7493_v15  ;;  %v5720_v42 = vadd.f32 %v5506_v49, %v579_v8  ;;  %604 = vst.msk [vmem:[#allocation2 + $0x7] sm:$0x1] %vm603_vm15, %v7493_v15  ;;  %vm662_vm5 = vcmp.ge.s32.totalorder %v646_v61, 0  ;;  %vm678_vm6 = vcmp.lt.s32.totalorder %v646_v61, 16  ;;  %v813_v18 = vpack.c.bf16 %v5676_v62, %v5665_v10 }
  0x37   : > { %957 = vperm.xlu1 %5125, %v910_v19   ;;  %2402 = vst [vmem:[#allocation6 + $0x5] sm:$0x7] %v7493_v15  ;;  %2419 = vst [vmem:[#allocation6 + $0x88] sm:$0xf] %v7493_v15  ;;  %vm661_vm7 = vcmp.ge.s32.totalorder %v645_v7, 0  ;;  %vm677_vm8 = vcmp.lt.s32.totalorder %v645_v7, 16  ;;  %v808_v19 = vpack.c.bf16 %v5557_v12, %v5554_v11  ;;  %v807_v21 = vpack.c.bf16 %v5585_v29, %v5580_v23 }
  0x38   : > { %954 = vperm.xlu0 %5124, %v909_v48   ;;  %621 = vst.msk [vmem:[#allocation2 + $0x80] sm:$0xff] %vm605_vm9, %v5720_v42  ;;  %v708_v49 = vsel %vm692_vm3, 1, %v7495_v4  ;;  %v707_v1 = vsel %vm691_vm4, 1, %v7495_v4  ;;  %vm694_vm10 = vmand %vm662_vm5, %vm678_vm6  ;;  %v814_v17 = vpack.c.bf16 %v5720_v42, %v5693_v5  ;;  %v5127_v11 = vld [vmem:[%s7455_s4 + $0x8] ss:$0 sps:$4 sm:$0x11]  }
  0x39   : > { %vm693_vm11 = vmand %vm661_vm7, %vm677_vm8  ;;  %v710_v2 = vsel %vm694_vm10, 1, %v7495_v4  ;;  %vm1156_vm12 = vcmask 1040384   ;;  %v815_v12 = vld [vmem:[#allocation2 + $0x9] sm:$0xff]  ;;  %v817_v23 = vld [vmem:[#allocation2 + $0x19] sm:$0xff]  ;;  %v648_v41 = vadd.s32 4294967295, %v5414_v20  ;;  %v647_v57 = vadd.s32 4294967295, %v5424_v22 }
  0x3a   : > { %v709_v9 = vsel %vm693_vm11, 1, %v7495_v4  ;;  %v818_v29 = vld [vmem:[#allocation2 + $0x21] sm:$0xff]  ;;  %5107 = vmatprep.subr.msk.bf16.mxu0 %vm1156_vm12, %v5127_v11  ;;  %v1158_v35 = vsel %vm1156_vm12, %v5127_v11, 0  ;;  %v821_v8 = vld [vmem:[#allocation2 + $0x39] sm:$0xff]  ;;  %v652_v44 = vadd.s32 4294967295, %v5449_v28  ;;  %v654_v25 = vadd.s32 4294967295, %v5467_v36 }
  0x3b   : > { %723 = vperm.xlu1 %5125, %v704_v60   ;;  %5007 = vmatpush3.bf16.msra.mxu0 %v1158_v35  ;;  %vm664_vm1 = vcmp.ge.s32.totalorder %v648_v41, 0  ;;  %vm680_vm2 = vcmp.lt.s32.totalorder %v648_v41, 16  ;;  %v819_v60 = vld [vmem:[#allocation2 + $0x29] sm:$0xff]  ;;  %vm663_vm6 = vcmp.ge.s32.totalorder %v647_v57, 0  ;;  %vm679_vm7 = vcmp.lt.s32.totalorder %v647_v57, 16  ;;  %v822_v61 = vld [vmem:[#allocation2 + $0x41] sm:$0xff] }
  0x3c   : > { %720 = vperm.xlu0 %5124, %v703_v63   ;;  %vm696_vm5 = vmand %vm664_vm1, %vm680_vm2  ;;  %v650_v63 = vadd.s32 4294967295, %v5432_v24  ;;  %v649_v24 = vadd.s32 4294967295, %v5439_v26  ;;  %v653_v11 = vadd.s32 4294967295, %v5473_v38  ;;  %v5219_v10 = vld [vmem:[%s7566_s15 + $0x10] sm:$0xff] }
  0x3d   : > { %vm695_vm12 = vmand %vm663_vm6, %vm679_vm7  ;;  %vm668_vm6 = vcmp.ge.s32.totalorder %v652_v44, 0  ;;  %vm684_vm7 = vcmp.lt.s32.totalorder %v652_v44, 16  ;;  %v1629_v62 = vadd.s32 2, %v5219_v10  ;;  %v5220_v44 = vld [vmem:[%s7566_s15 + $0x28] sm:$0xff] }
  0x3e   : > { %vm666_vm11 = vcmp.ge.s32.totalorder %v650_v63, 0  ;;  %vm682_vm1 = vcmp.lt.s32.totalorder %v650_v63, 16  ;;  %vm665_vm2 = vcmp.ge.s32.totalorder %v649_v24, 0  ;;  %v711_v30 = vsel %vm695_vm12, 1, %v7495_v4  ;;  %vm700_vm12 = vmand %vm668_vm6, %vm684_vm7 }
  0x3f   : > { %729 = vperm.xlu1 %5125, %v706_v14   ;;  %v712_v14 = vsel %vm696_vm5, 1, %v7495_v4  ;;  %vm698_vm5 = vmand %vm666_vm11, %vm682_vm1  ;;  %v716_v36 = vsel %vm700_vm12, 1, %v7495_v4  ;;  %vm670_vm6 = vcmp.ge.s32.totalorder %v654_v25, 0  ;;  %v829_v57 = vld [vmem:[#allocation2 + $0x79] sm:$0xff] }
  0x40   : > { %726 = vperm.xlu0 %5124, %v705_v16  }
  0x43   : > { %735 = vperm.xlu1 %5125, %v708_v49  }
  0x44   : > { %732 = vperm.xlu0 %5124, %v707_v1  }
  0x47   : > { %741 = vperm.xlu1 %5125, %v710_v2   ;;  %v651_v2 = vadd.s32 4294967295, %v5456_v31 }
  0x48   : > { %738 = vperm.xlu0 %5124, %v709_v9   ;;  %v824_v9 = vld [vmem:[#allocation2 + $0x51] sm:$0xff] }
  0x49   : > { %vm683_vm1 = vcmp.lt.s32.totalorder %v651_v2, 16 }
  0x4b   : > { %1009 = vrot.lane.b32.xlu1 %v808_v19, %s5254_s28  ;;  %v823_v19 = vld [vmem:[#allocation2 + $0x49] sm:$0xff] }
  0x4c   : > { %1007 = vrot.lane.b32.xlu0 %v807_v21, %s5254_s28 }
  0x9a   : > { %v5753_v27 = vpop.permute.xlu1 %918 }
  0x9b   : > { %7585 = vst [vmem:[#allocation9_spill] sm:$0xff] %v5753_v27  ;;  %v5755_v33 = vpop.permute.xlu0 %912  ;;  %vm7482_vm14 = vcmp.eq.s32.totalorder %v5753_v27, 1 }
  0x9c   : > { %7586 = vst [vmem:[#allocation10_spill] sm:$0xff] %v5755_v33  ;;  %vm7484_vm13 = vcmp.eq.s32.totalorder %v5755_v33, 1  ;;  %v977_v48 = vsel %vm7482_vm14, %v817_v23, 0.0  ;;  %v826_v23 = vld [vmem:[#allocation2 + $0x61] sm:$0xff] }
  0x9d   : > { %v975_v43 = vsel %vm7484_vm13, %v815_v12, 0.0 }
  0x9e   : > { %v5762_v37 = vpop.permute.xlu1 %921 }
  0x9f   : > { %7587 = vst [vmem:[#allocation11_spill] sm:$0xff] %v5762_v37  ;;  %vm7481_vm15 = vcmp.eq.s32.totalorder %v5762_v37, 1  ;;  %v5768_v47 = vpop.permute.xlu0 %915 }
  0xa0   : > { %7588 = vst [vmem:[#allocation12_spill] sm:$0xff] %v5768_v47  ;;  %v978_v50 = vsel %vm7481_vm15, %v818_v29, 0.0  ;;  %vm7483_vm0 = vcmp.eq.s32.totalorder %v5768_v47, 1  ;;  %v825_v29 = vld [vmem:[#allocation2 + $0x59] sm:$0xff]  ;;  %vm1661_vm15 = vcmp.lt.s32.totalorder %v1629_v62, 16 }
  0xa1   : > { %v976_v52 = vsel %vm7483_vm0, %v816_v39, 0.0  ;;  %v992_v20 = vpack.c.bf16 %v978_v50, %v977_v48  ;;  %v5216_v48 = vld [vmem:[%s7566_s15 + $0x8] sm:$0xff] }
  0xa2   : > { %v5777_v54 = vpop.permute.xlu1 %927  ;;  %v991_v53 = vpack.c.bf16 %v976_v52, %v975_v43  ;;  %v1356_v50 = vadd.s32 4294967294, %v5216_v48  ;;  %v5217_v52 = vld [vmem:[%s7566_s15] sm:$0xff] }
  0xa3   : > { %7589 = vst [vmem:[#allocation13_spill] sm:$0xff] %v5777_v54  ;;  %v5780_v58 = vpop.permute.xlu0 %924  ;;  %1033 = vrot.lane.b32.xlu1 %v992_v20, %s5255_s18  ;;  %vm7469_vm3 = vcmp.eq.s32.totalorder %v5777_v54, 1  ;;  %v1355_v20 = vadd.s32 4294967294, %v5217_v52 }
  0xa4   : > { %7590 = vst [vmem:[#allocation14_spill] sm:$0xff] %v5780_v58  ;;  %vm7480_vm4 = vcmp.eq.s32.totalorder %v5780_v58, 1  ;;  %1031 = vrot.lane.b32.xlu0 %v991_v53, %s5255_s18  ;;  %v980_v22 = vsel %vm7469_vm3, %v820_v59, 0.0  ;;  %vm681_vm3 = vcmp.lt.s32.totalorder %v649_v24, 16  ;;  %v830_v53 = vld [vmem:[#allocation2 + $0x81] sm:$0xff]  ;;  %v828_v59 = vld [vmem:[#allocation2 + $0x71] sm:$0xff] }
  0xa5   : > { %v979_v3 = vsel %vm7480_vm4, %v819_v60, 0.0  ;;  %v827_v60 = vld [vmem:[#allocation2 + $0x69] sm:$0xff]  ;;  %v1627_v24 = vadd.s32 2, %v5217_v52  ;;  %vm1645_vm4 = vcmp.ge.s32.totalorder %v1629_v62, 0  ;;  %v5225_v52 = vld [vmem:[%s7566_s15 + $0x40] sm:$0xff] }
  0xa6   : > { %v5787_v0 = vpop.permute.xlu1 %933  ;;  %v993_v34 = vpack.c.bf16 %v980_v22, %v979_v3  ;;  %v1628_v3 = vadd.s32 2, %v5216_v48  ;;  %vm1677_vm0 = vmand %vm1645_vm4, %vm1661_vm15  ;;  %v5224_v48 = vld [vmem:[%s7566_s15 + $0x48] sm:$0xff] }
  0xa7   : > { %7591 = vst [vmem:[#allocation15_spill] sm:$0xff] %v5787_v0  ;;  %vm7470_vm8 = vcmp.eq.s32.totalorder %v5787_v0, 1  ;;  %v5794_v7 = vpop.permute.xlu0 %930  ;;  %1013 = vrot.lane.b32.xlu1 %v810_v55, %s5254_s28  ;;  %v714_v55 = vsel %vm698_vm5, 1, %v7495_v4 }
  0xa8   : > { %7592 = vst [vmem:[#allocation16_spill] sm:$0xff] %v5794_v7  ;;  %vm7473_vm10 = vcmp.eq.s32.totalorder %v5794_v7, 1  ;;  %1011 = vrot.lane.b32.xlu0 %v809_v40, %s5254_s28  ;;  %v982_v16 = vsel %vm7470_vm8, %v822_v61, 0.0  ;;  %vm697_vm8 = vmand %vm665_vm2, %vm681_vm3 }
  0xa9   : > { %v981_v49 = vsel %vm7473_vm10, %v821_v8, 0.0  ;;  %v713_v1 = vsel %vm697_vm8, 1, %v7495_v4  ;;  %vm667_vm8 = vcmp.ge.s32.totalorder %v651_v2, 0  ;;  %vm685_vm10 = vcmp.lt.s32.totalorder %v653_v11, 16 }
  0xaa   : > { %v994_v26 = vpack.c.bf16 %v982_v16, %v981_v49  ;;  %v5815_v32 = vpop.permute.xlu1 %939  ;;  %vm699_vm7 = vmand %vm667_vm8, %vm683_vm1  ;;  %vm1372_vm1 = vcmp.ge.s32.totalorder %v1356_v50, 0  ;;  %v5218_v49 = vld [vmem:[%s7566_s15 + $0x18] sm:$0xff] }
  0xab   : > { %747 = vperm.xlu1 %5125, %v712_v14   ;;  %v5817_v40 = vpop.permute.xlu0 %936  ;;  %vm7471_vm11 = vcmp.eq.s32.totalorder %v5815_v32, 1  ;;  %v715_v46 = vsel %vm699_vm7, 1, %v7495_v4  ;;  %vm1387_vm7 = vcmp.lt.s32.totalorder %v1355_v20, 16 }
  0xac   : > { %1035 = vrot.lane.b32.xlu0 %v993_v34, %s5255_s18  ;;  %vm7472_vm3 = vcmp.eq.s32.totalorder %v5817_v40, 1  ;;  %v984_v31 = vsel %vm7471_vm11, %v824_v9, 0.0  ;;  %vm686_vm11 = vcmp.lt.s32.totalorder %v654_v25, 16  ;;  %v1630_v34 = vadd.s32 2, %v5218_v49 }
  0xad   : > { %v983_v12 = vsel %vm7472_vm3, %v823_v19, 0.0  ;;  %vm669_vm3 = vcmp.ge.s32.totalorder %v653_v11, 0  ;;  %vm702_vm12 = vmand %vm670_vm6, %vm686_vm11  ;;  %vm1371_vm6 = vcmp.ge.s32.totalorder %v1355_v20, 0  ;;  %v1693_v19 = vsel %vm1677_vm0, 1, %v7495_v4 }
  0xae   : > { %v5826_v21 = vpop.permute.xlu1 %945  ;;  %v995_v51 = vpack.c.bf16 %v984_v31, %v983_v12  ;;  %v1632_v25 = vadd.s32 2, %v5220_v44  ;;  %v1363_v20 = vadd.s32 4294967294, %v5225_v52 }
  0xaf   : > { %1037 = vrot.lane.b32.xlu1 %v994_v26, %s5255_s18  ;;  %7593 = vst [vmem:[#allocation17_spill] sm:$0xff] %v5826_v21  ;;  %v5828_v28 = vpop.permute.xlu0 %942  ;;  %vm7474_vm2 = vcmp.eq.s32.totalorder %v5826_v21, 1 }
  0xb0   : > { %744 = vperm.xlu0 %5124, %v711_v30   ;;  %7594 = vst [vmem:[#allocation18_spill] sm:$0xff] %v5828_v28  ;;  %vm7479_vm5 = vcmp.eq.s32.totalorder %v5828_v28, 1  ;;  %v986_v38 = vsel %vm7474_vm2, %v826_v23, 0.0  ;;  %vm701_vm2 = vmand %vm669_vm3, %vm685_vm10  ;;  %v5222_v23 = vld [vmem:[%s7566_s15 + $0x38] sm:$0xff] }
  0xb1   : > { %v985_v35 = vsel %vm7479_vm5, %v825_v29, 0.0  ;;  %v717_v43 = vsel %vm701_vm2, 1, %v7495_v4  ;;  %vm1388_vm2 = vcmp.lt.s32.totalorder %v1356_v50, 16  ;;  %vm1659_vm5 = vcmp.lt.s32.totalorder %v1627_v24, 16 }
  0xb2   : > { %v5851_v39 = vpop.permute.xlu1 %951  ;;  %v996_v45 = vpack.c.bf16 %v986_v38, %v985_v35  ;;  %v1634_v29 = vadd.s32 2, %v5222_v23  ;;  %v1364_v50 = vadd.s32 4294967294, %v5224_v48 }
  0xb3   : > { %753 = vperm.xlu1 %5125, %v714_v55   ;;  %7595 = vst [vmem:[#allocation19_spill] sm:$0xff] %v5851_v39  ;;  %v5853_v41 = vpop.permute.xlu0 %948  ;;  %vm7477_vm3 = vcmp.eq.s32.totalorder %v5851_v39, 1  ;;  %v1360_v55 = vadd.s32 4294967294, %v5220_v44 }
  0xb4   : > { %750 = vperm.xlu0 %5124, %v713_v1   ;;  %7596 = vst [vmem:[#allocation20_spill] sm:$0xff] %v5853_v41  ;;  %vm7478_vm8 = vcmp.eq.s32.totalorder %v5853_v41, 1  ;;  %v988_v61 = vsel %vm7477_vm3, %v828_v59, 0.0  ;;  %vm1660_vm3 = vcmp.lt.s32.totalorder %v1628_v3, 16  ;;  %v5221_v1 = vld [vmem:[%s7566_s15 + $0x20] sm:$0xff]  ;;  %v1636_v59 = vadd.s32 2, %v5224_v48 }
  0xb5   : > { %v987_v8 = vsel %vm7478_vm8, %v827_v60, 0.0  ;;  %vm1643_vm8 = vcmp.ge.s32.totalorder %v1627_v24, 0  ;;  %v1359_v2 = vadd.s32 4294967294, %v5221_v1  ;;  %v1631_v11 = vadd.s32 2, %v5221_v1 }
  0xb6   : > { %v5860_v56 = vpop.permute.xlu1 %957  ;;  %v997_v16 = vpack.c.bf16 %v988_v61, %v987_v8  ;;  %v1635_v60 = vadd.s32 2, %v5225_v52 }
  0xb7   : > { %1017 = vrot.lane.b32.xlu1 %v812_v6, %s5254_s28  ;;  %7597 = vst [vmem:[#allocation21_spill] sm:$0xff] %v5860_v56  ;;  %v5862_v6 = vpop.permute.xlu0 %954  ;;  %vm7475_vm10 = vcmp.eq.s32.totalorder %v5860_v56, 1  ;;  %vm1663_vm0 = vcmp.lt.s32.totalorder %v1631_v11, 16 }
  0xb8   : > { %1015 = vrot.lane.b32.xlu0 %v811_v13, %s5254_s28  ;;  %7598 = vst [vmem:[#allocation22_spill] sm:$0xff] %v5862_v6  ;;  %v718_v13 = vsel %vm702_vm12, 1, %v7495_v4  ;;  %vm7476_vm11 = vcmp.eq.s32.totalorder %v5862_v6, 1  ;;  %v990_v63 = vsel %vm7475_vm10, %v830_v53, 0.0  ;;  %vm1404_vm12 = vmand %vm1372_vm1, %vm1388_vm2 }
  0xb9   : > { %v989_v22 = vsel %vm7476_vm11, %v829_v57, 0.0  ;;  %vm1403_vm10 = vmand %vm1371_vm6, %vm1387_vm7  ;;  %vm1644_vm11 = vcmp.ge.s32.totalorder %v1628_v3, 0  ;;  %v1420_v5 = vsel %vm1404_vm12, 1, %v7495_v4  ;;  %vm1646_vm6 = vcmp.ge.s32.totalorder %v1630_v34, 0 }
  0xba   : > { %v998_v14 = vpack.c.bf16 %v990_v63, %v989_v22  ;;  %v1419_v42 = vsel %vm1403_vm10, 1, %v7495_v4  ;;  %vm1676_vm1 = vmand %vm1644_vm11, %vm1660_vm3  ;;  %vm1662_vm7 = vcmp.lt.s32.totalorder %v1630_v34, 16  ;;  %vm1376_vm11 = vcmp.ge.s32.totalorder %v1360_v55, 0 }
  0xbb   : > { %759 = vperm.xlu1 %5125, %v716_v36   ;;  %vm1675_vm2 = vmand %vm1643_vm8, %vm1659_vm5  ;;  %v1692_v26 = vsel %vm1676_vm1, 1, %v7495_v4  ;;  %vm1392_vm3 = vcmp.lt.s32.totalorder %v1360_v55, 16  ;;  %vm1375_vm8 = vcmp.ge.s32.totalorder %v1359_v2, 0  ;;  %vm1391_vm1 = vcmp.lt.s32.totalorder %v1359_v2, 16  ;;  %v5223_v36 = vld [vmem:[%s7566_s15 + $0x30] sm:$0xff] }
  0xbc   : > { %1039 = vrot.lane.b32.xlu0 %v995_v51, %s5255_s18  ;;  %v1691_v30 = vsel %vm1675_vm2, 1, %v7495_v4  ;;  %vm1678_vm14 = vmand %vm1646_vm6, %vm1662_vm7  ;;  %vm1648_vm7 = vcmp.ge.s32.totalorder %v1632_v25, 0  ;;  %v1633_v38 = vadd.s32 2, %v5223_v36 }
  0xbd   : > { %v1694_v9 = vsel %vm1678_vm14, 1, %v7495_v4  ;;  %vm1408_vm2 = vmand %vm1376_vm11, %vm1392_vm3  ;;  %vm1664_vm14 = vcmp.lt.s32.totalorder %v1632_v25, 16 }
  0xbe   : > { %vm1407_vm6 = vmand %vm1375_vm8, %vm1391_vm1  ;;  %v1424_v35 = vsel %vm1408_vm2, 1, %v7495_v4  ;;  %vm1665_vm11 = vcmp.lt.s32.totalorder %v1633_v38, 16 }
  0xbf   : > { %1041 = vrot.lane.b32.xlu1 %v996_v45, %s5255_s18  ;;  %v1423_v51 = vsel %vm1407_vm6, 1, %v7495_v4  ;;  %v1362_v45 = vadd.s32 4294967294, %v5222_v23  ;;  %v628_v23 = vld [vmem:[#allocation2 + $0x2f] sm:$0xff] }
  0xc0   : > { %756 = vperm.xlu0 %5124, %v715_v46   ;;  %v1361_v46 = vadd.s32 4294967294, %v5223_v36 }
  0xc1   : > { %vm1378_vm1 = vcmp.ge.s32.totalorder %v1362_v45, 0  ;;  %vm1394_vm2 = vcmp.lt.s32.totalorder %v1362_v45, 16 }
  0xc2   : > { %vm1377_vm6 = vcmp.ge.s32.totalorder %v1361_v46, 0 }
  0xc3   : > { %765 = vperm.xlu1 %5125, %v718_v13  }
  0xc4   : > { %762 = vperm.xlu0 %5124, %v717_v43  }
  0xc7   : > { %1021 = vrot.lane.b32.xlu1 %v814_v17, %s5254_s28  ;;  %v1358_v17 = vadd.s32 4294967294, %v5218_v49 }
  0xc8   : > { %1019 = vrot.lane.b32.xlu0 %v813_v18, %s5254_s28  ;;  %v1357_v18 = vadd.s32 4294967294, %v5219_v10  ;;  %s4359_s28 = sshll.u32 %s7792_s24, 3 }
  0xc9   : > { %vm1374_vm13 = vcmp.ge.s32.totalorder %v1358_v17, 0  ;;  %vm1390_vm12 = vcmp.lt.s32.totalorder %v1358_v17, 16  ;;  %v626_v17 = vld [vmem:[#allocation2 + $0x1f] sm:$0xff]  ;;  %s523_s17 = scalar_lea.vmem %s7467_s16, %s4359_s28 }
  0xca   : > { %vm1373_vm5 = vcmp.ge.s32.totalorder %v1357_v18, 0  ;;  %vm1389_vm10 = vcmp.lt.s32.totalorder %v1357_v18, 16  ;;  %vm1406_vm15 = vmand %vm1374_vm13, %vm1390_vm12  ;;  %vm1647_vm13 = vcmp.ge.s32.totalorder %v1631_v11, 0  ;;  %v625_v18 = vld [vmem:[#allocation2 + $0x17] sm:$0xff] }
  0xcb   : > { %1045 = vrot.lane.b32.xlu1 %v998_v14, %s5255_s18  ;;  %vm1405_vm4 = vmand %vm1373_vm5, %vm1389_vm10  ;;  %v1422_v31 = vsel %vm1406_vm15, 1, %v7495_v4  ;;  %vm1650_vm10 = vcmp.ge.s32.totalorder %v1634_v29, 0  ;;  %vm1666_vm15 = vcmp.lt.s32.totalorder %v1634_v29, 16  ;;  %v5938_v14 = vpop.permute.xlu1 %723  ;;  %v627_v29 = vld [vmem:[#allocation2 + $0x27] sm:$0xff] }
  0xcc   : > { %1043 = vrot.lane.b32.xlu0 %v997_v16, %s5255_s18  ;;  %v1421_v12 = vsel %vm1405_vm4, 1, %v7495_v4  ;;  %vm1680_vm12 = vmand %vm1648_vm7, %vm1664_vm14  ;;  %vm1649_vm4 = vcmp.ge.s32.totalorder %v1633_v38, 0  ;;  %vm1393_vm7 = vcmp.lt.s32.totalorder %v1361_v46, 16  ;;  %7599 = vst [vmem:[#allocation23_spill] sm:$0xff] %v5938_v14  ;;  %v5940_v16 = vpop.permute.xlu0 %720 }
  0xcd   : > { %vm1679_vm5 = vmand %vm1647_vm13, %vm1663_vm0  ;;  %v1696_v13 = vsel %vm1680_vm12, 1, %v7495_v4  ;;  %vm1380_vm0 = vcmp.ge.s32.totalorder %v1364_v50, 0  ;;  %vm1396_vm12 = vcmp.lt.s32.totalorder %v1364_v50, 16  ;;  %7600 = vst [vmem:[#allocation24_spill] sm:$0xff] %v5940_v16 }
  0xce   : > { %v1695_v43 = vsel %vm1679_vm5, 1, %v7495_v4  ;;  %vm1682_vm3 = vmand %vm1650_vm10, %vm1666_vm15  ;;  %vm1379_vm5 = vcmp.ge.s32.totalorder %v1363_v20, 0  ;;  %vm1395_vm10 = vcmp.lt.s32.totalorder %v1363_v20, 16 }
  0xcf   : > { %1439 = vperm.xlu1 %5125, %v1420_v5   ;;  %vm1681_vm8 = vmand %vm1649_vm4, %vm1665_vm11  ;;  %v1698_v53 = vsel %vm1682_vm3, 1, %v7495_v4  ;;  %vm1652_vm11 = vcmp.ge.s32.totalorder %v1636_v59, 0  ;;  %vm1668_vm3 = vcmp.lt.s32.totalorder %v1636_v59, 16  ;;  %v5942_v49 = vpop.permute.xlu1 %729  ;;  %v629_v59 = vld [vmem:[#allocation2 + $0x37] sm:$0xff] }
  0xd0   : > { %1436 = vperm.xlu0 %5124, %v1419_v42   ;;  %v1697_v57 = vsel %vm1681_vm8, 1, %v7495_v4  ;;  %vm1410_vm14 = vmand %vm1378_vm1, %vm1394_vm2  ;;  %vm1651_vm8 = vcmp.ge.s32.totalorder %v1635_v60, 0  ;;  %vm1667_vm1 = vcmp.lt.s32.totalorder %v1635_v60, 16  ;;  %7601 = vst [vmem:[#allocation25_spill] sm:$0xff] %v5942_v49  ;;  %v5944_v34 = vpop.permute.xlu0 %726 }
  0xd1   : > { %vm1409_vm13 = vmand %vm1377_vm6, %vm1393_vm7  ;;  %v1426_v63 = vsel %vm1410_vm14, 1, %v7495_v4  ;;  %7602 = vst [vmem:[#allocation26_spill] sm:$0xff] %v5944_v34  ;;  %vm7508_vm7 = vcmp.eq.s32.totalorder %v5942_v49, 1  ;;  %vm7545_vm14 = vcmp.eq.s32.totalorder %v5944_v34, 1 }
  0xd2   : > { %v1425_v22 = vsel %vm1409_vm13, 1, %v7495_v4  ;;  %vm1412_vm15 = vmand %vm1380_vm0, %vm1396_vm12  ;;  %vm7546_vm13 = vcmp.eq.s32.totalorder %v5938_v14, 1  ;;  %vm767_vm0 = vcmp.eq.s32.totalorder %v5940_v16, 1  ;;  %v786_v44 = vsel %vm7508_vm7, %v626_v17, 0.0 }
  0xd3   : > { %1711 = vperm.xlu1 %5125, %v1692_v26   ;;  %vm1411_vm4 = vmand %vm1379_vm5, %vm1395_vm10  ;;  %v1428_v3 = vsel %vm1412_vm15, 1, %v7495_v4  ;;  %v5946_v10 = vpop.permute.xlu1 %735  ;;  %v624_v26 = vld [vmem:[#allocation2 + $0xf] sm:$0xff]  ;;  %v785_v55 = vsel %vm7545_vm14, %v625_v18, 0.0  ;;  %vm1071_vm12 = vcmask 97280   ;;  %vm1096_vm5 = vcmask 146432  }
  0xd4   : > { %1708 = vperm.xlu0 %5124, %v1691_v30   ;;  %v1427_v61 = vsel %vm1411_vm4, 1, %v7495_v4  ;;  %vm1684_vm2 = vmand %vm1652_vm11, %vm1668_vm3  ;;  %v5948_v62 = vpop.permute.xlu0 %732  ;;  %v623_v30 = vld [vmem:[#allocation2 + $0x7] sm:$0xff]  ;;  %v784_v1 = vsel %vm7546_vm13, %v624_v26, 0.0  ;;  %v800_v25 = vpack.c.bf16 %v786_v44, %v785_v55  ;;  %vm7543_vm10 = vcmp.eq.s32.totalorder %v5946_v10, 1 }
  0xd5   : > { %vm1683_vm6 = vmand %vm1651_vm8, %vm1667_vm1  ;;  %v1700_v8 = vsel %vm1684_vm2, 1, %v7495_v4  ;;  %v783_v2 = vsel %vm767_vm0, %v623_v30, 0.0  ;;  %vm7544_vm15 = vcmp.eq.s32.totalorder %v5948_v62, 1  ;;  %v788_v45 = vsel %vm7543_vm10, %v628_v23, 0.0  ;;  %v631_v44 = vld [vmem:[#allocation2 + $0x47] sm:$0xff] }
  0xd6   : > { %v1699_v24 = vsel %vm1683_vm6, 1, %v7495_v4  ;;  %v799_v11 = vpack.c.bf16 %v784_v1, %v783_v2  ;;  %v787_v46 = vsel %vm7544_vm15, %v627_v29, 0.0  ;;  %v634_v1 = vld [vmem:[#allocation2 + $0x5f] sm:$0xff]  ;;  %v633_v2 = vld [vmem:[#allocation2 + $0x57] sm:$0xff] }
  0xd7   : > { %1717 = vperm.xlu1 %5125, %v1694_v9   ;;  %v5950_v5 = vpop.permute.xlu1 %741 }
  0xd8   : > { %1714 = vperm.xlu0 %5124, %v1693_v19   ;;  %v5952_v42 = vpop.permute.xlu0 %738  ;;  %vm7494_vm4 = vcmp.eq.s32.totalorder %v5950_v5, 1 }
  0xd9   : > { %vm7498_vm11 = vcmp.eq.s32.totalorder %v5952_v42, 1 }
  0xdb   : > { %1445 = vperm.xlu1 %5125, %v1422_v31   ;;  %v1010_v9 = vpop.permute.xlu1 %1009 }
  0xdc   : > { %1442 = vperm.xlu0 %5124, %v1421_v12   ;;  %v1008_v19 = vpop.permute.xlu0 %1007  ;;  %v1052_v31 = vsel %vm605_vm9, %v800_v25, %v1010_v9  ;;  %v632_v9 = vld [vmem:[#allocation2 + $0x4f] sm:$0xff] }
  0xdd   : > { %v1049_v36 = vsel %vm605_vm9, %v799_v11, %v1008_v19 }
  0xdf   : > { %1451 = vperm.xlu1 %5125, %v1424_v35  }
  0xe0   : > { %1448 = vperm.xlu0 %5124, %v1423_v51  }
  0xe3   : > { %1723 = vperm.xlu1 %5125, %v1696_v13  }
  0xe4   : > { %1720 = vperm.xlu0 %5124, %v1695_v43   ;;  %v801_v43 = vpack.c.bf16 %v788_v45, %v787_v46 }
  0xe7   : > { %1729 = vperm.xlu1 %5125, %v1698_v53  }
  0xe8   : > { %1726 = vperm.xlu0 %5124, %v1697_v57   ;;  %v630_v57 = vld [vmem:[#allocation2 + $0x3f] sm:$0xff] }
  0xeb   : > { %1457 = vperm.xlu1 %5125, %v1426_v63  }
  0xec   : > { %1454 = vperm.xlu0 %5124, %v1425_v22   ;;  %v790_v22 = vsel %vm7494_vm4, %v630_v57, 0.0  ;;  %v635_v57 = vld [vmem:[#allocation2 + $0x67] sm:$0xff]  ;;  %vm7617_vm4 = vcmp.eq.s32.totalorder %v5768_v47, 1 }
  0xef   : > { %1463 = vperm.xlu1 %5125, %v1428_v3   ;;  %v789_v3 = vsel %vm7498_vm11, %v629_v59, 0.0 }
  0xf0   : > { %1460 = vperm.xlu0 %5124, %v1427_v61  }
  0xf3   : > { %1735 = vperm.xlu1 %5125, %v1700_v8   ;;  %v802_v8 = vpack.c.bf16 %v790_v22, %v789_v3  ;;  %v636_v22 = vld [vmem:[#allocation2 + $0x6f] sm:$0xff] }
  0xf4   : > { %1732 = vperm.xlu0 %5124, %v1699_v24  }
 0x115   : > { %v1034_v12 = vpop.permute.xlu1 %1033 }
 0x116   : > { %v1076_v38 = vsel %vm1071_vm12, %v1052_v31, %v1034_v12  ;;  %v1032_v35 = vpop.permute.xlu0 %1031 }
 0x117   : > { %1098 = vst.msk [vmem:[#allocation3 + $0x8] sm:$0xff] %vm1096_vm5, %v1076_v38  ;;  %v1073_v51 = vsel %vm1071_vm12, %v1049_v36, %v1032_v35 }
 0x118   : > { %1097 = vst.msk [vmem:[#allocation3] sm:$0xff] %vm1096_vm5, %v1073_v51 }
 0x119   : > { %v1014_v60 = vpop.permute.xlu1 %1013 }
 0x11a   : > { %v1012_v13 = vpop.permute.xlu0 %1011  ;;  %v1058_v24 = vsel %vm605_vm9, %v802_v8, %v1014_v60 }
 0x11b   : > { %v1055_v48 = vsel %vm605_vm9, %v801_v43, %v1012_v13 }
 0x11e   : > { %v1036_v50 = vpop.permute.xlu0 %1035  ;;  %v1106_v52 = vld [vmem:[#allocation3 + $0x8] sm:$0xff] }
 0x11f   : > { %v1079_v20 = vsel %vm1071_vm12, %v1055_v48, %v1036_v50  ;;  %v1105_v53 = vld [vmem:[#allocation3] sm:$0xff] }
 0x120   : > { %1099 = vst.msk [vmem:[#allocation3 + $0x10] sm:$0xff] %vm1096_vm5, %v1079_v20  ;;  %5008 = vmatprep.mubr.msk.bf16.mxu0 %vm1096_vm5, %v1105_v53  ;;  %v637_v53 = vld [vmem:[#allocation2 + $0x77] sm:$0xff] }
 0x121   : > { %5009 = vmatmul.mubr.msk.bf16.vlgmr.msra.gmra.mrb[0].mxu0 %vm1096_vm5, %v1106_v52  ;;  %v638_v52 = vld [vmem:[#allocation2 + $0x7f] sm:$0xff] }
 0x127   : > { %v1107_v63 = vld [vmem:[#allocation3 + $0x10] sm:$0xff] }
 0x128   : > { %5012 = vmatprep.mubr.msk.bf16.mxu0 %vm1096_vm5, %v1107_v63 }
 0x12a   : > { %v5990_v61 = vpop.permute.xlu1 %747 }
 0x12b   : > { %vm7487_vm2 = vcmp.eq.s32.totalorder %v5990_v61, 1 }
 0x12c   : > { %v792_v29 = vsel %vm7487_vm2, %v632_v9, 0.0 }
 0x12e   : > { %v1038_v17 = vpop.permute.xlu1 %1037 }
 0x12f   : > { %v1082_v18 = vsel %vm1071_vm12, %v1058_v24, %v1038_v17  ;;  %v5994_v26 = vpop.permute.xlu0 %744 }
 0x130   : > { %7603 = vst [vmem:[#allocation27_spill] sm:$0xff] %v5994_v26  ;;  %1100 = vst.msk [vmem:[#allocation3 + $0x18] sm:$0xff] %vm1096_vm5, %v1082_v18  ;;  %vm7492_vm3 = vcmp.eq.s32.totalorder %v5994_v26, 1 }
 0x131   : > { %v791_v19 = vsel %vm7492_vm3, %v631_v44, 0.0  ;;  %vm7616_vm3 = vcmp.eq.s32.totalorder %v5755_v33, 1 }
 0x132   : > { %v5997_v30 = vpop.permute.xlu1 %753  ;;  %v803_v36 = vpack.c.bf16 %v792_v29, %v791_v19 }
 0x133   : > { %v6000_v55 = vpop.permute.xlu0 %750  ;;  %vm7485_vm8 = vcmp.eq.s32.totalorder %v5997_v30, 1 }
 0x134   : > { %vm7486_vm1 = vcmp.eq.s32.totalorder %v6000_v55, 1  ;;  %v794_v11 = vsel %vm7485_vm8, %v634_v1, 0.0 }
 0x135   : > { %v793_v31 = vsel %vm7486_vm1, %v633_v2, 0.0 }
 0x136   : > { %v1018_v25 = vpop.permute.xlu1 %1017  ;;  %v804_v38 = vpack.c.bf16 %v794_v11, %v793_v31 }
 0x137   : > { %v1016_v12 = vpop.permute.xlu0 %1015  ;;  %v1108_v23 = vld [vmem:[#allocation3 + $0x18] sm:$0xff] }
 0x138   : > { %5013 = vmatmul.mubr.msk.bf16.gmra.mrb[4].mxu0 %vm1096_vm5, %v1108_v23  ;;  %v1061_v51 = vsel %vm605_vm9, %v803_v36, %v1016_v12  ;;  %v1064_v13 = vsel %vm605_vm9, %v804_v38, %v1018_v25  ;;  %v5128_v36 = vld [vmem:[%s7459_s8 + $0x80] sm:$0xff]   ;;  %v5129_v38 = vld [vmem:[%s7459_s8 + $0x88] sm:$0xff]  }
 0x139   : > { %5024 = vmatprep.subr.bf16.mxu0 %v5128_v36 }
 0x13a   : > { %v6014_v35 = vpop.permute.xlu1 %759  ;;  %5025 = vmatpush3.bf16.msra.mxu0 %v5128_v36 }
 0x13b   : > { %v1040_v45 = vpop.permute.xlu0 %1039  ;;  %vm7491_vm2 = vcmp.eq.s32.totalorder %v6014_v35, 1  ;;  %5026 = vmatprep.subr.bf16.mxu0 %v5129_v38 }
 0x13c   : > { %v1085_v46 = vsel %vm1071_vm12, %v1061_v51, %v1040_v45  ;;  %v796_v1 = vsel %vm7491_vm2, %v636_v22, 0.0  ;;  %v5130_v51 = vld [vmem:[%s7459_s8 + $0x90] sm:$0xff]   ;;  %v5131_v45 = vld [vmem:[%s7459_s8 + $0x98] sm:$0xff]  }
 0x13d   : > { %1101 = vst.msk [vmem:[#allocation3 + $0x20] sm:$0xff] %vm1096_vm5, %v1085_v46  ;;  %v5132_v46 = vld [vmem:[%s7459_s8 + $0x40] sm:$0xff]   ;;  %v5139_v22 = vld [vmem:[%s7459_s8 + $0x18] sm:$0xff]  }
 0x13e   : > { %v1042_v43 = vpop.permute.xlu1 %1041  ;;  %5027 = vmatpush3.bf16.msra.mxu0 %v5129_v38  ;;  %4655 = vmatprep.subr.bf16.mxu1 %v5132_v46 }
 0x13f   : > { %v1088_v48 = vsel %vm1071_vm12, %v1064_v13, %v1042_v43  ;;  %v6021_v50 = vpop.permute.xlu0 %756  ;;  %5028 = vmatprep.subr.bf16.mxu0 %v5130_v51  ;;  %v5133_v13 = vld [vmem:[%s7459_s8] sm:$0xff]   ;;  %v5134_v43 = vld [vmem:[%s7459_s8 + $0x48] sm:$0xff]  }
 0x140   : > { %1102 = vst.msk [vmem:[#allocation3 + $0x28] sm:$0xff] %vm1096_vm5, %v1088_v48  ;;  %vm7490_vm6 = vcmp.eq.s32.totalorder %v6021_v50, 1  ;;  %4656 = vmatpush3.bf16.msra.mxu1 %v5133_v13  ;;  %v5135_v48 = vld [vmem:[%s7459_s8 + $0x8] sm:$0xff]  }
 0x141   : > { %v795_v8 = vsel %vm7490_vm6, %v635_v57, 0.0  ;;  %4657 = vmatprep.subr.bf16.mxu1 %v5134_v43 }
 0x142   : > { %v6024_v20 = vpop.permute.xlu1 %765  ;;  %v805_v2 = vpack.c.bf16 %v796_v1, %v795_v8  ;;  %5029 = vmatpush3.bf16.msra.mxu0 %v5130_v51  ;;  %v5140_v8 = vld [vmem:[%s7459_s8 + $0x60] sm:$0xff]   ;;  %v5143_v51 = vld [vmem:[%s7459_s8 + $0x28] sm:$0xff]  }
 0x143   : > { %vm7488_vm8 = vcmp.eq.s32.totalorder %v6024_v20, 1  ;;  %v6028_v59 = vpop.permute.xlu0 %762  ;;  %5030 = vmatprep.subr.bf16.mxu0 %v5131_v45 }
 0x144   : > { %v798_v60 = vsel %vm7488_vm8, %v638_v52, 0.0  ;;  %vm7489_vm1 = vcmp.eq.s32.totalorder %v6028_v59, 1  ;;  %v1109_v63 = vld [vmem:[#allocation3 + $0x20] sm:$0xff]  ;;  %vm1319_vm8 = vcmask 517120   ;;  %4658 = vmatpush3.bf16.msra.mxu1 %v5135_v48 }
 0x145   : > { %v797_v3 = vsel %vm7489_vm1, %v637_v53, 0.0  ;;  %5016 = vmatprep.mubr.msk.bf16.mxu0 %vm1096_vm5, %v1109_v63  ;;  %1320 = vst.msk [vmem:[#allocation4 + $0x6] sm:$0x3] %vm1319_vm8, %v7493_v15  ;;  %1338 = vst.msk [vmem:[#allocation4 + $0x88] sm:$0x3] %vm1319_vm8, %v7493_v15  ;;  %v5136_v52 = vld [vmem:[%s7459_s8 + $0x50] sm:$0xff]  }
 0x146   : > { %v806_v24 = vpack.c.bf16 %v798_v60, %v797_v3  ;;  %v1022_v17 = vpop.permute.xlu1 %1021  ;;  %5031 = vmatpush3.bf16.msra.mxu0 %v5131_v45  ;;  %v5137_v53 = vld [vmem:[%s7459_s8 + $0x10] sm:$0xff]   ;;  %4659 = vmatprep.subr.bf16.mxu1 %v5136_v52  ;;  %v5138_v60 = vld [vmem:[%s7459_s8 + $0x58] sm:$0xff]   ;;  %v6095_v3 = vld [vmem:[%s7456_s5] ss:$0 sm:$0xff] }
 0x147   : > { %v1020_v18 = vpop.permute.xlu0 %1019  ;;  %v1110_v44 = vld [vmem:[#allocation3 + $0x28] sm:$0xff] }
 0x148   : > { %5017 = vmatmul.mubr.msk.bf16.gmra.mrb[8].mxu0 %vm1096_vm5, %v1110_v44  ;;  %v1070_v9 = vsel %vm605_vm9, %v806_v24, %v1022_v17  ;;  %v1067_v25 = vsel %vm605_vm9, %v805_v2, %v1020_v18  ;;  %4660 = vmatpush3.bf16.msra.mxu1 %v5137_v53  ;;  %v5141_v17 = vld [vmem:[%s7459_s8 + $0x20] sm:$0xff]   ;;  %vm7556_vm9 = vcmask 523264  }
 0x149   : > { %4661 = vmatprep.subr.bf16.mxu1 %v5138_v60  ;;  %v5144_v60 = vld [vmem:[%s7459_s8 + $0x70] sm:$0xff]  }
 0x14a   : > { %v1046_v19 = vpop.permute.xlu1 %1045 }
 0x14b   : > { %v1094_v11 = vsel %vm1071_vm12, %v1070_v9, %v1046_v19  ;;  %v1044_v31 = vpop.permute.xlu0 %1043  ;;  %v6111_v9 = vld [vmem:[%s7457_s6] ss:$0 sm:$0xff] }
 0x14c   : > { %1104 = vst.msk [vmem:[#allocation3 + $0x38] sm:$0xff] %vm1096_vm5, %v1094_v11  ;;  %v1091_v12 = vsel %vm1071_vm12, %v1067_v25, %v1044_v31  ;;  %4662 = vmatpush3.bf16.msra.mxu1 %v5139_v22 }
 0x14d   : > { %1103 = vst.msk [vmem:[#allocation3 + $0x30] sm:$0xff] %vm1096_vm5, %v1091_v12  ;;  %4663 = vmatprep.subr.bf16.mxu1 %v5140_v8 }
 0x14e   : > { %v6082_v57 = vpop.permute.xlu1 %1439 }
 0x14f   : > { %v6087_v63 = vpop.permute.xlu0 %1436 }
 0x150   : > { %4664 = vmatpush3.bf16.msra.mxu1 %v5141_v17  ;;  %v5145_v17 = vld [vmem:[%s7459_s8 + $0x30] sm:$0xff]  }
 0x152   : > { %v6103_v18 = vpop.permute.xlu1 %1711 }
 0x153   : > { %v1112_v23 = vld [vmem:[#allocation3 + $0x38] sm:$0xff]  ;;  %7604 = vst [vmem:[#allocation28_spill] sm:$0xff] %v6103_v18  ;;  %v6106_v2 = vpop.permute.xlu0 %1708  ;;  %vm7506_vm12 = vcmp.eq.s32.totalorder %v6103_v18, 1 }
 0x154   : > { %v1111_v29 = vld [vmem:[#allocation3 + $0x30] sm:$0xff]  ;;  %7605 = vst [vmem:[#allocation29_spill] sm:$0xff] %v6106_v2  ;;  %vm7507_vm1 = vcmp.eq.s32.totalorder %v6106_v2, 1 }
 0x155   : > { %5020 = vmatprep.mubr.msk.bf16.mxu0 %vm1096_vm5, %v1111_v29  ;;  %v6121_v29 = vld [vmem:[%s7458_s7] ss:$0 sm:$0xff] }
 0x156   : > { %5021 = vmatmul.mubr.msk.bf16.gmra.mrb[12].mxu0 %vm1096_vm5, %v1112_v23  ;;  %v5142_v23 = vld [vmem:[%s7459_s8 + $0x68] sm:$0xff]   ;;  %v6129_v48 = vpop.permute.xlu1 %1717 }
 0x157   : > { %4665 = vmatprep.subr.bf16.mxu1 %v5142_v23  ;;  %7606 = vst [vmem:[#allocation30_spill] sm:$0xff] %v6129_v48  ;;  %v6138_v22 = vpop.permute.xlu0 %1714 }
 0x158   : > { %4666 = vmatpush3.bf16.msra.mxu1 %v5143_v51  ;;  %7608 = vst [vmem:[#allocation32_spill] sm:$0xff] %v6138_v22  ;;  %v6184_v51 = vld [vmem:[%s7566_s15 + $0x58] sm:$0xff] }
 0x159   : > { %4667 = vmatprep.subr.bf16.mxu1 %v5144_v60 }
 0x15b   : > { %v6173_v23 = vpop.permute.xlu0 %1442 }
 0x15c   : > { %4668 = vmatpush3.bf16.msra.mxu1 %v5145_v17  ;;  %7613 = vst [vmem:[#allocation37_spill] sm:$0xff] %v6173_v23 }
 0x1f4   : > { %v5010_v24 = vpop.f32.mrb[0].mxu0 }
 0x1f5   : > { %v1203_v44 = vadd.f32 %v5010_v24, %v6095_v3  ;;  %v1194_v1 = vpop.f32.mrb[1].mxu0 }
 0x1f6   : > { %v1195_v19 = vadd.f32 %v6095_v3, %v1194_v1  ;;  %v5011_v25 = vpop.f32.mrb[2].mxu0 }
 0x1f7   : > { %v1259_v11 = vmax.f32 %v1203_v44, 0.0  ;;  %v1206_v31 = vadd.f32 %v5011_v25, %v6095_v3  ;;  %v1197_v12 = vpop.f32.mrb[3].mxu0 }
 0x1f8   : > { %v1257_v36 = vmax.f32 %v1195_v19, 0.0  ;;  %v1198_v38 = vadd.f32 %v6095_v3, %v1197_v12  ;;  %v5146_v19 = vld [vmem:[%s7459_s8 + $0x78] sm:$0xff]   ;;  %v6171_v12 = vpop.permute.xlu1 %1445 }
 0x1f9   : > { %v1282_v45 = vmul.f32 %v6111_v9, %v1259_v11  ;;  %v1260_v46 = vmax.f32 %v1206_v31, 0.0  ;;  %v5147_v31 = vld [vmem:[%s7459_s8 + $0x38] sm:$0xff]   ;;  %7612 = vst [vmem:[#allocation36_spill] sm:$0xff] %v6171_v12  ;;  %4669 = vmatprep.subr.bf16.mxu1 %v5146_v19 }
 0x1fa   : > { %v1280_v13 = vmul.f32 %v6111_v9, %v1257_v36  ;;  %v1258_v43 = vmax.f32 %v1198_v38, 0.0  ;;  %v6178_v36 = vld [vmem:[%s7566_s15 + $0x50] sm:$0xff]  ;;  %4670 = vmatpush3.bf16.msra.mxu1 %v5147_v31 }
 0x1fb   : > { %v6132_v52 = vadd.f32 %v6121_v29, %v1282_v45  ;;  %v1283_v53 = vmul.f32 %v6111_v9, %v1260_v46  ;;  %v1637_v38 = vadd.s32 2, %v6178_v36  ;;  %v1638_v45 = vadd.s32 2, %v6184_v51 }
 0x1fc   : > { %v6141_v8 = vadd.f32 %v6121_v29, %v1280_v13  ;;  %v1281_v24 = vmul.f32 %v6111_v9, %v1258_v43  ;;  %v6189_v13 = vpop.permute.xlu1 %1451 }
 0x1fd   : > { %7607 = vst [vmem:[#allocation31_spill] sm:$0xff] %v6132_v52  ;;  %1324 = vst.msk [vmem:[#allocation4 + $0x18] sm:$0xff] %vm7556_vm9, %v6132_v52  ;;  %v6150_v44 = vadd.f32 %v6121_v29, %v1283_v53  ;;  %vm1653_vm5 = vcmp.ge.s32.totalorder %v1637_v38, 0  ;;  %vm1669_vm8 = vcmp.lt.s32.totalorder %v1637_v38, 16  ;;  %vm1654_vm6 = vcmp.ge.s32.totalorder %v1638_v45, 0 }
 0x1fe   : > { %7609 = vst [vmem:[#allocation33_spill] sm:$0xff] %v6141_v8  ;;  %1322 = vst.msk [vmem:[#allocation4 + $0x8] sm:$0xff] %vm7556_vm9, %v6141_v8  ;;  %v6155_v1 = vadd.f32 %v6121_v29, %v1281_v24  ;;  %vm1670_vm2 = vcmp.lt.s32.totalorder %v1638_v45, 16  ;;  %v6191_v24 = vpop.permute.xlu0 %1448 }
 0x1ff   : > { %7610 = vst [vmem:[#allocation34_spill] sm:$0xff] %v6150_v44  ;;  %1325 = vst.msk [vmem:[#allocation4 + $0x20] sm:$0xff] %vm7556_vm9, %v6150_v44 }
 0x200   : > { %7611 = vst [vmem:[#allocation35_spill] sm:$0xff] %v6155_v1  ;;  %1323 = vst.msk [vmem:[#allocation4 + $0x10] sm:$0xff] %vm7556_vm9, %v6155_v1 }
 0x201   : > { %7614 = vst [vmem:[#allocation38_spill] sm:$0xff] %v6189_v13  ;;  %7615 = vst [vmem:[#allocation39_spill] sm:$0xff] %v6191_v24 }
 0x202   : > { %vm6207_vm11 = vmand %vm1653_vm5, %vm1669_vm8 }
 0x205   : > { %v1523_v46 = vld [vmem:[#allocation4 + $0x7] sm:$0xff] }
 0x206   : > { %v1539_v4 = vsel %vm767_vm0, %v1523_v46, 0.0  ;;  %v1526_v47 = vld [vmem:[#allocation4 + $0x1f] sm:$0xff] }
 0x207   : > { %v1611_v43 = vld [vmem:[#allocation4 + $0xa] sm:$0xff]  ;;  %v1612_v53 = vld [vmem:[#allocation4 + $0x12] sm:$0xff] }
 0x208   : > { %v1571_v60 = vld [vmem:[#allocation4 + $0x9] sm:$0xff]  ;;  %v1572_v17 = vld [vmem:[#allocation4 + $0x11] sm:$0xff]  ;;  %v1771_v15 = vsel %vm7507_vm1, %v1611_v43, 0.0  ;;  %v1772_v25 = vsel %vm7506_vm12, %v1612_v53, 0.0  ;;  %v1366_v53 = vadd.s32 4294967294, %v6184_v51  ;;  %vm7530_vm12 = vcmp.eq.s32.totalorder %v6138_v22, 1 }
 0x209   : > { %v1587_v19 = vsel %vm7616_vm3, %v1571_v60, 0.0  ;;  %v1524_v31 = vld [vmem:[#allocation4 + $0xf] sm:$0xff]  ;;  %v1588_v11 = vsel %vm7617_vm4, %v1572_v17, 0.0  ;;  %v1787_v33 = vpack.c.bf16 %v1772_v25, %v1771_v15  ;;  %vm1686_vm3 = vmand %vm1654_vm6, %vm1670_vm2  ;;  %v6217_v15 = vpop.permute.xlu1 %1723  ;;  %v1542_v60 = vsel %vm7508_vm7, %v1526_v47, 0.0 }
 0x20a   : > { %v1540_v24 = vsel %vm7546_vm13, %v1524_v31, 0.0  ;;  %v1603_v43 = vpack.c.bf16 %v1588_v11, %v1587_v19  ;;  %v1525_v31 = vld [vmem:[#allocation4 + $0x17] sm:$0xff]  ;;  %7620 = vst [vmem:[#allocation40_spill] sm:$0xff] %v6217_v15  ;;  %v7621_v11 = vmov 0   ;;  %vm1382_vm4 = vcmp.ge.s32.totalorder %v1366_v53, 0 }
 0x20b   : > { %v1555_v2 = vpack.c.bf16 %v1540_v24, %v1539_v4  ;;  %v5014_v17 = vpop.f32.mrb[4].mxu0  ;;  %1923 = vst.msk [vmem:[#allocation5 + $0x10] sm:$0xff] %vm7556_vm9, %v1787_v33  ;;  %v1701_v45 = vsel %vm6207_vm11, 1, %v7621_v11  ;;  %v1702_v33 = vsel %vm1686_vm3, 1, %v7621_v11  ;;  %v6224_v24 = vpop.permute.xlu0 %1720  ;;  %vm1398_vm2 = vcmp.lt.s32.totalorder %v1366_v53, 16 }
 0x20c   : > { %1867 = vrot.lane.b32.xlu0 %v1603_v43, %s5256_s26  ;;  %v1219_v38 = vadd.f32 %v5014_v17, %v6095_v3  ;;  %v1210_v46 = vpop.f32.mrb[5].mxu0  ;;  %7622 = vst [vmem:[#allocation41_spill] sm:$0xff] %v6224_v24  ;;  %vm1414_vm11 = vmand %vm1382_vm4, %vm1398_vm2  ;;  %vm7527_vm1 = vcmp.eq.s32.totalorder %v6217_v15, 1  ;;  %vm7528_vm7 = vcmp.eq.s32.totalorder %v6224_v24, 1 }
 0x20d   : > { %1803 = vrot.lane.b32.xlu1 %v1555_v2, %s5256_s26  ;;  %v1211_v4 = vadd.f32 %v6095_v3, %v1210_v46  ;;  %v5015_v25 = vpop.f32.mrb[6].mxu0  ;;  %v1541_v46 = vsel %vm7545_vm14, %v1525_v31, 0.0 }
 0x20e   : > { %v1263_v19 = vmax.f32 %v1219_v38, 0.0  ;;  %v1222_v2 = vadd.f32 %v5015_v25, %v6095_v3  ;;  %v1213_v43 = vpop.f32.mrb[7].mxu0  ;;  %v1365_v38 = vadd.s32 4294967294, %v6178_v36 }
 0x20f   : > { %v1261_v17 = vmax.f32 %v1211_v4, 0.0  ;;  %v1214_v18 = vadd.f32 %v6095_v3, %v1213_v43  ;;  %v6238_v4 = vld [vmem:[%s7566_s15 + $0x68] sm:$0xff] }
 0x210   : > { %v1286_v14 = vmul.f32 %v6111_v9, %v1263_v19  ;;  %v1264_v16 = vmax.f32 %v1222_v2, 0.0  ;;  %1738 = vperm.xlu0 %5124, %v1701_v45   ;;  %v1368_v31 = vadd.s32 4294967294, %v6238_v4  ;;  %v1556_v45 = vpack.c.bf16 %v1542_v60, %v1541_v46  ;;  %v6252_v2 = vpop.permute.xlu1 %1729  ;;  %v1613_v60 = vld [vmem:[#allocation4 + $0x1a] sm:$0xff] }
 0x211   : > { %1741 = vperm.xlu1 %5125, %v1702_v33   ;;  %v1284_v25 = vmul.f32 %v6111_v9, %v1261_v17  ;;  %v1262_v52 = vmax.f32 %v1214_v18, 0.0  ;;  %v6254_v17 = vpop.permute.xlu0 %1726  ;;  %vm1381_vm6 = vcmp.ge.s32.totalorder %v1365_v38, 0  ;;  %vm1397_vm5 = vcmp.lt.s32.totalorder %v1365_v38, 16  ;;  %v1573_v38 = vld [vmem:[#allocation4 + $0x19] sm:$0xff] }
 0x212   : > { %v6242_v43 = vadd.f32 %v6121_v29, %v1286_v14  ;;  %v1287_v47 = vmul.f32 %v6111_v9, %v1264_v16  ;;  %v1933_v19 = vld [vmem:[#allocation5 + $0x10] sm:$0xff]  ;;  %7625 = vst [vmem:[#allocation44_spill] sm:$0xff] %v6254_v17  ;;  %vm1384_vm8 = vcmp.ge.s32.totalorder %v1368_v31, 0  ;;  %vm1400_vm3 = vcmp.lt.s32.totalorder %v1368_v31, 16  ;;  %vm1413_vm4 = vmand %vm1381_vm6, %vm1397_vm5 }
 0x213   : > { %v6248_v33 = vadd.f32 %v6121_v29, %v1284_v25  ;;  %v1285_v18 = vmul.f32 %v6111_v9, %v1262_v52  ;;  %5032 = vmatprep.mubr.msk.bf16.mxu0 %vm7556_vm9, %v1933_v19  ;;  %v1430_v52 = vsel %vm1414_vm11, 1, %v7621_v11  ;;  %vm1416_vm2 = vmand %vm1384_vm8, %vm1400_vm3  ;;  %vm7529_vm11 = vcmp.eq.s32.totalorder %v6129_v48, 1 }
 0x214   : > { %7623 = vst [vmem:[#allocation42_spill] sm:$0xff] %v6242_v43  ;;  %1328 = vst.msk [vmem:[#allocation4 + $0x38] sm:$0xff] %vm7556_vm9, %v6242_v43  ;;  %v6259_v14 = vadd.f32 %v6121_v29, %v1287_v47  ;;  %v6280_v25 = vpop.permute.xlu1 %1457  ;;  %v1429_v19 = vsel %vm1413_vm4, 1, %v7621_v11  ;;  %v6297_v53 = vadd.s32 2, %v6238_v4  ;;  %v1773_v46 = vsel %vm7530_vm12, %v1613_v60, 0.0 }
 0x215   : > { %7624 = vst [vmem:[#allocation43_spill] sm:$0xff] %v6248_v33  ;;  %1805 = vrot.lane.b32.xlu1 %v1556_v45, %s5256_s26  ;;  %1326 = vst.msk [vmem:[#allocation4 + $0x28] sm:$0xff] %vm7556_vm9, %v6248_v33  ;;  %v6265_v16 = vadd.f32 %v6121_v29, %v1285_v18  ;;  %v6282_v31 = vpop.permute.xlu0 %1454  ;;  %v6286_v45 = vsel %vm1416_vm2, 1, %v7621_v11  ;;  %v6291_v18 = vld [vmem:[%s7566_s15 + $0x60] sm:$0xff]  ;;  %vm7630_vm6 = vcmp.eq.s32.totalorder %v5753_v27, 1  ;;  %vm7631_vm5 = vcmp.eq.s32.totalorder %v5762_v37, 1 }
 0x216   : > { %7626 = vst [vmem:[#allocation45_spill] sm:$0xff] %v6259_v14  ;;  %1329 = vst.msk [vmem:[#allocation4 + $0x40] sm:$0xff] %vm7556_vm9, %v6259_v14  ;;  %v1589_v33 = vsel %vm7630_vm6, %v1573_v38, 0.0  ;;  %vm7632_vm4 = vcmp.eq.s32.totalorder %v5780_v58, 1  ;;  %vm7633_vm2 = vcmp.eq.s32.totalorder %v5777_v54, 1  ;;  %vm1656_vm6 = vcmp.ge.s32.totalorder %v6297_v53, 0 }
 0x217   : > { %7627 = vst [vmem:[#allocation46_spill] sm:$0xff] %v6265_v16  ;;  %1327 = vst.msk [vmem:[#allocation4 + $0x30] sm:$0xff] %vm7556_vm9, %v6265_v16  ;;  %vm7642_vm12 = vcmp.eq.s32.totalorder %v5794_v7, 1 }
 0x218   : > { %7628 = vst [vmem:[#allocation47_spill] sm:$0xff] %v6280_v25  ;;  %7629 = vst [vmem:[#allocation48_spill] sm:$0xff] %v6282_v31  ;;  %v6317_v37 = vpop.permute.xlu1 %1463 }
 0x219   : > { %1469 = vperm.xlu1 %5125, %v1430_v52   ;;  %v6294_v52 = vadd.s32 4294967294, %v6291_v18 }
 0x21b   : > { %v5018_v47 = vpop.f32.mrb[8].mxu0  ;;  %vm1383_vm8 = vcmp.ge.s32.totalorder %v6294_v52, 0  ;;  %vm1399_vm3 = vcmp.lt.s32.totalorder %v6294_v52, 16 }
 0x21c   : > { %v1614_v49 = vld [vmem:[#allocation4 + $0x22] sm:$0xff]  ;;  %v1235_v34 = vadd.f32 %v5018_v47, %v6095_v3  ;;  %v1226_v43 = vpop.f32.mrb[9].mxu0 }
 0x21d   : > { %v1574_v14 = vld [vmem:[#allocation4 + $0x21] sm:$0xff]  ;;  %v1774_v31 = vsel %vm7529_vm11, %v1614_v49, 0.0  ;;  %v1227_v25 = vadd.f32 %v6095_v3, %v1226_v43  ;;  %v5019_v44 = vpop.f32.mrb[10].mxu0  ;;  %vm6371_vm11 = vmand %vm1383_vm8, %vm1399_vm3  ;;  %vm7541_vm8 = vcmp.eq.s32.totalorder %v6252_v2, 1 }
 0x21e   : > { %v1527_v16 = vld [vmem:[#allocation4 + $0x27] sm:$0xff]  ;;  %v1590_v13 = vsel %vm7631_vm5, %v1574_v14, 0.0  ;;  %v1788_v22 = vpack.c.bf16 %v1774_v31, %v1773_v46  ;;  %v1616_v23 = vld [vmem:[#allocation4 + $0x32] sm:$0xff]  ;;  %v1267_v12 = vmax.f32 %v1235_v34, 0.0  ;;  %v1238_v27 = vadd.f32 %v5019_v44, %v6095_v3  ;;  %v1229_v38 = vpop.f32.mrb[11].mxu0 }
 0x21f   : > { %v1543_v60 = vsel %vm7544_vm15, %v1527_v16, 0.0  ;;  %v1615_v47 = vld [vmem:[#allocation4 + $0x2a] sm:$0xff]  ;;  %v1604_v8 = vpack.c.bf16 %v1590_v13, %v1589_v33  ;;  %v1265_v48 = vmax.f32 %v1227_v25, 0.0  ;;  %v1230_v49 = vadd.f32 %v6095_v3, %v1229_v38  ;;  %v6319_v16 = vpop.permute.xlu0 %1460 }
 0x220   : > { %v1528_v1 = vld [vmem:[#allocation4 + $0x2f] sm:$0xff]  ;;  %v1775_v14 = vsel %vm7528_vm7, %v1615_v47, 0.0  ;;  %1924 = vst.msk [vmem:[#allocation5 + $0x28] sm:$0xff] %vm7556_vm9, %v1788_v22  ;;  %v1290_v34 = vmul.f32 %v6111_v9, %v1267_v12  ;;  %v1268_v44 = vmax.f32 %v1238_v27, 0.0  ;;  %v1639_v25 = vadd.s32 2, %v6291_v18  ;;  %v1529_v12 = vld [vmem:[#allocation4 + $0x37] sm:$0xff] }
 0x221   : > { %v1544_v43 = vsel %vm7543_vm10, %v1528_v1, 0.0  ;;  %1869 = vrot.lane.b32.xlu0 %v1604_v8, %s5256_s26  ;;  %v1575_v33 = vld [vmem:[#allocation4 + $0x29] sm:$0xff]  ;;  %v1576_v46 = vld [vmem:[#allocation4 + $0x31] sm:$0xff]  ;;  %v1288_v1 = vmul.f32 %v6111_v9, %v1265_v48  ;;  %v1266_v31 = vmax.f32 %v1230_v49, 0.0  ;;  %v1776_v47 = vsel %vm7527_vm1, %v1616_v23, 0.0 }
 0x222   : > { %v1557_v13 = vpack.c.bf16 %v1544_v43, %v1543_v60  ;;  %v6330_v22 = vadd.f32 %v6121_v29, %v1290_v34  ;;  %v1291_v27 = vmul.f32 %v6111_v9, %v1268_v44  ;;  %v1789_v8 = vpack.c.bf16 %v1776_v47, %v1775_v14  ;;  %v1530_v60 = vld [vmem:[#allocation4 + $0x3f] sm:$0xff] }
 0x223   : > { %v6336_v48 = vadd.f32 %v6121_v29, %v1288_v1  ;;  %v1289_v38 = vmul.f32 %v6111_v9, %v1266_v31  ;;  %v1591_v23 = vsel %vm7632_vm4, %v1575_v33, 0.0  ;;  %v1592_v49 = vsel %vm7633_vm2, %v1576_v46, 0.0  ;;  %v6378_v1 = vld [vmem:[%s7566_s15 + $0x78] sm:$0xff] }
 0x224   : > { %1807 = vrot.lane.b32.xlu1 %v1557_v13, %s5256_s26  ;;  %1332 = vst.msk [vmem:[#allocation4 + $0x58] sm:$0xff] %vm7556_vm9, %v6330_v22  ;;  %v6346_v43 = vadd.f32 %v6121_v29, %v1291_v27  ;;  %1925 = vst.msk [vmem:[#allocation5 + $0x40] sm:$0xff] %vm7556_vm9, %v1789_v8  ;;  %vm1672_vm5 = vcmp.lt.s32.totalorder %v6297_v53, 16  ;;  %vm1655_vm1 = vcmp.ge.s32.totalorder %v1639_v25, 0  ;;  %vm7634_vm4 = vcmp.eq.s32.totalorder %v5952_v42, 1  ;;  %v6362_v13 = vpop.permute.xlu0 %1732  ;;  %v1577_v27 = vld [vmem:[#allocation4 + $0x39] sm:$0xff] }
 0x225   : > { %1466 = vperm.xlu0 %5124, %v1429_v19   ;;  %1330 = vst.msk [vmem:[#allocation4 + $0x48] sm:$0xff] %vm7556_vm9, %v6336_v48  ;;  %v6354_v14 = vadd.f32 %v6121_v29, %v1289_v38  ;;  %v1545_v34 = vsel %vm7634_vm4, %v1529_v12, 0.0  ;;  %vm7635_vm2 = vcmp.eq.s32.totalorder %v5950_v5, 1  ;;  %vm1671_vm7 = vcmp.lt.s32.totalorder %v1639_v25, 16  ;;  %v6360_v19 = vpop.permute.xlu1 %1735  ;;  %vm6387_vm4 = vmand %vm1656_vm6, %vm1672_vm5  ;;  %v1617_v53 = vld [vmem:[#allocation4 + $0x3a] sm:$0xff] }
 0x226   : > { %v1546_v44 = vsel %vm7635_vm2, %v1530_v60, 0.0  ;;  %1333 = vst.msk [vmem:[#allocation4 + $0x60] sm:$0xff] %vm7556_vm9, %v6346_v43  ;;  %v1605_v33 = vpack.c.bf16 %v1592_v49, %v1591_v23  ;;  %v1642_v31 = vadd.s32 2, %v6378_v1  ;;  %vm6396_vm3 = vmand %vm1655_vm1, %vm1671_vm7  ;;  %vm7542_vm2 = vcmp.eq.s32.totalorder %v6254_v17, 1 }
 0x227   : > { %1331 = vst.msk [vmem:[#allocation4 + $0x50] sm:$0xff] %vm7556_vm9, %v6354_v14  ;;  %v1558_v47 = vpack.c.bf16 %v1546_v44, %v1545_v34  ;;  %vm7539_vm6 = vcmp.eq.s32.totalorder %v6360_v19, 1  ;;  %vm7540_vm5 = vcmp.eq.s32.totalorder %v6362_v13, 1  ;;  %v1431_v60 = vsel %vm6371_vm11, 1, %v7621_v11 }
 0x228   : > { %1475 = vperm.xlu1 %5125, %v6286_v45   ;;  %v1936_v45 = vld [vmem:[#allocation5 + $0x28] sm:$0xff]  ;;  %v1704_v25 = vsel %vm6387_vm4, 1, %v7621_v11  ;;  %vm1658_vm7 = vcmp.ge.s32.totalorder %v1642_v31, 0  ;;  %vm1674_vm1 = vcmp.lt.s32.totalorder %v1642_v31, 16  ;;  %v1703_v46 = vsel %vm6396_vm3, 1, %v7621_v11 }
 0x229   : > { %5033 = vmatmul.mubr.msk.bf16.vlgmr.msra.gmra.mrb[16].mxu0 %vm7556_vm9, %v1936_v45  ;;  %1871 = vrot.lane.b32.xlu0 %v1605_v33, %s5256_s26  ;;  %v5022_v12 = vpop.f32.mrb[12].mxu0  ;;  %v1593_v33 = vsel %vm7642_vm12, %v1577_v27, 0.0  ;;  %v6420_v45 = vld [vmem:[%s7566_s15 + $0x70] sm:$0xff]  ;;  %v1777_v8 = vsel %vm7542_vm2, %v1617_v53, 0.0  ;;  %vm7643_vm12 = vcmp.eq.s32.totalorder %v5787_v0, 1  ;;  %vm7644_vm11 = vcmp.eq.s32.totalorder %v5994_v26, 1  ;;  %vm6438_vm4 = vmand %vm1658_vm7, %vm1674_vm1 }
 0x22a   : > { %v1251_v38 = vadd.f32 %v5022_v12, %v6095_v3  ;;  %v1242_v23 = vpop.f32.mrb[13].mxu0  ;;  %v6423_v52 = vadd.s32 2, %v6420_v45  ;;  %vm7647_vm3 = vcmp.eq.s32.totalorder %v5990_v61, 1 }
 0x22b   : > { %v1243_v49 = vadd.f32 %v6095_v3, %v1242_v23  ;;  %v5023_v34 = vpop.f32.mrb[14].mxu0  ;;  %v1939_v44 = vld [vmem:[#allocation5 + $0x40] sm:$0xff] }
 0x22c   : > { %1809 = vrot.lane.b32.xlu1 %v1558_v47, %s5256_s26  ;;  %v1618_v47 = vld [vmem:[#allocation4 + $0x42] sm:$0xff]  ;;  %v1271_v12 = vmax.f32 %v1251_v38, 0.0  ;;  %v1254_v23 = vadd.f32 %v5023_v34, %v6095_v3  ;;  %5036 = vmatprep.mubr.msk.bf16.mxu0 %vm7556_vm9, %v1939_v44  ;;  %v1245_v7 = vpop.f32.mrb[15].mxu0  ;;  %vm1657_vm7 = vcmp.ge.s32.totalorder %v6423_v52, 0  ;;  %vm1673_vm1 = vcmp.lt.s32.totalorder %v6423_v52, 16 }
 0x22d   : > { %1472 = vperm.xlu0 %5124, %v1431_v60   ;;  %v1578_v27 = vld [vmem:[#allocation4 + $0x41] sm:$0xff]  ;;  %v1269_v15 = vmax.f32 %v1243_v49, 0.0  ;;  %v1246_v24 = vadd.f32 %v6095_v3, %v1245_v7  ;;  %v1778_v7 = vsel %vm7541_vm8, %v1618_v47, 0.0 }
 0x22e   : > { %v1531_v54 = vld [vmem:[#allocation4 + $0x47] sm:$0xff]  ;;  %v1594_v38 = vsel %vm7643_vm12, %v1578_v27, 0.0  ;;  %v1294_v53 = vmul.f32 %v6111_v9, %v1271_v12  ;;  %v1272_v17 = vmax.f32 %v1254_v23, 0.0  ;;  %v1532_v58 = vld [vmem:[#allocation4 + $0x4f] sm:$0xff]  ;;  %v1790_v0 = vpack.c.bf16 %v1778_v7, %v1777_v8 }
 0x22f   : > { %v1547_v34 = vsel %vm7644_vm11, %v1531_v54, 0.0  ;;  %v1619_v44 = vld [vmem:[#allocation4 + $0x4a] sm:$0xff]  ;;  %v1606_v49 = vpack.c.bf16 %v1594_v38, %v1593_v33  ;;  %v1620_v3 = vld [vmem:[#allocation4 + $0x52] sm:$0xff]  ;;  %v1292_v27 = vmul.f32 %v6111_v9, %v1269_v15  ;;  %v1270_v54 = vmax.f32 %v1246_v24, 0.0 }
 0x230   : > { %1747 = vperm.xlu1 %5125, %v1704_v25   ;;  %v1548_v31 = vsel %vm7647_vm3, %v1532_v58, 0.0  ;;  %v6449_v26 = vadd.f32 %v6121_v29, %v1294_v53  ;;  %v1295_v12 = vmul.f32 %v6111_v9, %v1272_v17  ;;  %v1706_v33 = vsel %vm6438_vm4, 1, %v7621_v11  ;;  %v1579_v47 = vld [vmem:[#allocation4 + $0x49] sm:$0xff]  ;;  %v1580_v23 = vld [vmem:[#allocation4 + $0x51] sm:$0xff]  ;;  %1926 = vst.msk [vmem:[#allocation5 + $0x58] sm:$0xff] %vm7556_vm9, %v1790_v0 }
 0x231   : > { %1873 = vrot.lane.b32.xlu0 %v1606_v49, %s5256_s26  ;;  %v1559_v25 = vpack.c.bf16 %v1548_v31, %v1547_v34  ;;  %v6457_v15 = vadd.f32 %v6121_v29, %v1292_v27  ;;  %v1293_v58 = vmul.f32 %v6111_v9, %v1270_v54  ;;  %v1779_v24 = vsel %vm7540_vm5, %v1619_v44, 0.0  ;;  %v1533_v34 = vld [vmem:[#allocation4 + $0x57] sm:$0xff]  ;;  %v1534_v9 = vld [vmem:[#allocation4 + $0x5f] sm:$0xff] }
 0x232   : > { %v1370_v17 = vadd.s32 4294967294, %v6378_v1  ;;  %1336 = vst.msk [vmem:[#allocation4 + $0x78] sm:$0xff] %vm7556_vm9, %v6449_v26  ;;  %v6467_v8 = vadd.f32 %v6121_v29, %v1295_v12  ;;  %v1780_v38 = vsel %vm7539_vm6, %v1620_v3, 0.0  ;;  %vm7648_vm12 = vcmp.eq.s32.totalorder %v5817_v40, 1 }
 0x233   : > { %1334 = vst.msk [vmem:[#allocation4 + $0x68] sm:$0xff] %vm7556_vm9, %v6457_v15  ;;  %v6477_v0 = vadd.f32 %v6121_v29, %v1293_v58  ;;  %v1595_v60 = vsel %vm7648_vm12, %v1579_v47, 0.0  ;;  %vm7649_vm11 = vcmp.eq.s32.totalorder %v5815_v32, 1  ;;  %v1791_v53 = vpack.c.bf16 %v1780_v38, %v1779_v24  ;;  %v6513_v38 = vld [vmem:[%s7566_s15 + $0x8] sm:$0xff] }
 0x234   : > { %1811 = vrot.lane.b32.xlu1 %v1559_v25, %s5256_s26  ;;  %v1596_v44 = vsel %vm7649_vm11, %v1580_v23, 0.0  ;;  %1337 = vst.msk [vmem:[#allocation4 + $0x80] sm:$0xff] %vm7556_vm9, %v6467_v8  ;;  %vm7650_vm4 = vcmp.eq.s32.totalorder %v6000_v55, 1  ;;  %vm7651_vm3 = vcmp.eq.s32.totalorder %v5997_v30, 1  ;;  %vm1386_vm12 = vcmp.ge.s32.totalorder %v1370_v17, 0  ;;  %vm1689_vm11 = vmand %vm1657_vm7, %vm1673_vm1  ;;  %v1581_v25 = vld [vmem:[#allocation4 + $0x59] sm:$0xff] }
 0x235   : > { %1744 = vperm.xlu0 %5124, %v1703_v46   ;;  %1335 = vst.msk [vmem:[#allocation4 + $0x70] sm:$0xff] %vm7556_vm9, %v6477_v0  ;;  %1927 = vst.msk [vmem:[#allocation5 + $0x70] sm:$0xff] %vm7556_vm9, %v1791_v53  ;;  %v1549_v29 = vsel %vm7650_vm4, %v1533_v34, 0.0  ;;  %v1550_v49 = vsel %vm7651_vm3, %v1534_v9, 0.0  ;;  %vm1402_vm6 = vcmp.lt.s32.totalorder %v1370_v17, 16  ;;  %v1607_v7 = vpack.c.bf16 %v1596_v44, %v1595_v60 }
 0x236   : > { %v1369_v46 = vadd.s32 4294967294, %v6420_v45  ;;  %v1560_v27 = vpack.c.bf16 %v1550_v49, %v1549_v29  ;;  %vm1418_vm5 = vmand %vm1386_vm12, %vm1402_vm6  ;;  %v1705_v31 = vsel %vm1689_vm11, 1, %v7621_v11  ;;  %vm7652_vm6 = vcmp.eq.s32.totalorder %v5826_v21, 1 }
 0x237   : > { %v1942_v3 = vld [vmem:[#allocation5 + $0x58] sm:$0xff]  ;;  %v1434_v47 = vsel %vm1418_vm5, 1, %v7621_v11  ;;  %v2437_v34 = vadd.s32 4294967293, %v6513_v38  ;;  %vm7653_vm5 = vcmp.eq.s32.totalorder %v5828_v28, 1  ;;  %vm7654_vm4 = vcmp.eq.s32.totalorder %v6014_v35, 1  ;;  %v5201_v28 = vld [vmem:[%s7463_s12 + $0x128] sm:$0xff]  }
 0x238   : > { %1753 = vperm.xlu1 %5125, %v1706_v33   ;;  %5037 = vmatmul.mubr.msk.bf16.gmra.mrb[20].mxu0 %vm7556_vm9, %v1942_v3  ;;  %vm1385_vm7 = vcmp.ge.s32.totalorder %v1369_v46, 0  ;;  %vm1401_vm1 = vcmp.lt.s32.totalorder %v1369_v46, 16  ;;  %v1597_v9 = vsel %vm7653_vm5, %v1581_v25, 0.0  ;;  %vm7655_vm12 = vcmp.eq.s32.totalorder %v6021_v50, 1 }
 0x239   : > { %1875 = vrot.lane.b32.xlu0 %v1607_v7, %s5256_s26  ;;  %vm1417_vm3 = vmand %vm1385_vm7, %vm1401_vm1  ;;  %vm2453_vm11 = vcmp.ge.s32.totalorder %v2437_v34, 0  ;;  %vm7656_vm5 = vcmp.eq.s32.totalorder %v6028_v59, 1  ;;  %vm7658_vm7 = vcmp.eq.s32.totalorder %v5853_v41, 1  ;;  %vm7659_vm1 = vcmp.eq.s32.totalorder %v5851_v39, 1 }
 0x23a   : > { %v1582_v33 = vld [vmem:[#allocation4 + $0x61] sm:$0xff] }
 0x23b   : > { %v1598_v23 = vsel %vm7652_vm6, %v1582_v33, 0.0  ;;  %v1535_v24 = vld [vmem:[#allocation4 + $0x67] sm:$0xff]  ;;  %v1538_v29 = vld [vmem:[#allocation4 + $0x7f] sm:$0xff]  ;;  %vm2469_vm6 = vcmp.lt.s32.totalorder %v2437_v34, 16 }
 0x23c   : > { %1813 = vrot.lane.b32.xlu1 %v1560_v27, %s5256_s26  ;;  %v1945_v58 = vld [vmem:[#allocation5 + $0x70] sm:$0xff]  ;;  %v1536_v17 = vld [vmem:[#allocation4 + $0x6f] sm:$0xff]  ;;  %v1608_v44 = vpack.c.bf16 %v1598_v23, %v1597_v9  ;;  %v1537_v53 = vld [vmem:[#allocation4 + $0x77] sm:$0xff]  ;;  %v1551_v49 = vsel %vm7655_vm12, %v1535_v24, 0.0  ;;  %v1433_v27 = vsel %vm1417_vm3, 1, %v7621_v11 }
 0x23d   : > { %1750 = vperm.xlu0 %5124, %v1705_v31   ;;  %5040 = vmatprep.mubr.msk.bf16.mxu0 %vm7556_vm9, %v1945_v58  ;;  %v1552_v60 = vsel %vm7654_vm4, %v1536_v17, 0.0  ;;  %v1583_v46 = vld [vmem:[#allocation4 + $0x69] sm:$0xff]  ;;  %v1584_v3 = vld [vmem:[#allocation4 + $0x71] sm:$0xff]  ;;  %v1553_v31 = vsel %vm7656_vm5, %v1537_v53, 0.0  ;;  %vm7657_vm4 = vcmp.eq.s32.totalorder %v6024_v20, 1  ;;  %vm2485_vm3 = vmand %vm2453_vm11, %vm2469_vm6  ;;  %vm7660_vm11 = vcmp.eq.s32.totalorder %v5862_v6, 1 }
 0x23e   : > { %v1561_v7 = vpack.c.bf16 %v1552_v60, %v1551_v49  ;;  %v1554_v25 = vsel %vm7657_vm4, %v1538_v29, 0.0  ;;  %v6532_v33 = vld [vmem:[%s7566_s15 + $0x18] sm:$0xff]  ;;  %v6539_v23 = vld [vmem:[%s7566_s15] sm:$0xff]  ;;  %v1599_v24 = vsel %vm7658_vm7, %v1583_v46, 0.0  ;;  %v1600_v17 = vsel %vm7659_vm1, %v1584_v3, 0.0  ;;  %v1585_v9 = vld [vmem:[#allocation4 + $0x79] sm:$0xff] }
 0x23f   : > { %v2436_v58 = vadd.s32 4294967293, %v6539_v23  ;;  %v1562_v34 = vpack.c.bf16 %v1554_v25, %v1553_v31  ;;  %v1586_v60 = vld [vmem:[#allocation4 + $0x81] sm:$0xff]  ;;  %v1609_v29 = vpack.c.bf16 %v1600_v17, %v1599_v24  ;;  %v2501_v49 = vsel %vm2485_vm3, 1, %v7621_v11  ;;  %v6575_v24 = vld [vmem:[%s7566_s15 + $0x20] sm:$0xff] }
 0x240   : > { %1481 = vperm.xlu1 %5125, %v1434_v47   ;;  %v2439_v47 = vadd.s32 4294967293, %v6532_v33  ;;  %vm7661_vm6 = vcmp.eq.s32.totalorder %v5860_v56, 1  ;;  %v6561_v3 = vld [vmem:[%s7566_s15 + $0x10] sm:$0xff]  ;;  %v6568_v31 = vld [vmem:[%s7566_s15 + $0x38] sm:$0xff]  ;;  %v2440_v17 = vadd.s32 4294967293, %v6575_v24  ;;  %v5154_v56 = vld [vmem:[%s7463_s12 + $0x88] sm:$0xff]  }
 0x241   : > { %1877 = vrot.lane.b32.xlu0 %v1608_v44, %s5256_s26  ;;  %v6549_v44 = vld [vmem:[%s7566_s15 + $0x28] sm:$0xff]  ;;  %vm2452_vm4 = vcmp.ge.s32.totalorder %v2436_v58, 0  ;;  %v1602_v46 = vsel %vm7661_vm6, %v1586_v60, 0.0  ;;  %vm2468_vm7 = vcmp.lt.s32.totalorder %v2436_v58, 16  ;;  %v2443_v25 = vadd.s32 4294967293, %v6568_v31 }
 0x242   : > { %vm2455_vm12 = vcmp.ge.s32.totalorder %v2439_v47, 0  ;;  %vm2471_vm5 = vcmp.lt.s32.totalorder %v2439_v47, 16  ;;  %v2441_v53 = vadd.s32 4294967293, %v6549_v44 }
 0x243   : > { %vm2487_vm1 = vmand %vm2455_vm12, %vm2471_vm5  ;;  %vm2459_vm5 = vcmp.ge.s32.totalorder %v2443_v25, 0  ;;  %vm2475_vm10 = vcmp.lt.s32.totalorder %v2443_v25, 16  ;;  %v6599_v25 = vld [vmem:[%s7566_s15 + $0x40] sm:$0xff] }
 0x244   : > { %1815 = vrot.lane.b32.xlu1 %v1561_v7, %s5256_s26  ;;  %v1601_v7 = vsel %vm7660_vm11, %v1585_v9, 0.0  ;;  %vm2457_vm8 = vcmp.ge.s32.totalorder %v2441_v53, 0  ;;  %vm2473_vm3 = vcmp.lt.s32.totalorder %v2441_v53, 16  ;;  %vm2484_vm11 = vmand %vm2452_vm4, %vm2468_vm7  ;;  %v2503_v58 = vsel %vm2487_vm1, 1, %v7621_v11  ;;  %v6583_v9 = vld [vmem:[%s7566_s15 + $0x48] sm:$0xff] }
 0x245   : > { %1478 = vperm.xlu0 %5124, %v1433_v27   ;;  %v2438_v27 = vadd.s32 4294967293, %v6561_v3  ;;  %v1610_v47 = vpack.c.bf16 %v1602_v46, %v1601_v7  ;;  %vm2489_vm12 = vmand %vm2457_vm8, %vm2473_vm3  ;;  %v2445_v60 = vadd.s32 4294967293, %v6583_v9  ;;  %vm2456_vm7 = vcmp.ge.s32.totalorder %v2440_v17, 0 }
 0x246   : > { %v2505_v53 = vsel %vm2489_vm12, 1, %v7621_v11  ;;  %vm2472_vm1 = vcmp.lt.s32.totalorder %v2440_v17, 16  ;;  %vm2491_vm8 = vmand %vm2459_vm5, %vm2475_vm10  ;;  %v2447_v46 = vadd.s32 4294967293, %v6184_v51  ;;  %v2449_v51 = vadd.s32 4294967293, %v6238_v4 }
 0x247   : > { %vm2454_vm6 = vcmp.ge.s32.totalorder %v2438_v27, 0  ;;  %vm2470_vm2 = vcmp.lt.s32.totalorder %v2438_v27, 16  ;;  %vm2461_vm3 = vcmp.ge.s32.totalorder %v2445_v60, 0  ;;  %v2507_v27 = vsel %vm2491_vm8, 1, %v7621_v11 }
 0x248   : > { %1817 = vrot.lane.b32.xlu1 %v1562_v34, %s5256_s26  ;;  %v2500_v34 = vsel %vm2484_vm11, 1, %v7621_v11  ;;  %vm2486_vm4 = vmand %vm2454_vm6, %vm2470_vm2  ;;  %vm2477_vm11 = vcmp.lt.s32.totalorder %v2445_v60, 16  ;;  %vm2463_vm5 = vcmp.ge.s32.totalorder %v2447_v46, 0  ;;  %vm2465_vm14 = vcmp.ge.s32.totalorder %v2449_v51, 0 }
 0x249   : > { %1879 = vrot.lane.b32.xlu0 %v1609_v29, %s5256_s26  ;;  %v6590_v29 = vld [vmem:[%s7566_s15 + $0x30] sm:$0xff]  ;;  %v2502_v7 = vsel %vm2486_vm4, 1, %v7621_v11  ;;  %vm2488_vm2 = vmand %vm2456_vm7, %vm2472_vm1  ;;  %vm2479_vm4 = vcmp.lt.s32.totalorder %v2447_v46, 16  ;;  %v2973_v46 = vadd.s32 4, %v6513_v38 }
 0x24a   : > { %vm2493_vm10 = vmand %vm2461_vm3, %vm2477_vm11  ;;  %vm2481_vm3 = vcmp.lt.s32.totalorder %v2449_v51, 16  ;;  %v2789_v51 = vadd.s32 3, %v6513_v38 }
 0x24b   : > { %v2509_v17 = vsel %vm2493_vm10, 1, %v7621_v11  ;;  %vm2495_vm15 = vmand %vm2463_vm5, %vm2479_vm4 }
 0x24c   : > { %2520 = vperm.xlu1 %5125, %v2501_v49   ;;  %v2442_v49 = vadd.s32 4294967293, %v6590_v29 }
 0x24d   : > { %1881 = vrot.lane.b32.xlu0 %v1610_v47, %s5256_s26  ;;  %v2444_v47 = vadd.s32 4294967293, %v6599_v25 }
 0x24e   : > { %vm2458_vm6 = vcmp.ge.s32.totalorder %v2442_v49, 0  ;;  %vm2474_vm12 = vcmp.lt.s32.totalorder %v2442_v49, 16  ;;  %v2511_v49 = vsel %vm2495_vm15, 1, %v7621_v11 }
 0x24f   : > { %vm2490_vm7 = vmand %vm2458_vm6, %vm2474_vm12  ;;  %vm2460_vm1 = vcmp.ge.s32.totalorder %v2444_v47, 0  ;;  %vm2476_vm8 = vcmp.lt.s32.totalorder %v2444_v47, 16  ;;  %v2450_v47 = vadd.s32 4294967293, %v6420_v45 }
 0x250   : > { %2526 = vperm.xlu1 %5125, %v2503_v58   ;;  %v2504_v58 = vsel %vm2488_vm2, 1, %v7621_v11  ;;  %v2506_v60 = vsel %vm2490_vm7, 1, %v7621_v11  ;;  %vm2492_vm11 = vmand %vm2460_vm1, %vm2476_vm8  ;;  %vm2989_vm8 = vcmp.ge.s32.totalorder %v2973_v46, 0 }
 0x251   : > { %2517 = vperm.xlu0 %5124, %v2500_v34   ;;  %v2446_v34 = vadd.s32 4294967293, %v6178_v36  ;;  %vm2497_vm12 = vmand %vm2465_vm14, %vm2481_vm3  ;;  %v2508_v36 = vsel %vm2492_vm11, 1, %v7621_v11  ;;  %vm3005_vm14 = vcmp.lt.s32.totalorder %v2973_v46, 16  ;;  %vm2466_vm11 = vcmp.ge.s32.totalorder %v2450_v47, 0 }
 0x253   : > { %vm2462_vm2 = vcmp.ge.s32.totalorder %v2446_v34, 0  ;;  %vm2478_vm6 = vcmp.lt.s32.totalorder %v2446_v34, 16  ;;  %v2972_v34 = vadd.s32 4, %v6539_v23 }
 0x254   : > { %2532 = vperm.xlu1 %5125, %v2505_v53   ;;  %v2451_v53 = vadd.s32 4294967293, %v6378_v1  ;;  %vm2494_vm4 = vmand %vm2462_vm2, %vm2478_vm6  ;;  %vm2482_vm2 = vcmp.lt.s32.totalorder %v2450_v47, 16  ;;  %v2977_v47 = vadd.s32 4, %v6549_v44 }
 0x255   : > { %2523 = vperm.xlu0 %5124, %v2502_v7   ;;  %v2448_v7 = vadd.s32 4294967293, %v6291_v18  ;;  %vm3021_vm6 = vmand %vm2989_vm8, %vm3005_vm14 }
 0x256   : > { %vm2467_vm10 = vcmp.ge.s32.totalorder %v2451_v53, 0  ;;  %vm2483_vm5 = vcmp.lt.s32.totalorder %v2451_v53, 16  ;;  %v2975_v53 = vadd.s32 4, %v6532_v33  ;;  %v3037_v38 = vsel %vm3021_vm6, 1, %v7621_v11 }
 0x257   : > { %vm2464_vm7 = vcmp.ge.s32.totalorder %v2448_v7, 0  ;;  %vm2480_vm1 = vcmp.lt.s32.totalorder %v2448_v7, 16  ;;  %vm2499_vm15 = vmand %vm2467_vm10, %vm2483_vm5  ;;  %vm2821_vm10 = vcmp.lt.s32.totalorder %v2789_v51, 16 }
 0x258   : > { %2538 = vperm.xlu1 %5125, %v2507_v27   ;;  %v2513_v27 = vsel %vm2497_vm12, 1, %v7621_v11  ;;  %vm2496_vm3 = vmand %vm2464_vm7, %vm2480_vm1  ;;  %vm2805_vm12 = vcmp.ge.s32.totalorder %v2789_v51, 0  ;;  %vm3004_vm7 = vcmp.lt.s32.totalorder %v2972_v34, 16  ;;  %vm3007_vm8 = vcmp.lt.s32.totalorder %v2975_v53, 16 }
 0x259   : > { %2529 = vperm.xlu0 %5124, %v2504_v58   ;;  %v2510_v58 = vsel %vm2494_vm4, 1, %v7621_v11  ;;  %vm2498_vm5 = vmand %vm2466_vm11, %vm2482_vm2  ;;  %vm2988_vm4 = vcmp.ge.s32.totalorder %v2972_v34, 0  ;;  %v2976_v34 = vadd.s32 4, %v6575_v24 }
 0x25a   : > { %vm2837_vm1 = vmand %vm2805_vm12, %vm2821_vm10  ;;  %v2514_v7 = vsel %vm2498_vm5, 1, %v7621_v11 }
 0x25b   : > { %vm3020_vm14 = vmand %vm2988_vm4, %vm3004_vm7  ;;  %v2853_v46 = vsel %vm2837_vm1, 1, %v7621_v11  ;;  %vm2993_vm1 = vcmp.ge.s32.totalorder %v2977_v47, 0  ;;  %vm3008_vm13 = vcmp.lt.s32.totalorder %v2976_v34, 16 }
 0x25c   : > { %2544 = vperm.xlu1 %5125, %v2509_v17   ;;  %v2515_v17 = vsel %vm2499_vm15, 1, %v7621_v11  ;;  %vm2991_vm15 = vcmp.ge.s32.totalorder %v2975_v53, 0 }
 0x25d   : > { %2535 = vperm.xlu0 %5124, %v2506_v60   ;;  %v2512_v60 = vsel %vm2496_vm3, 1, %v7621_v11  ;;  %vm3023_vm2 = vmand %vm2991_vm15, %vm3007_vm8  ;;  %vm3009_vm15 = vcmp.lt.s32.totalorder %v2977_v47, 16 }
 0x260   : > { %2550 = vperm.xlu1 %5125, %v2511_v49   ;;  %v2788_v49 = vadd.s32 3, %v6539_v23  ;;  %v3036_v23 = vsel %vm3020_vm14, 1, %v7621_v11 }
 0x261   : > { %2541 = vperm.xlu0 %5124, %v2508_v36   ;;  %v2791_v36 = vadd.s32 3, %v6532_v33  ;;  %v3039_v33 = vsel %vm3023_vm2, 1, %v7621_v11 }
 0x262   : > { %vm2804_vm3 = vcmp.ge.s32.totalorder %v2788_v49, 0  ;;  %vm2820_vm11 = vcmp.lt.s32.totalorder %v2788_v49, 16  ;;  %v2792_v49 = vadd.s32 3, %v6575_v24 }
 0x263   : > { %vm2807_vm6 = vcmp.ge.s32.totalorder %v2791_v36, 0  ;;  %vm2823_vm12 = vcmp.lt.s32.totalorder %v2791_v36, 16  ;;  %vm2836_vm10 = vmand %vm2804_vm3, %vm2820_vm11  ;;  %v1339_v36 = vld [vmem:[#allocation4 + $0x6] sm:$0xff] }
 0x264   : > { %2556 = vperm.xlu1 %5125, %v2513_v27   ;;  %v2974_v27 = vadd.s32 4, %v6561_v3  ;;  %vm2839_vm7 = vmand %vm2807_vm6, %vm2823_vm12  ;;  %v2852_v51 = vsel %vm2836_vm10, 1, %v7621_v11  ;;  %vm2992_vm10 = vcmp.ge.s32.totalorder %v2976_v34, 0 }
 0x265   : > { %2547 = vperm.xlu0 %5124, %v2510_v58   ;;  %v2790_v58 = vadd.s32 3, %v6561_v3  ;;  %vm3025_vm11 = vmand %vm2993_vm1, %vm3009_vm15  ;;  %v2979_v3 = vadd.s32 4, %v6568_v31  ;;  %vm7547_vm1 = vcmp.eq.s32.totalorder %v6082_v57, 1 }
 0x266   : > { %vm2990_vm5 = vcmp.ge.s32.totalorder %v2974_v27, 0  ;;  %vm3006_vm4 = vcmp.lt.s32.totalorder %v2974_v27, 16  ;;  %vm3024_vm15 = vmand %vm2992_vm10, %vm3008_vm13 }
 0x267   : > { %vm3022_vm8 = vmand %vm2990_vm5, %vm3006_vm4  ;;  %vm2806_vm14 = vcmp.ge.s32.totalorder %v2790_v58, 0  ;;  %vm2822_vm3 = vcmp.lt.s32.totalorder %v2790_v58, 16  ;;  %vm2995_vm4 = vcmp.ge.s32.totalorder %v2979_v3, 0  ;;  %v2981_v58 = vadd.s32 4, %v6583_v9 }
 0x268   : > { %2562 = vperm.xlu1 %5125, %v2515_v17   ;;  %v2793_v17 = vadd.s32 3, %v6549_v44  ;;  %v3038_v53 = vsel %vm3022_vm8, 1, %v7621_v11  ;;  %vm2838_vm12 = vmand %vm2806_vm14, %vm2822_vm3  ;;  %v3041_v44 = vsel %vm3025_vm11, 1, %v7621_v11  ;;  %vm7548_vm8 = vcmp.eq.s32.totalorder %v6087_v63, 1 }
 0x269   : > { %2553 = vperm.xlu0 %5124, %v2512_v60   ;;  %v2855_v60 = vsel %vm2839_vm7, 1, %v7621_v11  ;;  %vm3011_vm7 = vcmp.lt.s32.totalorder %v2979_v3, 16  ;;  %vm2808_vm3 = vcmp.ge.s32.totalorder %v2792_v49, 0  ;;  %vm2824_vm11 = vcmp.lt.s32.totalorder %v2792_v49, 16  ;;  %v7662_v3 = vld [vmem:[#allocation35_spill] sm:$0xff] }
 0x26a   : > { %vm2809_vm2 = vcmp.ge.s32.totalorder %v2793_v17, 0  ;;  %vm2825_vm6 = vcmp.lt.s32.totalorder %v2793_v17, 16  ;;  %vm3027_vm14 = vmand %vm2995_vm4, %vm3011_vm7  ;;  %v1499_v47 = vsel %vm7548_vm8, %v1339_v36, 0.0  ;;  %vm2997_vm4 = vcmp.ge.s32.totalorder %v2981_v58, 0 }
 0x26b   : > { %vm2841_vm5 = vmand %vm2809_vm2, %vm2825_vm6  ;;  %v3043_v34 = vsel %vm3027_vm14, 1, %v7621_v11  ;;  %vm3013_vm7 = vcmp.lt.s32.totalorder %v2981_v58, 16 }
 0x26c   : > { %3056 = vperm.xlu1 %5125, %v3037_v38   ;;  %v1340_v38 = vld [vmem:[#allocation4 + $0xe] sm:$0xff]  ;;  %v2857_v24 = vsel %vm2841_vm5, 1, %v7621_v11  ;;  %vm2840_vm6 = vmand %vm2808_vm3, %vm2824_vm11 }
 0x26d   : > { %2559 = vperm.xlu0 %5124, %v2514_v7   ;;  %v2854_v7 = vsel %vm2838_vm12, 1, %v7621_v11  ;;  %v1500_v27 = vsel %vm7547_vm1, %v1340_v38, 0.0  ;;  %vm3029_vm11 = vmand %vm2997_vm4, %vm3013_vm7 }
 0x270   : > { %2872 = vperm.xlu1 %5125, %v2853_v46   ;;  %v2795_v46 = vadd.s32 3, %v6568_v31  ;;  %v1515_v31 = vpack.c.bf16 %v1500_v27, %v1499_v47  ;;  %v2980_v27 = vadd.s32 4, %v6599_v25  ;;  %v3045_v47 = vsel %vm3029_vm11, 1, %v7621_v11 }
 0x271   : > { %3053 = vperm.xlu0 %5124, %v3036_v23   ;;  %v2978_v23 = vadd.s32 4, %v6590_v29 }
 0x272   : > { %vm2811_vm13 = vcmp.ge.s32.totalorder %v2795_v46, 0  ;;  %vm2827_vm2 = vcmp.lt.s32.totalorder %v2795_v46, 16 }
 0x273   : > { %vm2994_vm12 = vcmp.ge.s32.totalorder %v2978_v23, 0  ;;  %vm3010_vm10 = vcmp.lt.s32.totalorder %v2978_v23, 16  ;;  %vm2843_vm5 = vmand %vm2811_vm13, %vm2827_vm2 }
 0x274   : > { %3062 = vperm.xlu1 %5125, %v3039_v33   ;;  %v3040_v33 = vsel %vm3024_vm15, 1, %v7621_v11  ;;  %vm3026_vm15 = vmand %vm2994_vm12, %vm3010_vm10  ;;  %v2859_v36 = vsel %vm2843_vm5, 1, %v7621_v11  ;;  %vm2996_vm12 = vcmp.ge.s32.totalorder %v2980_v27, 0  ;;  %vm3012_vm10 = vcmp.lt.s32.totalorder %v2980_v27, 16 }
 0x275   : > { %2869 = vperm.xlu0 %5124, %v2852_v51   ;;  %v3042_v46 = vsel %vm3026_vm15, 1, %v7621_v11  ;;  %vm3028_vm15 = vmand %vm2996_vm12, %vm3012_vm10 }
 0x278   : > { %2878 = vperm.xlu1 %5125, %v2855_v60   ;;  %v2794_v60 = vadd.s32 3, %v6590_v29  ;;  %v2797_v29 = vadd.s32 3, %v6583_v9  ;;  %v2796_v9 = vadd.s32 3, %v6599_v25  ;;  %v5243_v25 = vld [vmem:[%s7566_s15 + $0x50] sm:$0xff] }
 0x279   : > { %3059 = vperm.xlu0 %5124, %v3038_v53   ;;  %v7663_v53 = vld [vmem:[#allocation33_spill] sm:$0xff] }
 0x27a   : > { %vm2810_vm14 = vcmp.ge.s32.totalorder %v2794_v60, 0  ;;  %vm2826_vm3 = vcmp.lt.s32.totalorder %v2794_v60, 16  ;;  %vm2813_vm13 = vcmp.ge.s32.totalorder %v2797_v29, 0  ;;  %vm2829_vm2 = vcmp.lt.s32.totalorder %v2797_v29, 16  ;;  %v7665_v60 = vld [vmem:[#allocation36_spill] sm:$0xff] }
 0x27b   : > { %vm2845_vm5 = vmand %vm2813_vm13, %vm2829_vm2  ;;  %vm2812_vm1 = vcmp.ge.s32.totalorder %v2796_v9, 0  ;;  %vm2828_vm8 = vcmp.lt.s32.totalorder %v2796_v9, 16 }
 0x27c   : > { %3068 = vperm.xlu1 %5125, %v3041_v44   ;;  %v7664_v44 = vpack.c.bf16 %v7662_v3, %v7663_v53  ;;  %v2861_v58 = vsel %vm2845_vm5, 1, %v7621_v11  ;;  %v7666_v3 = vld [vmem:[#allocation37_spill] sm:$0xff]  ;;  %v3044_v53 = vsel %vm3028_vm15, 1, %v7621_v11  ;;  %vm6677_vm13 = vmand %vm2812_vm1, %vm2828_vm8 }
 0x27d   : > { %2875 = vperm.xlu0 %5124, %v2854_v7   ;;  %v2856_v7 = vsel %vm2840_vm6, 1, %v7621_v11  ;;  %vm2842_vm6 = vmand %vm2810_vm14, %vm2826_vm3  ;;  %vm7550_vm14 = vcmp.eq.s32.totalorder %v7665_v60, 1  ;;  %vm7552_vm3 = vcmp.eq.s32.totalorder %v7666_v3, 1  ;;  %v2860_v9 = vsel %vm6677_vm13, 1, %v7621_v11 }
 0x27e   : > { %v1868_v51 = vpop.permute.xlu0 %1867 }
 0x27f   : > { %v1804_v17 = vpop.permute.xlu1 %1803  ;;  %v1885_v38 = vsel %vm7556_vm9, %v7664_v44, %v1868_v51  ;;  %v1341_v51 = vld [vmem:[#allocation4 + $0x16] sm:$0xff] }
 0x280   : > { %2884 = vperm.xlu1 %5125, %v2857_v24   ;;  %v1821_v49 = vsel %vm7556_vm9, %v1515_v31, %v1804_v17  ;;  %2178 = vmatprep.mubr.bf16.mxu1 %v1885_v38  ;;  %v5242_v24 = vld [vmem:[%s7566_s15 + $0x58] sm:$0xff]  ;;  %v1342_v17 = vld [vmem:[#allocation4 + $0x1e] sm:$0xff]  ;;  %v2985_v38 = vadd.s32 4, %v6238_v4 }
 0x281   : > { %3065 = vperm.xlu0 %5124, %v3040_v33   ;;  %2179 = vmatmul.mubr.bf16.vlgmr.msra.gmra.mrb[0].mxu1 %v1821_v49  ;;  %v2983_v23 = vadd.s32 4, %v5242_v24  ;;  %v2858_v33 = vsel %vm2842_vm6, 1, %v7621_v11  ;;  %v2799_v31 = vadd.s32 3, %v5242_v24  ;;  %v1501_v49 = vsel %vm7552_vm3, %v1341_v51, 0.0  ;;  %v1621_v24 = vld [vmem:[#allocation4 + $0x5a] sm:$0xff] }
 0x282   : > { %v7669_v51 = vmov 0  ;;  %vm3017_vm15 = vcmp.lt.s32.totalorder %v2985_v38, 16 }
 0x283   : > { %vm2999_vm4 = vcmp.ge.s32.totalorder %v2983_v23, 0  ;;  %vm3015_vm7 = vcmp.lt.s32.totalorder %v2983_v23, 16  ;;  %vm2815_vm2 = vcmp.ge.s32.totalorder %v2799_v31, 0  ;;  %vm2831_vm6 = vcmp.lt.s32.totalorder %v2799_v31, 16  ;;  %v1622_v23 = vld [vmem:[#allocation4 + $0x62] sm:$0xff] }
 0x284   : > { %3074 = vperm.xlu1 %5125, %v3043_v34   ;;  %v2982_v34 = vadd.s32 4, %v5243_v25  ;;  %vm3031_vm11 = vmand %vm2999_vm4, %vm3015_vm7  ;;  %vm3001_vm7 = vcmp.ge.s32.totalorder %v2985_v38, 0 }
 0x285   : > { %2881 = vperm.xlu0 %5124, %v2856_v7   ;;  %v1502_v7 = vsel %vm7550_vm14, %v1342_v17, 0.0  ;;  %v3047_v27 = vsel %vm3031_vm11, 1, %v7621_v11  ;;  %vm2847_vm5 = vmand %vm2815_vm2, %vm2831_vm6 }
 0x286   : > { %vm2998_vm12 = vcmp.ge.s32.totalorder %v2982_v34, 0  ;;  %vm3014_vm1 = vcmp.lt.s32.totalorder %v2982_v34, 16  ;;  %v2863_v31 = vsel %vm2847_vm5, 1, %v7621_v11 }
 0x287   : > { %vm3030_vm11 = vmand %vm2998_vm12, %vm3014_vm1 }
 0x288   : > { %2890 = vperm.xlu1 %5125, %v2859_v36   ;;  %vm3033_vm12 = vmand %vm3001_vm7, %vm3017_vm15 }
 0x289   : > { %3071 = vperm.xlu0 %5124, %v3042_v46   ;;  %v2798_v46 = vadd.s32 3, %v5243_v25  ;;  %v1516_v25 = vpack.c.bf16 %v1502_v7, %v1501_v49  ;;  %v7673_v49 = vld [vmem:[#allocation34_spill] sm:$0xff]  ;;  %v7674_v7 = vld [vmem:[#allocation31_spill] sm:$0xff] }
 0x28b   : > { %vm2814_vm13 = vcmp.ge.s32.totalorder %v2798_v46, 0  ;;  %vm2830_vm2 = vcmp.lt.s32.totalorder %v2798_v46, 16  ;;  %v2803_v46 = vadd.s32 3, %v6378_v1 }
 0x28c   : > { %3080 = vperm.xlu1 %5125, %v3045_v47   ;;  %v2801_v47 = vadd.s32 3, %v6238_v4  ;;  %v2984_v4 = vadd.s32 4, %v6291_v18  ;;  %vm2846_vm5 = vmand %vm2814_vm13, %vm2830_vm2 }
 0x28d   : > { %2887 = vperm.xlu0 %5124, %v2858_v33  }
 0x28e   : > { %vm2817_vm1 = vcmp.ge.s32.totalorder %v2801_v47, 0  ;;  %vm3000_vm7 = vcmp.ge.s32.totalorder %v2984_v4, 0  ;;  %vm3016_vm15 = vcmp.lt.s32.totalorder %v2984_v4, 16 }
 0x28f   : > { %v1739_v29 = vpop.permute.xlu0 %1738  ;;  %vm3032_vm13 = vmand %vm3000_vm7, %vm3016_vm15 }
 0x290   : > { %2896 = vperm.xlu1 %5125, %v2861_v58   ;;  %v1742_v36 = vpop.permute.xlu1 %1741  ;;  %vm1765_vm8 = vcmp.eq.s32.totalorder %v1739_v29, 1  ;;  %v1344_v29 = vld [vmem:[#allocation4 + $0x2e] sm:$0xff] }
 0x291   : > { %vm1766_vm10 = vcmp.eq.s32.totalorder %v1742_v36, 1  ;;  %3077 = vperm.xlu0 %5124, %v3044_v53   ;;  %v1781_v33 = vsel %vm1765_vm8, %v1621_v24, 0.0  ;;  %v7672_v36 = vld [vmem:[#allocation38_spill] sm:$0xff] }
 0x292   : > { %v1782_v58 = vsel %vm1766_vm10, %v1622_v23, 0.0  ;;  %vm6693_vm4 = vmpackc.low %vm1766_vm10, %vm1765_vm8  ;;  %vm7549_vm6 = vcmp.eq.s32.totalorder %v7672_v36, 1  ;;  %v3046_v23 = vsel %vm3030_vm11, 1, %v7621_v11  ;;  %vm2833_vm8 = vcmp.lt.s32.totalorder %v2801_v47, 16 }
 0x293   : > { %v7670_v51 = vsel %vm6693_vm4, 4294967295, %v7669_v51  ;;  %v1792_v17 = vpack.c.bf16 %v1782_v58, %v1781_v33  ;;  %v1870_v44 = vpop.permute.xlu0 %1869  ;;  %v1343_v33 = vld [vmem:[#allocation4 + $0x26] sm:$0xff]  ;;  %v2987_v58 = vadd.s32 4, %v6378_v1  ;;  %vm2849_vm11 = vmand %vm2817_vm1, %vm2833_vm8  ;;  %v3048_v1 = vsel %vm3032_vm13, 1, %v7621_v11 }
 0x294   : > { %7671 = vst [vmem:[#allocation35_spill] sm:$0xff] %v7670_v51  ;;  %3086 = vperm.xlu1 %5125, %v3047_v27   ;;  %v1806_v53 = vpop.permute.xlu1 %1805  ;;  %v7675_v27 = vpack.c.bf16 %v7673_v49, %v7674_v7  ;;  %v2865_v4 = vsel %vm2849_vm11, 1, %v7621_v11  ;;  %vm2819_vm8 = vcmp.ge.s32.totalorder %v2803_v46, 0  ;;  %v5206_v51 = vld [vmem:[%s7463_s12 + $0x1f0] sm:$0xff]  }
 0x295   : > { %1928 = vst.msk [vmem:[#allocation5 + $0x88] sm:$0xff] %vm7556_vm9, %v1792_v17  ;;  %v1825_v24 = vsel %vm7556_vm9, %v1516_v25, %v1806_v53  ;;  %2893 = vperm.xlu0 %5124, %v2860_v9   ;;  %v7676_v17 = vld [vmem:[#allocation39_spill] sm:$0xff]  ;;  %v1504_v25 = vsel %vm7549_vm6, %v1344_v29, 0.0  ;;  %v3049_v9 = vsel %vm3033_vm12, 1, %v7621_v11  ;;  %v2800_v53 = vadd.s32 3, %v6291_v18 }
 0x296   : > { %v1889_v34 = vsel %vm7556_vm9, %v7675_v27, %v1870_v44  ;;  %vm7551_vm10 = vcmp.eq.s32.totalorder %v7676_v17, 1  ;;  %vm3003_vm6 = vcmp.ge.s32.totalorder %v2987_v58, 0  ;;  %vm3019_vm14 = vcmp.lt.s32.totalorder %v2987_v58, 16 }
 0x297   : > { %2186 = vmatprep.mubr.bf16.mxu1 %v1889_v34  ;;  %v1503_v44 = vsel %vm7551_vm10, %v1343_v33, 0.0  ;;  %vm2816_vm2 = vcmp.ge.s32.totalorder %v2800_v53, 0  ;;  %vm2832_vm12 = vcmp.lt.s32.totalorder %v2800_v53, 16  ;;  %v2986_v18 = vadd.s32 4, %v6420_v45  ;;  %vm3035_vm1 = vmand %vm3003_vm6, %vm3019_vm14  ;;  %v1346_v33 = vld [vmem:[#allocation4 + $0x3e] sm:$0xff] }
 0x298   : > { %2902 = vperm.xlu1 %5125, %v2863_v31   ;;  %2187 = vmatmul.mubr.bf16.gmra.mrb[4].mxu1 %v1825_v24  ;;  %v6717_v38 = vpop.permute.xlu1 %1469  ;;  %v2862_v31 = vsel %vm2846_vm5, 1, %v7621_v11  ;;  %v1517_v29 = vpack.c.bf16 %v1504_v25, %v1503_v44  ;;  %vm2835_vm5 = vcmp.lt.s32.totalorder %v2803_v46, 16  ;;  %vm2848_vm7 = vmand %vm2816_vm2, %vm2832_vm12  ;;  %v3051_v7 = vsel %vm3035_vm1, 1, %v7621_v11  ;;  %v7678_v53 = vld [vmem:[#allocation48_spill] sm:$0xff] }
 0x299   : > { %3083 = vperm.xlu0 %5124, %v3046_v23   ;;  %vm3002_vm15 = vcmp.ge.s32.totalorder %v2986_v18, 0  ;;  %vm3018_vm11 = vcmp.lt.s32.totalorder %v2986_v18, 16  ;;  %v2802_v27 = vadd.s32 3, %v6420_v45  ;;  %vm2851_vm10 = vmand %vm2819_vm8, %vm2835_vm5  ;;  %v2864_v34 = vsel %vm2848_vm7, 1, %v7621_v11  ;;  %v1345_v23 = vld [vmem:[#allocation4 + $0x36] sm:$0xff] }
 0x29a   : > { %vm3034_vm3 = vmand %vm3002_vm15, %vm3018_vm11  ;;  %v2867_v25 = vsel %vm2851_vm10, 1, %v7621_v11  ;;  %vm1489_vm2 = vcmp.eq.s32.totalorder %v7678_v53, 1  ;;  %vm1494_vm12 = vcmp.eq.s32.totalorder %v6717_v38, 1  ;;  %vm7558_vm11 = vcmp.eq.s32.totalorder %v6319_v16, 1  ;;  %v1625_v38 = vld [vmem:[#allocation4 + $0x7a] sm:$0xff] }
 0x29b   : > { %vm2818_vm14 = vcmp.ge.s32.totalorder %v2802_v27, 0  ;;  %vm2834_vm6 = vcmp.lt.s32.totalorder %v2802_v27, 16  ;;  %v1505_v46 = vsel %vm1489_vm2, %v1345_v23, 0.0  ;;  %v1348_v23 = vld [vmem:[#allocation4 + $0x4e] sm:$0xff] }
 0x29c   : > { %3092 = vperm.xlu1 %5125, %v3049_v9   ;;  %v1808_v24 = vpop.permute.xlu1 %1807  ;;  %v1948_v49 = vld [vmem:[#allocation5 + $0x88] sm:$0xff]  ;;  %vm2850_vm10 = vmand %vm2818_vm14, %vm2834_vm6 }
 0x29d   : > { %v1829_v47 = vsel %vm7556_vm9, %v1517_v29, %v1808_v24  ;;  %5041 = vmatmul.mubr.msk.bf16.gmra.mrb[24].mxu0 %vm7556_vm9, %v1948_v49  ;;  %2899 = vperm.xlu0 %5124, %v2862_v31   ;;  %v7677_v9 = vld [vmem:[#allocation47_spill] sm:$0xff]  ;;  %v3050_v31 = vsel %vm3034_vm3, 1, %v7621_v11  ;;  %v7681_v49 = vld [vmem:[#allocation46_spill] sm:$0xff]  ;;  %vm7557_vm3 = vcmp.eq.s32.totalorder %v6317_v37, 1 }
 0x29e   : > { %vm1490_vm13 = vcmp.eq.s32.totalorder %v7677_v9, 1 }
 0x29f   : > { %v1506_v29 = vsel %vm1490_vm13, %v1346_v33, 0.0  ;;  %v1347_v33 = vld [vmem:[#allocation4 + $0x46] sm:$0xff] }
 0x2a0   : > { %2908 = vperm.xlu1 %5125, %v2865_v4   ;;  %v7682_v4 = vld [vmem:[#allocation43_spill] sm:$0xff] }
 0x2a1   : > { %3089 = vperm.xlu0 %5124, %v3048_v1   ;;  %v7683_v18 = vpack.c.bf16 %v7681_v49, %v7682_v4  ;;  %v5152_v49 = vld [vmem:[%s7463_s12 + $0xc8] sm:$0xff]  }
 0x2a4   : > { %3098 = vperm.xlu1 %5125, %v3051_v7   ;;  %v6735_v58 = vpop.permute.xlu0 %1466  ;;  %v1518_v7 = vpack.c.bf16 %v1506_v29, %v1505_v46  ;;  %v5149_v46 = vld [vmem:[%s7463_s12 + $0x40] sm:$0xff]  }
 0x2a5   : > { %vm1493_vm1 = vcmp.eq.s32.totalorder %v6735_v58, 1  ;;  %2905 = vperm.xlu0 %5124, %v2864_v34   ;;  %v2866_v34 = vsel %vm2850_vm10, 1, %v7621_v11  ;;  %v5150_v29 = vld [vmem:[%s7463_s12 + $0x80] sm:$0xff]   ;;  %4731 = vmatprep.subr.bf16.mxu0 %v5149_v46 }
 0x2a6   : > { %vm6746_vm8 = vmpackc.low %vm1494_vm12, %vm1493_vm1  ;;  %v1349_v46 = vld [vmem:[#allocation4 + $0x56] sm:$0xff] }
 0x2a7   : > { %v6750_v44 = vpop.permute.xlu1 %1475 }
 0x2a8   : > { %2914 = vperm.xlu1 %5125, %v2867_v25   ;;  %v1872_v24 = vpop.permute.xlu0 %1871  ;;  %vm1496_vm5 = vcmp.eq.s32.totalorder %v6750_v44, 1 }
 0x2a9   : > { %v1893_v1 = vsel %vm7556_vm9, %v7683_v18, %v1872_v24  ;;  %3095 = vperm.xlu0 %5124, %v3050_v31   ;;  %v1508_v31 = vsel %vm7557_vm3, %v1348_v23, 0.0  ;;  %v5151_v24 = vld [vmem:[%s7463_s12] sm:$0xff]   ;;  %v1507_v18 = vsel %vm7558_vm11, %v1347_v33, 0.0 }
 0x2aa   : > { %2194 = vmatprep.mubr.bf16.mxu1 %v1893_v1  ;;  %v5153_v1 = vld [vmem:[%s7463_s12 + $0x48] sm:$0xff]   ;;  %v1519_v54 = vpack.c.bf16 %v1508_v31, %v1507_v18  ;;  %4732 = vmatpush3.bf16.msra.mxu0 %v5151_v24  ;;  %v1509_v31 = vsel %vm1493_vm1, %v1349_v46, 0.0  ;;  %v1626_v46 = vld [vmem:[#allocation4 + $0x82] sm:$0xff] }
 0x2ab   : > { %v1810_v27 = vpop.permute.xlu1 %1809  ;;  %2195 = vmatmul.mubr.bf16.gmra.mrb[8].mxu1 %v1829_v47  ;;  %v5148_v47 = vld [vmem:[%s7463_s12 + $0xc0] sm:$0xff]   ;;  %4733 = vmatprep.subr.bf16.mxu0 %v5153_v1 }
 0x2ac   : > { %v1833_v52 = vsel %vm7556_vm9, %v1518_v7, %v1810_v27  ;;  %v1473_v12 = vpop.permute.xlu0 %1472  ;;  %4795 = vmatprep.subr.bf16.mxu1 %v5148_v47  ;;  %v7686_v7 = vld [vmem:[#allocation45_spill] sm:$0xff]  ;;  %v7687_v27 = vld [vmem:[#allocation42_spill] sm:$0xff] }
 0x2ad   : > { %vm1495_vm7 = vcmp.eq.s32.totalorder %v1473_v12, 1  ;;  %2911 = vperm.xlu0 %5124, %v2866_v34   ;;  %v7688_v34 = vpack.c.bf16 %v7686_v7, %v7687_v27  ;;  %4796 = vmatpush3.bf16.msra.mxu1 %v5150_v29  ;;  %v1624_v7 = vld [vmem:[#allocation4 + $0x72] sm:$0xff]  ;;  %v1623_v27 = vld [vmem:[#allocation4 + $0x6a] sm:$0xff]  ;;  %v7696_v12 = vpack.c.bf16 %v6346_v43, %v6330_v22 }
 0x2ae   : > { %vm6768_vm15 = vmpackc.low %vm1496_vm5, %vm1495_vm7  ;;  %4797 = vmatprep.subr.bf16.mxu1 %v5152_v49  ;;  %v1350_v49 = vld [vmem:[#allocation4 + $0x5e] sm:$0xff] }
 0x2af   : > { %v1748_v11 = vpop.permute.xlu1 %1747 }
 0x2b0   : > { %v1874_v4 = vpop.permute.xlu0 %1873  ;;  %vm1768_vm14 = vcmp.eq.s32.totalorder %v1748_v11, 1 }
 0x2b1   : > { %v1897_v23 = vsel %vm7556_vm9, %v7688_v34, %v1874_v4  ;;  %4798 = vmatpush3.bf16.msra.mxu1 %v5154_v56  ;;  %v1784_v29 = vsel %vm1768_vm14, %v1624_v7, 0.0  ;;  %v7689_v4 = vmov 0  ;;  %v7692_v56 = vpack.c.bf16 %v6354_v14, %v6336_v48  ;;  %v1352_v14 = vld [vmem:[#allocation4 + $0x6e] sm:$0xff] }
 0x2b2   : > { %2202 = vmatprep.mubr.bf16.mxu1 %v1897_v23 }
 0x2b3   : > { %v1812_v6 = vpop.permute.xlu1 %1811  ;;  %2203 = vmatmul.mubr.bf16.gmra.mrb[12].mxu1 %v1833_v52 }
 0x2b4   : > { %v1837_v33 = vsel %vm7556_vm9, %v1519_v54, %v1812_v6  ;;  %v1745_v47 = vpop.permute.xlu0 %1744  ;;  %v1510_v54 = vsel %vm1494_vm12, %v1350_v49, 0.0 }
 0x2b5   : > { %vm1767_vm6 = vcmp.eq.s32.totalorder %v1745_v47, 1  ;;  %v1520_v18 = vpack.c.bf16 %v1510_v54, %v1509_v31  ;;  %v1351_v47 = vld [vmem:[#allocation4 + $0x66] sm:$0xff] }
 0x2b6   : > { %v1783_v24 = vsel %vm1767_vm6, %v1623_v27, 0.0  ;;  %vm6805_vm10 = vmpackc.low %vm1768_vm14, %vm1767_vm6  ;;  %v1511_v7 = vsel %vm1495_vm7, %v1351_v47, 0.0 }
 0x2b7   : > { %v7690_v4 = vsel %vm6805_vm10, 4294967295, %v7689_v4  ;;  %v1754_v11 = vpop.permute.xlu1 %1753  ;;  %v1793_v6 = vpack.c.bf16 %v1784_v29, %v1783_v24  ;;  %v7693_v29 = vmov 0 }
 0x2b8   : > { %7691 = vst [vmem:[#allocation33_spill] sm:$0xff] %v7690_v4  ;;  %v1876_v52 = vpop.permute.xlu0 %1875  ;;  %vm1770_vm1 = vcmp.eq.s32.totalorder %v1754_v11, 1  ;;  %v1512_v11 = vsel %vm1496_vm5, %v1352_v14, 0.0 }
 0x2b9   : > { %1929 = vst.msk [vmem:[#allocation5 + $0xa0] sm:$0xff] %vm7556_vm9, %v1793_v6  ;;  %v1901_v58 = vsel %vm7556_vm9, %v7692_v56, %v1876_v52  ;;  %v1786_v27 = vsel %vm1770_vm1, %v1626_v46, 0.0  ;;  %v1521_v6 = vpack.c.bf16 %v1512_v11, %v1511_v7  ;;  %v1354_v56 = vld [vmem:[#allocation4 + $0x7e] sm:$0xff]  ;;  %v5160_v11 = vld [vmem:[%s7463_s12 + $0xd8] sm:$0xff]  }
 0x2ba   : > { %2210 = vmatprep.mubr.bf16.mxu1 %v1901_v58  ;;  %v1353_v58 = vld [vmem:[#allocation4 + $0x76] sm:$0xff] }
 0x2bb   : > { %v1814_v1 = vpop.permute.xlu1 %1813  ;;  %2211 = vmatmul.mubr.bf16.gmra.mrb[16].mxu1 %v1837_v33 }
 0x2bc   : > { %v1841_v34 = vsel %vm7556_vm9, %v1520_v18, %v1814_v1  ;;  %v1751_v23 = vpop.permute.xlu0 %1750 }
 0x2bd   : > { %vm1769_vm12 = vcmp.eq.s32.totalorder %v1751_v23, 1 }
 0x2be   : > { %v1785_v31 = vsel %vm1769_vm12, %v1625_v38, 0.0  ;;  %vm6818_vm14 = vmpackc.low %vm1770_vm1, %vm1769_vm12 }
 0x2bf   : > { %v7694_v29 = vsel %vm6818_vm14, 4294967295, %v7693_v29  ;;  %v1482_v48 = vpop.permute.xlu1 %1481  ;;  %v1794_v24 = vpack.c.bf16 %v1786_v27, %v1785_v31  ;;  %v7699_v27 = vpack.c.bf16 %v6477_v0, %v6457_v15  ;;  %v5156_v15 = vld [vmem:[%s7463_s12 + $0xd0] sm:$0xff]  }
 0x2c0   : > { %7695 = vst [vmem:[#allocation36_spill] sm:$0xff] %v7694_v29  ;;  %v1878_v33 = vpop.permute.xlu0 %1877  ;;  %v1951_v49 = vld [vmem:[#allocation5 + $0xa0] sm:$0xff]  ;;  %vm1498_vm7 = vcmp.eq.s32.totalorder %v1482_v48, 1  ;;  %v7700_v48 = vpack.c.bf16 %v6467_v8, %v6449_v26  ;;  %4799 = vmatprep.subr.bf16.mxu1 %v5156_v15  ;;  %v5157_v0 = vld [vmem:[%s7463_s12 + $0x50] sm:$0xff]  }
 0x2c1   : > { %1930 = vst.msk [vmem:[#allocation5 + $0xb8] sm:$0xff] %vm7556_vm9, %v1794_v24  ;;  %v1905_v54 = vsel %vm7556_vm9, %v7696_v12, %v1878_v33  ;;  %5044 = vmatprep.mubr.msk.bf16.mxu0 %vm7556_vm9, %v1951_v49  ;;  %v1514_v1 = vsel %vm1498_vm7, %v1354_v56, 0.0  ;;  %v5155_v24 = vld [vmem:[%s7463_s12 + $0x8] sm:$0xff]   ;;  %v5158_v26 = vld [vmem:[%s7463_s12 + $0x90] sm:$0xff]   ;;  %v5161_v33 = vld [vmem:[%s7463_s12 + $0x58] sm:$0xff]  }
 0x2c2   : > { %2218 = vmatprep.mubr.bf16.mxu1 %v1905_v54  ;;  %4734 = vmatpush3.bf16.msra.mxu0 %v5155_v24  ;;  %v5159_v8 = vld [vmem:[%s7463_s12 + $0x10] sm:$0xff]   ;;  %v5162_v49 = vld [vmem:[%s7463_s12 + $0x98] sm:$0xff]   ;;  %v5164_v12 = vld [vmem:[%s7463_s12 + $0xe0] sm:$0xff]  }
 0x2c3   : > { %v1816_v52 = vpop.permute.xlu1 %1815  ;;  %2219 = vmatmul.mubr.bf16.gmra.mrb[20].mxu1 %v1841_v34  ;;  %4735 = vmatprep.subr.bf16.mxu0 %v5157_v0  ;;  %v5165_v54 = vld [vmem:[%s7463_s12 + $0x60] sm:$0xff]   ;;  %v5169_v56 = vld [vmem:[%s7463_s12 + $0x68] sm:$0xff]  }
 0x2c4   : > { %v1845_v18 = vsel %vm7556_vm9, %v1521_v6, %v1816_v52  ;;  %v1479_v44 = vpop.permute.xlu0 %1478  ;;  %4800 = vmatpush3.bf16.msra.mxu1 %v5158_v26  ;;  %v5163_v6 = vld [vmem:[%s7463_s12 + $0x18] sm:$0xff]   ;;  %v5166_v52 = vld [vmem:[%s7463_s12 + $0xa0] sm:$0xff]  }
 0x2c5   : > { %vm1497_vm5 = vcmp.eq.s32.totalorder %v1479_v44, 1  ;;  %4801 = vmatprep.subr.bf16.mxu1 %v5160_v11  ;;  %v5168_v44 = vld [vmem:[%s7463_s12 + $0xe8] sm:$0xff]   ;;  %v5180_v11 = vld [vmem:[%s7463_s12 + $0x140] sm:$0xff]  }
 0x2c6   : > { %v1513_v23 = vsel %vm1497_vm5, %v1353_v58, 0.0  ;;  %vm6831_vm6 = vmpackc.low %vm1498_vm7, %vm1497_vm5  ;;  %4736 = vmatpush3.bf16.msra.mxu0 %v5159_v8  ;;  %v5170_v58 = vld [vmem:[%s7463_s12 + $0xa8] sm:$0xff]   ;;  %v5181_v29 = vld [vmem:[%s7463_s12 + $0x100] sm:$0xff]   ;;  %vm7704_vm5 = vcmp.eq.s32.totalorder %v6087_v63, 1 }
 0x2c7   : > { %v1522_v22 = vpack.c.bf16 %v1514_v1, %v1513_v23  ;;  %v1818_v43 = vpop.permute.xlu1 %1817  ;;  %4737 = vmatprep.subr.bf16.mxu0 %v5161_v33  ;;  %v5171_v1 = vld [vmem:[%s7463_s12 + $0x28] sm:$0xff]   ;;  %v5172_v23 = vld [vmem:[%s7463_s12 + $0xf0] sm:$0xff]   ;;  %v5182_v33 = vld [vmem:[%s7463_s12 + $0x1c0] sm:$0xff]  }
 0x2c8   : > { %v1880_v46 = vpop.permute.xlu0 %1879  ;;  %v1954_v38 = vld [vmem:[#allocation5 + $0xb8] sm:$0xff]  ;;  %4802 = vmatpush3.bf16.msra.mxu1 %v5162_v49 }
 0x2c9   : > { %v1849_v7 = vsel %vm7556_vm9, %v1522_v22, %v1818_v43  ;;  %v1909_v34 = vsel %vm7556_vm9, %v7699_v27, %v1880_v46  ;;  %5045 = vmatmul.mubr.msk.bf16.gmra.mrb[28].mxu0 %vm7556_vm9, %v1954_v38  ;;  %4803 = vmatprep.subr.bf16.mxu1 %v5164_v12  ;;  %v5173_v22 = vld [vmem:[%s7463_s12 + $0x70] sm:$0xff]   ;;  %v5176_v38 = vld [vmem:[%s7463_s12 + $0xf8] sm:$0xff]  }
 0x2ca   : > { %2226 = vmatprep.mubr.bf16.mxu1 %v1909_v34  ;;  %4738 = vmatpush3.bf16.msra.mxu0 %v5163_v6  ;;  %v5174_v43 = vld [vmem:[%s7463_s12 + $0xb0] sm:$0xff]   ;;  %v5178_v27 = vld [vmem:[%s7463_s12 + $0xb8] sm:$0xff]   ;;  %v6941_v6 = vld [vmem:[%s7460_s9] ss:$0 sm:$0xff] }
 0x2cb   : > { %2227 = vmatmul.mubr.bf16.gmra.mrb[24].mxu1 %v1845_v18  ;;  %v5167_v18 = vld [vmem:[%s7463_s12 + $0x20] sm:$0xff]   ;;  %4739 = vmatprep.subr.bf16.mxu0 %v5165_v54  ;;  %v5175_v46 = vld [vmem:[%s7463_s12 + $0x30] sm:$0xff]   ;;  %v5179_v34 = vld [vmem:[%s7463_s12 + $0x38] sm:$0xff]  }
 0x2cc   : > { %v1882_v31 = vpop.permute.xlu0 %1881  ;;  %4804 = vmatpush3.bf16.msra.mxu1 %v5166_v52 }
 0x2cd   : > { %v1913_v14 = vsel %vm7556_vm9, %v7700_v48, %v1882_v31  ;;  %4805 = vmatprep.subr.bf16.mxu1 %v5168_v44  ;;  %vm7705_vm9 = vcmp.eq.s32.totalorder %v6082_v57, 1  ;;  %v5187_v57 = vld [vmem:[%s7463_s12 + $0x188] sm:$0xff]  }
 0x2ce   : > { %2234 = vmatprep.mubr.bf16.mxu1 %v1913_v14  ;;  %4740 = vmatpush3.bf16.msra.mxu0 %v5167_v18  ;;  %vm4477_vm3 = vmpackc.low %vm7705_vm9, %vm7704_vm5 }
 0x2cf   : > { %4741 = vmatprep.subr.bf16.mxu0 %v5169_v56 }
 0x2d0   : > { %4806 = vmatpush3.bf16.msra.mxu1 %v5170_v58 }
 0x2d1   : > { %4807 = vmatprep.subr.bf16.mxu1 %v5172_v23  ;;  %v6948_v23 = vld [vmem:[%s7461_s10] ss:$0 sm:$0xff] }
 0x2d2   : > { %4742 = vmatpush3.bf16.msra.mxu0 %v5171_v1 }
 0x2d3   : > { %2235 = vmatmul.mubr.bf16.gmra.mrb[28].mxu1 %v1849_v7  ;;  %4743 = vmatprep.subr.bf16.mxu0 %v5173_v22  ;;  %v5177_v7 = vld [vmem:[%s7463_s12 + $0x78] sm:$0xff]  }
 0x2d4   : > { %4808 = vmatpush3.bf16.msra.mxu1 %v5174_v43 }
 0x2d5   : > { %4809 = vmatprep.subr.bf16.mxu1 %v5176_v38 }
 0x2d6   : > { %4744 = vmatpush3.bf16.msra.mxu0 %v5175_v46  ;;  %v6953_v46 = vld [vmem:[%s7462_s11] ss:$0 sm:$0xff] }
 0x2d7   : > { %4745 = vmatprep.subr.bf16.mxu0 %v5177_v7 }
 0x2d8   : > { %4810 = vmatpush3.bf16.msra.mxu1 %v5178_v27 }
 0x2d9   : > { %4923 = vmatprep.subr.bf16.mxu1 %v5182_v33  ;;  %v2518_v33 = vpop.permute.xlu0 %2517 }
 0x2da   : > { %4746 = vmatpush3.bf16.msra.mxu0 %v5179_v34  ;;  %vm2564_vm1 = vcmp.eq.s32.totalorder %v2518_v33, 1  ;;  %v5185_v33 = vld [vmem:[%s7463_s12 + $0x108] sm:$0xff]  }
 0x2db   : > { %4859 = vmatprep.subr.bf16.mxu0 %v5180_v11 }
 0x2fc   : > { %v6920_v31 = vpop.f32.mrb[16].mxu0 }
 0x2fd   : > { %v2277_v48 = vpop.f32.mrb[17].mxu0 }
 0x2fe   : > { %v6922_v14 = vpop.f32.mrb[18].mxu0 }
 0x2ff   : > { %v2280_v24 = vpop.f32.mrb[19].mxu0 }
 0x30b   : > { %v6924_v15 = vpop.f32.mrb[20].mxu0 }
 0x30c   : > { %v6926_v0 = vpop.f32.mrb[21].mxu0 }
 0x30d   : > { %v6928_v26 = vpop.f32.mrb[22].mxu0 }
 0x30e   : > { %v6930_v8 = vpop.f32.mrb[23].mxu0 }
 0x354   : > { %v4671_v49 = vpop.f32.mrb[0].mxu1 }
 0x355   : > { %v4672_v12 = vpop.f32.mrb[1].mxu1 }
 0x356   : > { %v4673_v54 = vadd.f32 %v4672_v12, %v4671_v49  ;;  %v4674_v52 = vpop.f32.mrb[2].mxu1  ;;  %v5183_v49 = vld [vmem:[%s7463_s12 + $0x180] sm:$0xff]   ;;  %v2521_v12 = vpop.permute.xlu1 %2520 }
 0x357   : > { %v4675_v18 = vpop.f32.mrb[3].mxu1  ;;  %vm2565_vm11 = vcmp.eq.s32.totalorder %v2521_v12, 1 }
 0x358   : > { %v2181_v44 = vadd.f32 %v4673_v54, %v6941_v6  ;;  %v4676_v56 = vadd.f32 %v4675_v18, %v4674_v52 }
 0x35a   : > { %v2278_v58 = vadd.f32 %v2277_v48, %v2181_v44  ;;  %v2184_v1 = vadd.f32 %v4676_v56, %v6941_v6 }
 0x35c   : > { %v2340_v22 = vmax.f32 %v2278_v58, 0.0  ;;  %v2281_v43 = vadd.f32 %v2280_v24, %v2184_v1 }
 0x35e   : > { %v2363_v38 = vmul.f32 %v6948_v23, %v2340_v22  ;;  %v2341_v7 = vmax.f32 %v2281_v43, 0.0 }
 0x360   : > { %v2364_v27 = vmul.f32 %v6948_v23, %v2341_v7  ;;  %v2386_v34 = vadd.f32 %v6953_v46, %v2363_v38  ;;  %v7702_v7 = vld [vmem:[#allocation23_spill] sm:$0xff] }
 0x361   : > { %vm7703_vm12 = vcmp.eq.s32.totalorder %v7702_v7, 1 }
 0x362   : > { %v2387_v48 = vadd.f32 %v6953_v46, %v2364_v27  ;;  %2403 = vst [vmem:[#allocation6 + $0x8] sm:$0xff] %v2386_v34  ;;  %vm4525_vm7 = vmpackc.low %vm7703_vm12, %vm767_vm0  ;;  %vm7712_vm12 = vcmp.eq.s32.totalorder %v7666_v3, 1 }
 0x363   : > { %vm4480_vm0 = vmpackc.low %vm2565_vm11, %vm2564_vm1 }
 0x364   : > { %2404 = vst [vmem:[#allocation6 + $0x10] sm:$0xff] %v2387_v48  ;;  %v2684_v11 = vpack.c.bf16 %v2387_v48, %v2386_v34 }
 0x366   : > { %3916 = vmatprep.mubr.bf16.mxu1 %v2684_v11 }
 0x369   : > { %v2604_v52 = vld [vmem:[#allocation6 + $0x6] sm:$0xff] }
 0x36a   : > { %v2644_v18 = vld [vmem:[#allocation6 + $0x7] sm:$0xff] }
 0x36b   : > { %v4677_v24 = vpop.f32.mrb[4].mxu1  ;;  %v2420_v44 = vld [vmem:[#allocation6 + $0x5] sm:$0xff]  ;;  %v2605_v1 = vld [vmem:[#allocation6 + $0xe] sm:$0xff] }
 0x36c   : > { %v4678_v54 = vpop.f32.mrb[5].mxu1  ;;  %v2645_v22 = vld [vmem:[#allocation6 + $0xf] sm:$0xff]  ;;  %v4478_v34 = vpack.c.bf16 %v2605_v1, %v2604_v52 }
 0x36d   : > { %v4679_v56 = vadd.f32 %v4678_v54, %v4677_v24  ;;  %v4680_v58 = vpop.f32.mrb[6].mxu1  ;;  %v2421_v43 = vld [vmem:[#allocation6 + $0xd] sm:$0xff]  ;;  %v4526_v48 = vpack.c.bf16 %v2645_v22, %v2644_v18 }
 0x36e   : > { %v4681_v27 = vpop.f32.mrb[7].mxu1  ;;  %v4481_v11 = vpack.c.bf16 %v2421_v43, %v2420_v44  ;;  %v5186_v24 = vld [vmem:[%s7463_s12 + $0x1c8] sm:$0xff]   ;;  %4479 = vmatprep.mubr.msk.bf16.mxu0 %vm4477_vm3, %v4478_v34  ;;  %v5188_v1 = vld [vmem:[%s7463_s12 + $0x150] sm:$0xff]   ;;  %v5194_v34 = vld [vmem:[%s7463_s12 + $0x1d8] sm:$0xff]  }
 0x36f   : > { %v2189_v54 = vadd.f32 %v4679_v56, %v6941_v6  ;;  %v4682_v38 = vadd.f32 %v4681_v27, %v4680_v58  ;;  %v5184_v52 = vld [vmem:[%s7463_s12 + $0x148] sm:$0xff]   ;;  %4527 = vmatmul.mubr.msk.bf16.vlgmr.msra.gmra.mrb[32].mxu1 %vm4525_vm7, %v4526_v48  ;;  %v5191_v27 = vld [vmem:[%s7463_s12 + $0x190] sm:$0xff]   ;;  %v2527_v48 = vpop.permute.xlu1 %2526  ;;  %vm7713_vm7 = vcmp.eq.s32.totalorder %v7665_v60, 1 }
 0x370   : > { %v6981_v18 = vpop.f32.mrb[24].mxu0  ;;  %4482 = vmatmul.mubr.msk.bf16.vlgmr.msra.gmra.mrb[32].mxu0 %vm4480_vm0, %v4481_v11  ;;  %4924 = vmatpush3.bf16.msra.mxu1 %v5183_v49  ;;  %vm4483_vm5 = vmpackc.low %vm7713_vm7, %vm7712_vm12  ;;  %vm2567_vm0 = vcmp.eq.s32.totalorder %v2527_v48, 1  ;;  %vm7718_vm7 = vcmp.eq.s32.totalorder %v7676_v17, 1 }
 0x371   : > { %v2286_v44 = vadd.f32 %v6920_v31, %v2189_v54  ;;  %v2192_v63 = vadd.f32 %v4682_v38, %v6941_v6  ;;  %v6988_v12 = vpop.f32.mrb[25].mxu0  ;;  %4860 = vmatpush3.bf16.msra.mxu0 %v5181_v29  ;;  %4925 = vmatprep.subr.bf16.mxu1 %v5186_v24  ;;  %v5190_v31 = vld [vmem:[%s7463_s12 + $0x1d0] sm:$0xff]   ;;  %v7002_v29 = vpop.permute.xlu0 %2523  ;;  %v5192_v54 = vld [vmem:[%s7463_s12 + $0x158] sm:$0xff]  }
 0x372   : > { %v6996_v56 = vpop.f32.mrb[26].mxu0  ;;  %4861 = vmatprep.subr.bf16.mxu0 %v5184_v52  ;;  %v5195_v52 = vld [vmem:[%s7463_s12 + $0x198] sm:$0xff]   ;;  %vm2566_vm1 = vcmp.eq.s32.totalorder %v7002_v29, 1 }
 0x373   : > { %v2342_v58 = vmax.f32 %v2286_v44, 0.0  ;;  %v2289_v49 = vadd.f32 %v6922_v14, %v2192_v63  ;;  %v7004_v22 = vpop.f32.mrb[27].mxu0  ;;  %v5189_v14 = vld [vmem:[%s7463_s12 + $0x110] sm:$0xff]   ;;  %v5193_v63 = vld [vmem:[%s7463_s12 + $0x118] sm:$0xff]  }
 0x374   : > { %4926 = vmatpush3.bf16.msra.mxu1 %v5187_v57  ;;  %v5198_v57 = vld [vmem:[%s7463_s12 + $0x1e0] sm:$0xff]  }
 0x375   : > { %v2365_v43 = vmul.f32 %v6948_v23, %v2342_v58  ;;  %v2343_v7 = vmax.f32 %v2289_v49, 0.0  ;;  %4862 = vmatpush3.bf16.msra.mxu0 %v5185_v33  ;;  %4927 = vmatprep.subr.bf16.mxu1 %v5190_v31  ;;  %v7025_v44 = vpop.permute.xlu0 %2529  ;;  %v5196_v31 = vld [vmem:[%s7463_s12 + $0x160] sm:$0xff]   ;;  %v7036_v58 = vpop.permute.xlu1 %2532 }
 0x376   : > { %4863 = vmatprep.subr.bf16.mxu0 %v5188_v1  ;;  %v5199_v49 = vld [vmem:[%s7463_s12 + $0x1a0] sm:$0xff]  }
 0x377   : > { %v2366_v11 = vmul.f32 %v6948_v23, %v2343_v7  ;;  %v2388_v24 = vadd.f32 %v6953_v46, %v2365_v43  ;;  %v5197_v1 = vld [vmem:[%s7463_s12 + $0x120] sm:$0xff]   ;;  %v5202_v43 = vld [vmem:[%s7463_s12 + $0x1e8] sm:$0xff]  }
 0x378   : > { %4928 = vmatpush3.bf16.msra.mxu1 %v5191_v27  ;;  %v5200_v27 = vld [vmem:[%s7463_s12 + $0x168] sm:$0xff]  }
 0x379   : > { %v2389_v38 = vadd.f32 %v6953_v46, %v2366_v11  ;;  %2405 = vst [vmem:[#allocation6 + $0x18] sm:$0xff] %v2388_v24  ;;  %4864 = vmatpush3.bf16.msra.mxu0 %v5189_v14  ;;  %4929 = vmatprep.subr.bf16.mxu1 %v5194_v34  ;;  %v7050_v14 = vpop.permute.xlu0 %2535  ;;  %v7706_v11 = vld [vmem:[#allocation26_spill] sm:$0xff] }
 0x37a   : > { %4865 = vmatprep.subr.bf16.mxu0 %v5192_v54  ;;  %vm7707_vm9 = vcmp.eq.s32.totalorder %v7706_v11, 1  ;;  %v5209_v54 = vld [vmem:[%s7463_s12 + $0x178] sm:$0xff]  }
 0x37b   : > { %2406 = vst [vmem:[#allocation6 + $0x20] sm:$0xff] %v2389_v38  ;;  %v2685_v33 = vpack.c.bf16 %v2389_v38, %v2388_v24  ;;  %v7708_v24 = vld [vmem:[#allocation25_spill] sm:$0xff] }
 0x37c   : > { %4930 = vmatpush3.bf16.msra.mxu1 %v5195_v52  ;;  %vm7709_vm3 = vcmp.eq.s32.totalorder %v7708_v24, 1  ;;  %v7064_v24 = vpop.permute.xlu1 %2538 }
 0x37d   : > { %3924 = vmatprep.mubr.bf16.mxu1 %v2685_v33  ;;  %4866 = vmatpush3.bf16.msra.mxu0 %v5193_v63  ;;  %vm7056_vm11 = vmpackc.low %vm7709_vm3, %vm7707_vm9  ;;  %v5203_v33 = vld [vmem:[%s7463_s12 + $0x1a8] sm:$0xff]   ;;  %v7086_v3 = vpop.permute.xlu0 %2541  ;;  %vm2568_vm3 = vcmp.eq.s32.totalorder %v7025_v44, 1 }
 0x37e   : > { %4931 = vmatprep.subr.bf16.mxu1 %v5198_v57  ;;  %v4683_v7 = vpop.f32.mrb[8].mxu1  ;;  %4867 = vmatprep.subr.bf16.mxu0 %v5196_v31  ;;  %vm4486_vm9 = vmpackc.low %vm2567_vm0, %vm2566_vm1  ;;  %vm7715_vm1 = vcmp.eq.s32.totalorder %v5946_v10, 1 }
 0x37f   : > { %v4684_v34 = vpop.f32.mrb[9].mxu1 }
 0x380   : > { %v4685_v38 = vadd.f32 %v4684_v34, %v4683_v7  ;;  %v4686_v52 = vpop.f32.mrb[10].mxu1  ;;  %v2606_v63 = vld [vmem:[#allocation6 + $0x16] sm:$0xff]  ;;  %4932 = vmatpush3.bf16.msra.mxu1 %v5199_v49 }
 0x381   : > { %v2646_v57 = vld [vmem:[#allocation6 + $0x17] sm:$0xff]  ;;  %v4687_v31 = vpop.f32.mrb[11].mxu1  ;;  %4868 = vmatpush3.bf16.msra.mxu0 %v5197_v1  ;;  %4933 = vmatprep.subr.bf16.mxu1 %v5202_v43 }
 0x382   : > { %v2607_v39 = vld [vmem:[#allocation6 + $0x1e] sm:$0xff]  ;;  %v2197_v7 = vadd.f32 %v4685_v38, %v6941_v6  ;;  %v4688_v34 = vadd.f32 %v4687_v31, %v4686_v52  ;;  %v2422_v49 = vld [vmem:[#allocation6 + $0x15] sm:$0xff]  ;;  %4869 = vmatprep.subr.bf16.mxu0 %v5200_v27  ;;  %v7101_v38 = vpop.permute.xlu1 %2544 }
 0x383   : > { %v2647_v11 = vld [vmem:[#allocation6 + $0x1f] sm:$0xff]  ;;  %v4484_v4 = vpack.c.bf16 %v2607_v39, %v2606_v63  ;;  %v5204_v39 = vld [vmem:[%s7463_s12 + $0x170] sm:$0xff]  }
 0x384   : > { %v2423_v41 = vld [vmem:[#allocation6 + $0x1d] sm:$0xff]  ;;  %v4529_v21 = vpack.c.bf16 %v2647_v11, %v2646_v57  ;;  %v2294_v43 = vadd.f32 %v6926_v0, %v2197_v7  ;;  %v2200_v27 = vadd.f32 %v4688_v34, %v6941_v6  ;;  %4934 = vmatpush3.bf16.msra.mxu1 %v5203_v33 }
 0x385   : > { %v4487_v1 = vpack.c.bf16 %v2423_v41, %v2422_v49  ;;  %4485 = vmatprep.mubr.msk.bf16.mxu0 %vm4483_vm5, %v4484_v4  ;;  %v5207_v41 = vld [vmem:[%s7463_s12 + $0x1b0] sm:$0xff]   ;;  %4870 = vmatpush3.bf16.msra.mxu0 %v5201_v28  ;;  %v5211_v34 = vld [vmem:[%s7463_s12 + $0x138] sm:$0xff]   ;;  %v7113_v49 = vpop.permute.xlu0 %2547  ;;  %vm7719_vm5 = vcmp.eq.s32.totalorder %v7672_v36, 1 }
 0x386   : > { %4530 = vmatmul.mubr.msk.bf16.gmra.mrb[36].mxu1 %vm7056_vm11, %v4529_v21  ;;  %v2344_v60 = vmax.f32 %v2294_v43, 0.0  ;;  %v2297_v29 = vadd.f32 %v6930_v8, %v2200_v27  ;;  %v4689_v48 = vpop.f32.mrb[12].mxu1  ;;  %v5205_v4 = vld [vmem:[%s7463_s12 + $0x130] sm:$0xff]   ;;  %4935 = vmatprep.subr.bf16.mxu1 %v5206_v51  ;;  %v5208_v21 = vld [vmem:[%s7463_s12 + $0x1f8] sm:$0xff]   ;;  %v7118_v27 = vpop.permute.xlu1 %2550  ;;  %vm7714_vm11 = vcmp.eq.s32.totalorder %v5948_v62, 1  ;;  %vm4489_vm0 = vmpackc.low %vm7719_vm5, %vm7718_vm7 }
 0x387   : > { %4488 = vmatmul.mubr.msk.bf16.gmra.mrb[36].mxu0 %vm4486_vm9, %v4487_v1  ;;  %v4690_v0 = vpop.f32.mrb[13].mxu1  ;;  %4871 = vmatprep.subr.bf16.mxu0 %v5204_v39  ;;  %v5210_v51 = vld [vmem:[%s7463_s12 + $0x1b8] sm:$0xff]   ;;  %vm7138_vm12 = vmpackc.low %vm7715_vm1, %vm7714_vm11  ;;  %vm2569_vm9 = vcmp.eq.s32.totalorder %v7036_v58, 1  ;;  %vm7720_vm1 = vcmp.eq.s32.totalorder %v5952_v42, 1 }
 0x388   : > { %v2367_v8 = vmul.f32 %v6948_v23, %v2344_v60  ;;  %v2345_v28 = vmax.f32 %v2297_v29, 0.0  ;;  %v4691_v52 = vadd.f32 %v4690_v0, %v4689_v48  ;;  %v4692_v63 = vpop.f32.mrb[14].mxu1  ;;  %4936 = vmatpush3.bf16.msra.mxu1 %v5207_v41  ;;  %vm4492_vm11 = vmpackc.low %vm2569_vm9, %vm2568_vm3  ;;  %vm2570_vm3 = vcmp.eq.s32.totalorder %v7050_v14, 1 }
 0x389   : > { %v4693_v57 = vpop.f32.mrb[15].mxu1  ;;  %4872 = vmatpush3.bf16.msra.mxu0 %v5205_v4  ;;  %4937 = vmatprep.subr.bf16.mxu1 %v5208_v21  ;;  %vm4495_vm5 = vmpackc.low %vm1490_vm13, %vm1489_vm2  ;;  %vm2572_vm13 = vcmp.eq.s32.totalorder %v7086_v3, 1 }
 0x38a   : > { %v2368_v33 = vmul.f32 %v6948_v23, %v2345_v28  ;;  %v2205_v31 = vadd.f32 %v4691_v52, %v6941_v6  ;;  %v4694_v11 = vadd.f32 %v4693_v57, %v4692_v63  ;;  %v2390_v7 = vadd.f32 %v6953_v46, %v2367_v8  ;;  %4873 = vmatprep.subr.bf16.mxu0 %v5209_v54  ;;  %v7122_v8 = vpop.permute.xlu0 %2553 }
 0x38c   : > { %v2302_v1 = vadd.f32 %v6924_v15, %v2205_v31  ;;  %v2208_v39 = vadd.f32 %v4694_v11, %v6941_v6  ;;  %v2391_v43 = vadd.f32 %v6953_v46, %v2368_v33  ;;  %2407 = vst [vmem:[#allocation6 + $0x28] sm:$0xff] %v2390_v7  ;;  %4938 = vmatpush3.bf16.msra.mxu1 %v5210_v51  ;;  %v7127_v51 = vpop.permute.xlu1 %2556 }
 0x38d   : > { %4874 = vmatpush3.bf16.msra.mxu0 %v5211_v34 }
 0x38e   : > { %v2346_v41 = vmax.f32 %v2302_v1, 0.0  ;;  %v2305_v60 = vadd.f32 %v6928_v26, %v2208_v39  ;;  %v4695_v29 = vpop.f32.mrb[16].mxu1  ;;  %2408 = vst [vmem:[#allocation6 + $0x30] sm:$0xff] %v2391_v43  ;;  %v2686_v48 = vpack.c.bf16 %v2391_v43, %v2390_v7 }
 0x38f   : > { %v4696_v4 = vpop.f32.mrb[17].mxu1 }
 0x390   : > { %v2369_v0 = vmul.f32 %v6948_v23, %v2346_v41  ;;  %v2347_v21 = vmax.f32 %v2305_v60, 0.0  ;;  %v4697_v15 = vadd.f32 %v4696_v4, %v4695_v29  ;;  %v4698_v54 = vpop.f32.mrb[18].mxu1  ;;  %3932 = vmatprep.mubr.bf16.mxu1 %v2686_v48  ;;  %v7154_v17 = vpop.permute.xlu1 %2562 }
 0x391   : > { %v4699_v28 = vpop.f32.mrb[19].mxu1 }
 0x392   : > { %v2370_v52 = vmul.f32 %v6948_v23, %v2347_v21  ;;  %v2213_v63 = vadd.f32 %v4697_v15, %v6941_v6  ;;  %v4700_v57 = vadd.f32 %v4699_v28, %v4698_v54  ;;  %v2392_v26 = vadd.f32 %v6953_v46, %v2369_v0 }
 0x393   : > { %v2608_v11 = vld [vmem:[#allocation6 + $0x26] sm:$0xff] }
 0x394   : > { %v2310_v33 = vadd.f32 %v6988_v12, %v2213_v63  ;;  %v2216_v31 = vadd.f32 %v4700_v57, %v6941_v6  ;;  %v2648_v7 = vld [vmem:[#allocation6 + $0x27] sm:$0xff]  ;;  %v2393_v34 = vadd.f32 %v6953_v46, %v2370_v52  ;;  %2409 = vst [vmem:[#allocation6 + $0x38] sm:$0xff] %v2392_v26 }
 0x395   : > { %v2609_v1 = vld [vmem:[#allocation6 + $0x2e] sm:$0xff]  ;;  %v2424_v0 = vld [vmem:[#allocation6 + $0x25] sm:$0xff] }
 0x396   : > { %v2649_v39 = vld [vmem:[#allocation6 + $0x2f] sm:$0xff]  ;;  %v2348_v41 = vmax.f32 %v2310_v33, 0.0  ;;  %v2313_v60 = vadd.f32 %v7004_v22, %v2216_v31  ;;  %v4701_v29 = vpop.f32.mrb[20].mxu1  ;;  %v4490_v48 = vpack.c.bf16 %v2609_v1, %v2608_v11  ;;  %2410 = vst [vmem:[#allocation6 + $0x40] sm:$0xff] %v2393_v34  ;;  %v7147_v22 = vpop.permute.xlu0 %2559  ;;  %v2687_v15 = vpack.c.bf16 %v2393_v34, %v2392_v26  ;;  %v2959_v47 = vld [vmem:[#allocation6 + $0x24] sm:$0xff] }
 0x397   : > { %v2425_v43 = vld [vmem:[#allocation6 + $0x2d] sm:$0xff]  ;;  %v4532_v4 = vpack.c.bf16 %v2649_v39, %v2648_v7  ;;  %v4702_v21 = vpop.f32.mrb[21].mxu1 }
 0x398   : > { %v4493_v62 = vpack.c.bf16 %v2425_v43, %v2424_v0  ;;  %v2371_v10 = vmul.f32 %v6948_v23, %v2348_v41  ;;  %v2349_v54 = vmax.f32 %v2313_v60, 0.0  ;;  %v4703_v28 = vadd.f32 %v4702_v21, %v4701_v29  ;;  %v4704_v52 = vpop.f32.mrb[22].mxu1  ;;  %4491 = vmatprep.mubr.msk.bf16.mxu0 %vm4489_vm0, %v4490_v48 }
 0x399   : > { %4533 = vmatmul.mubr.msk.bf16.gmra.mrb[40].mxu1 %vm7138_vm12, %v4532_v4  ;;  %v4705_v36 = vpop.f32.mrb[23].mxu1  ;;  %vm7721_vm12 = vcmp.eq.s32.totalorder %v5950_v5, 1  ;;  %vm2571_vm0 = vcmp.eq.s32.totalorder %v7064_v24, 1  ;;  %v7185_v5 = vpop.permute.xlu1 %3056 }
 0x39a   : > { %4494 = vmatmul.mubr.msk.bf16.gmra.mrb[40].mxu0 %vm4492_vm11, %v4493_v62  ;;  %3940 = vmatprep.mubr.bf16.mxu1 %v2687_v15  ;;  %v2372_v58 = vmul.f32 %v6948_v23, %v2349_v54  ;;  %v2221_v63 = vadd.f32 %v4703_v28, %v6941_v6  ;;  %v4706_v44 = vadd.f32 %v4705_v36, %v4704_v52  ;;  %v7165_v1 = vpop.permute.xlu0 %3053  ;;  %vm7174_vm7 = vmpackc.low %vm7721_vm12, %vm7720_vm1  ;;  %vm7726_vm11 = vcmp.eq.s32.totalorder %v5990_v61, 1 }
 0x39b   : > { %v2394_v57 = vadd.f32 %v6953_v46, %v2371_v10  ;;  %v2610_v11 = vld [vmem:[#allocation6 + $0x36] sm:$0xff]  ;;  %vm4498_vm9 = vmpackc.low %vm2571_vm0, %vm2570_vm3  ;;  %vm7727_vm1 = vcmp.eq.s32.totalorder %v6319_v16, 1  ;;  %vm7728_vm12 = vcmp.eq.s32.totalorder %v6317_v37, 1 }
 0x39c   : > { %v7159_v26 = vpop.f32.mrb[28].mxu0  ;;  %v2318_v33 = vadd.f32 %v6981_v18, %v2221_v63  ;;  %v2224_v31 = vadd.f32 %v4706_v44, %v6941_v6  ;;  %v2650_v7 = vld [vmem:[#allocation6 + $0x37] sm:$0xff]  ;;  %v2395_v34 = vadd.f32 %v6953_v46, %v2372_v58 }
 0x39d   : > { %2411 = vst [vmem:[#allocation6 + $0x48] sm:$0xff] %v2394_v57  ;;  %v2325_v39 = vpop.f32.mrb[29].mxu0  ;;  %v2611_v43 = vld [vmem:[#allocation6 + $0x3e] sm:$0xff]  ;;  %v2426_v62 = vld [vmem:[#allocation6 + $0x35] sm:$0xff] }
 0x39e   : > { %v2651_v41 = vld [vmem:[#allocation6 + $0x3f] sm:$0xff]  ;;  %v7167_v29 = vpop.f32.mrb[30].mxu0  ;;  %v2350_v48 = vmax.f32 %v2318_v33, 0.0  ;;  %v2321_v18 = vadd.f32 %v6996_v56, %v2224_v31  ;;  %v4707_v12 = vpop.f32.mrb[24].mxu1  ;;  %v4496_v4 = vpack.c.bf16 %v2611_v43, %v2610_v11  ;;  %2412 = vst [vmem:[#allocation6 + $0x50] sm:$0xff] %v2395_v34  ;;  %v2688_v42 = vpack.c.bf16 %v2395_v34, %v2394_v57 }
 0x39f   : > { %v2427_v60 = vld [vmem:[#allocation6 + $0x3d] sm:$0xff]  ;;  %v4535_v21 = vpack.c.bf16 %v2651_v41, %v2650_v7  ;;  %v2328_v56 = vpop.f32.mrb[31].mxu0  ;;  %v4708_v15 = vpop.f32.mrb[25].mxu1 }
 0x3a0   : > { %v4499_v10 = vpack.c.bf16 %v2427_v60, %v2426_v62  ;;  %v2373_v54 = vmul.f32 %v6948_v23, %v2350_v48  ;;  %v2351_v28 = vmax.f32 %v2321_v18, 0.0  ;;  %v4709_v52 = vadd.f32 %v4708_v15, %v4707_v12  ;;  %v4710_v36 = vpop.f32.mrb[26].mxu1  ;;  %4497 = vmatprep.mubr.msk.bf16.mxu0 %vm4495_vm5, %v4496_v4  ;;  %v7193_v63 = vpop.permute.xlu0 %2869  ;;  %v7724_v4 = vld [vmem:[#allocation27_spill] sm:$0xff] }
 0x3a1   : > { %4536 = vmatmul.mubr.msk.bf16.gmra.mrb[44].mxu1 %vm7174_vm7, %v4535_v21  ;;  %v4711_v9 = vpop.f32.mrb[27].mxu1  ;;  %v7198_v41 = vpop.permute.xlu1 %2872  ;;  %vm7725_vm2 = vcmp.eq.s32.totalorder %v7724_v4, 1  ;;  %vm4501_vm7 = vmpackc.low %vm7728_vm12, %vm7727_vm1  ;;  %vm2573_vm5 = vcmp.eq.s32.totalorder %v7101_v38, 1  ;;  %vm2576_vm12 = vcmp.eq.s32.totalorder %v7122_v8, 1  ;;  %v2957_v8 = vld [vmem:[#allocation6 + $0x14] sm:$0xff] }
 0x3a2   : > { %4500 = vmatmul.mubr.msk.bf16.gmra.mrb[44].mxu0 %vm4498_vm9, %v4499_v10  ;;  %3948 = vmatprep.mubr.bf16.mxu1 %v2688_v42  ;;  %v2374_v53 = vmul.f32 %v6948_v23, %v2351_v28  ;;  %v2229_v24 = vadd.f32 %v4709_v52, %v6941_v6  ;;  %v4712_v14 = vadd.f32 %v4711_v9, %v4710_v36  ;;  %vm4537_vm3 = vmpackc.low %vm7726_vm11, %vm7725_vm2  ;;  %vm2574_vm9 = vcmp.eq.s32.totalorder %v7113_v49, 1 }
 0x3a3   : > { %v2396_v58 = vadd.f32 %v6953_v46, %v2373_v54  ;;  %vm4504_vm0 = vmpackc.low %vm2573_vm5, %vm2572_vm13  ;;  %vm2575_vm13 = vcmp.eq.s32.totalorder %v7118_v27, 1  ;;  %vm7729_vm2 = vcmp.eq.s32.totalorder %v6000_v55, 1  ;;  %vm7730_vm11 = vcmp.eq.s32.totalorder %v5997_v30, 1 }
 0x3a4   : > { %v2326_v44 = vadd.f32 %v2325_v39, %v2229_v24  ;;  %v2232_v57 = vadd.f32 %v4712_v14, %v6941_v6  ;;  %v2612_v33 = vld [vmem:[#allocation6 + $0x46] sm:$0xff]  ;;  %v2397_v11 = vadd.f32 %v6953_v46, %v2374_v53  ;;  %v7212_v37 = vpop.permute.xlu0 %3059  ;;  %vm4510_vm1 = vmpackc.low %vm2575_vm13, %vm2574_vm9  ;;  %vm7732_vm5 = vcmp.eq.s32.totalorder %v6014_v35, 1 }
 0x3a5   : > { %v2652_v31 = vld [vmem:[#allocation6 + $0x47] sm:$0xff]  ;;  %2413 = vst [vmem:[#allocation6 + $0x58] sm:$0xff] %v2396_v58  ;;  %v2653_v34 = vld [vmem:[#allocation6 + $0x4f] sm:$0xff]  ;;  %v7217_v52 = vpop.permute.xlu1 %3062  ;;  %vm2578_vm13 = vcmp.eq.s32.totalorder %v7147_v22, 1 }
 0x3a6   : > { %v2613_v7 = vld [vmem:[#allocation6 + $0x4e] sm:$0xff]  ;;  %v2352_v60 = vmax.f32 %v2326_v44, 0.0  ;;  %v2329_v48 = vadd.f32 %v2328_v56, %v2232_v57  ;;  %v4713_v18 = vpop.f32.mrb[28].mxu1  ;;  %v4538_v39 = vpack.c.bf16 %v2653_v34, %v2652_v31  ;;  %v2428_v0 = vld [vmem:[#allocation6 + $0x45] sm:$0xff]  ;;  %2414 = vst [vmem:[#allocation6 + $0x60] sm:$0xff] %v2397_v11  ;;  %v2689_v56 = vpack.c.bf16 %v2397_v11, %v2396_v58 }
 0x3a7   : > { %v2429_v43 = vld [vmem:[#allocation6 + $0x4d] sm:$0xff]  ;;  %v4502_v12 = vpack.c.bf16 %v2613_v7, %v2612_v33  ;;  %v4714_v21 = vpop.f32.mrb[29].mxu1 }
 0x3a8   : > { %v4505_v62 = vpack.c.bf16 %v2429_v43, %v2428_v0  ;;  %v2375_v15 = vmul.f32 %v6948_v23, %v2352_v60  ;;  %v2353_v61 = vmax.f32 %v2329_v48, 0.0  ;;  %v4715_v10 = vadd.f32 %v4714_v21, %v4713_v18  ;;  %v4716_v42 = vpop.f32.mrb[30].mxu1  ;;  %v7229_v49 = vpop.permute.xlu0 %2875  ;;  %v2773_v22 = vld [vmem:[#allocation6 + $0x13] sm:$0xff] }
 0x3a9   : > { %4503 = vmatprep.mubr.msk.bf16.mxu0 %vm4501_vm7, %v4502_v12  ;;  %4539 = vmatmul.mubr.msk.bf16.gmra.mrb[48].mxu1 %vm4537_vm3, %v4538_v39  ;;  %v4717_v54 = vpop.f32.mrb[31].mxu1  ;;  %vm4540_vm3 = vmpackc.low %vm7730_vm11, %vm7729_vm2  ;;  %v7234_v27 = vpop.permute.xlu1 %2878  ;;  %vm7731_vm7 = vcmp.eq.s32.totalorder %v6021_v50, 1  ;;  %vm3100_vm2 = vcmp.eq.s32.totalorder %v7165_v1, 1  ;;  %vm2579_vm11 = vcmp.eq.s32.totalorder %v7154_v17, 1  ;;  %v7737_v17 = vld [vmem:[#allocation28_spill] sm:$0xff] }
 0x3aa   : > { %4506 = vmatmul.mubr.msk.bf16.gmra.mrb[48].mxu0 %vm4504_vm0, %v4505_v62  ;;  %3956 = vmatprep.mubr.bf16.mxu1 %v2689_v56  ;;  %v2376_v16 = vmul.f32 %v6948_v23, %v2353_v61  ;;  %v2237_v38 = vadd.f32 %v4715_v10, %v6941_v6  ;;  %v4718_v28 = vadd.f32 %v4717_v54, %v4716_v42  ;;  %vm4543_vm0 = vmpackc.low %vm7732_vm5, %vm7731_vm7 }
 0x3ab   : > { %v2398_v3 = vadd.f32 %v6953_v46, %v2375_v15  ;;  %v2733_v15 = vld [vmem:[#allocation6 + $0x12] sm:$0xff] }
 0x3ac   : > { %v2334_v36 = vadd.f32 %v7159_v26, %v2237_v38  ;;  %v2240_v9 = vadd.f32 %v4718_v28, %v6941_v6  ;;  %v2614_v53 = vld [vmem:[#allocation6 + $0x56] sm:$0xff]  ;;  %v2399_v14 = vadd.f32 %v6953_v46, %v2376_v16  ;;  %v7240_v0 = vpop.permute.xlu0 %3065 }
 0x3ad   : > { %v2654_v24 = vld [vmem:[#allocation6 + $0x57] sm:$0xff]  ;;  %2415 = vst [vmem:[#allocation6 + $0x68] sm:$0xff] %v2398_v3  ;;  %v2655_v44 = vld [vmem:[#allocation6 + $0x5f] sm:$0xff] }
 0x3ae   : > { %v2615_v58 = vld [vmem:[#allocation6 + $0x5e] sm:$0xff]  ;;  %v2354_v33 = vmax.f32 %v2334_v36, 0.0  ;;  %v2337_v31 = vadd.f32 %v7167_v29, %v2240_v9  ;;  %v4541_v7 = vpack.c.bf16 %v2655_v44, %v2654_v24  ;;  %v2430_v34 = vld [vmem:[#allocation6 + $0x55] sm:$0xff]  ;;  %2416 = vst [vmem:[#allocation6 + $0x70] sm:$0xff] %v2399_v14  ;;  %v2690_v26 = vpack.c.bf16 %v2399_v14, %v2398_v3  ;;  %v2956_v3 = vld [vmem:[#allocation6 + $0xc] sm:$0xff] }
 0x3af   : > { %v2431_v57 = vld [vmem:[#allocation6 + $0x5d] sm:$0xff]  ;;  %v4508_v11 = vpack.c.bf16 %v2615_v58, %v2614_v53  ;;  %v4598_v36 = vpack.c.bf16 %v2957_v8, %v2956_v3  ;;  %v2732_v9 = vld [vmem:[#allocation6 + $0xa] sm:$0xff]  ;;  %v2777_v8 = vld [vmem:[#allocation6 + $0x33] sm:$0xff] }
 0x3b0   : > { %v4511_v6 = vpack.c.bf16 %v2431_v57, %v2430_v34  ;;  %v2377_v43 = vmul.f32 %v6948_v23, %v2354_v33  ;;  %v2355_v60 = vmax.f32 %v2337_v31, 0.0  ;;  %v7252_v61 = vpop.permute.xlu0 %2881  ;;  %v2693_v53 = vld [vmem:[#allocation6 + $0x11] sm:$0xff]  ;;  %v2735_v14 = vld [vmem:[#allocation6 + $0x22] sm:$0xff]  ;;  %v7739_v58 = vld [vmem:[#allocation10_spill] sm:$0xff] }
 0x3b1   : > { %4509 = vmatprep.mubr.msk.bf16.mxu0 %vm6746_vm8, %v4508_v11  ;;  %4542 = vmatmul.mubr.msk.bf16.gmra.mrb[52].mxu1 %vm4540_vm3, %v4541_v7  ;;  %vm2577_vm8 = vcmp.eq.s32.totalorder %v7127_v51, 1  ;;  %vm7734_vm3 = vcmp.eq.s32.totalorder %v6024_v20, 1  ;;  %v7735_v20 = vld [vmem:[#allocation29_spill] sm:$0xff]  ;;  %v7741_v44 = vld [vmem:[#allocation12_spill] sm:$0xff]  ;;  %v2958_v31 = vld [vmem:[#allocation6 + $0x1c] sm:$0xff] }
 0x3b2   : > { %4512 = vmatmul.mubr.msk.bf16.gmra.mrb[52].mxu0 %vm4510_vm1, %v4511_v6  ;;  %3964 = vmatprep.mubr.bf16.mxu1 %v2690_v26  ;;  %v2378_v55 = vmul.f32 %v6948_v23, %v2355_v60  ;;  %v2400_v30 = vadd.f32 %v6953_v46, %v2377_v43  ;;  %vm4516_vm9 = vmpackc.low %vm2577_vm8, %vm2576_vm12  ;;  %vm3101_vm12 = vcmp.eq.s32.totalorder %v7185_v5, 1  ;;  %vm7736_vm5 = vcmp.eq.s32.totalorder %v7735_v20, 1  ;;  %v2772_v24 = vld [vmem:[#allocation6 + $0xb] sm:$0xff]  ;;  %v2734_v7 = vld [vmem:[#allocation6 + $0x1a] sm:$0xff] }
 0x3b3   : > { %vm4522_vm8 = vmpackc.low %vm2579_vm11, %vm2578_vm13  ;;  %vm2916_vm13 = vcmp.eq.s32.totalorder %v7193_v63, 1  ;;  %vm7742_vm11 = vcmp.eq.s32.totalorder %v7741_v44, 1  ;;  %v4601_v33 = vpack.c.bf16 %v2773_v22, %v2772_v24  ;;  %v2692_v63 = vld [vmem:[#allocation6 + $0x9] sm:$0xff]  ;;  %v4556_v6 = vpack.c.bf16 %v2735_v14, %v2734_v7  ;;  %v7747_v43 = vld [vmem:[#allocation30_spill] sm:$0xff] }
 0x3b4   : > { %v2616_v29 = vld [vmem:[#allocation6 + $0x66] sm:$0xff]  ;;  %v2401_v12 = vadd.f32 %v6953_v46, %v2378_v55  ;;  %2417 = vst [vmem:[#allocation6 + $0x78] sm:$0xff] %v2400_v30  ;;  %v7247_v46 = vpop.permute.xlu1 %3068  ;;  %vm4597_vm7 = vmpackc.low %vm3101_vm12, %vm3100_vm2  ;;  %v7273_v5 = vpop.permute.xlu0 %3071  ;;  %vm7740_vm2 = vcmp.eq.s32.totalorder %v7739_v58, 1  ;;  %v4553_v11 = vpack.c.bf16 %v2693_v53, %v2692_v63  ;;  %v2961_v55 = vld [vmem:[#allocation6 + $0x34] sm:$0xff] }
 0x3b5   : > { %v2656_v48 = vld [vmem:[#allocation6 + $0x67] sm:$0xff]  ;;  %v2657_v45 = vld [vmem:[#allocation6 + $0x6f] sm:$0xff]  ;;  %v2698_v24 = vld [vmem:[#allocation6 + $0x39] sm:$0xff] }
 0x3b6   : > { %v2432_v18 = vld [vmem:[#allocation6 + $0x65] sm:$0xff]  ;;  %v2617_v4 = vld [vmem:[#allocation6 + $0x6e] sm:$0xff]  ;;  %v4544_v62 = vpack.c.bf16 %v2657_v45, %v2656_v48  ;;  %2418 = vst [vmem:[#allocation6 + $0x80] sm:$0xff] %v2401_v12  ;;  %v2691_v23 = vpack.c.bf16 %v2401_v12, %v2400_v30  ;;  %v2774_v30 = vld [vmem:[#allocation6 + $0x1b] sm:$0xff] }
 0x3b7   : > { %v2433_v39 = vld [vmem:[#allocation6 + $0x6d] sm:$0xff]  ;;  %v4514_v21 = vpack.c.bf16 %v2617_v4, %v2616_v29  ;;  %v2695_v60 = vld [vmem:[#allocation6 + $0x21] sm:$0xff]  ;;  %v2694_v12 = vld [vmem:[#allocation6 + $0x19] sm:$0xff] }
 0x3b8   : > { %v4517_v56 = vpack.c.bf16 %v2433_v39, %v2432_v18  ;;  %v7256_v25 = vpop.permute.xlu1 %2884  ;;  %v7289_v34 = vpop.permute.xlu0 %2887  ;;  %v7745_v26 = vld [vmem:[#allocation32_spill] sm:$0xff]  ;;  %v2737_v29 = vld [vmem:[#allocation6 + $0x32] sm:$0xff]  ;;  %v7751_v45 = vld [vmem:[#allocation11_spill] sm:$0xff] }
 0x3b9   : > { %4515 = vmatprep.mubr.msk.bf16.mxu0 %vm6768_vm15, %v4514_v21  ;;  %4545 = vmatmul.mubr.msk.bf16.gmra.mrb[56].mxu1 %vm4543_vm0, %v4544_v62  ;;  %vm7733_vm15 = vcmp.eq.s32.totalorder %v6028_v59, 1  ;;  %v4550_v59 = vpack.c.bf16 %v2733_v15, %v2732_v9  ;;  %vm7738_vm0 = vcmp.eq.s32.totalorder %v7737_v17, 1  ;;  %v7749_v4 = vld [vmem:[#allocation9_spill] sm:$0xff]  ;;  %v2779_v20 = vld [vmem:[#allocation6 + $0x43] sm:$0xff] }
 0x3ba   : > { %4518 = vmatmul.mubr.msk.bf16.gmra.mrb[56].mxu0 %vm4516_vm9, %v4517_v56  ;;  %3972 = vmatprep.mubr.bf16.mxu1 %v2691_v23  ;;  %vm4546_vm1 = vmpackc.low %vm7734_vm3, %vm7733_vm15  ;;  %vm2917_vm3 = vcmp.eq.s32.totalorder %v7198_v41, 1  ;;  %v2960_v39 = vld [vmem:[#allocation6 + $0x2c] sm:$0xff]  ;;  %v2965_v22 = vld [vmem:[#allocation6 + $0x54] sm:$0xff] }
 0x3bb   : > { %v2618_v51 = vld [vmem:[#allocation6 + $0x76] sm:$0xff]  ;;  %vm4549_vm9 = vmpackc.low %vm7738_vm0, %vm7736_vm5  ;;  %vm7748_vm5 = vcmp.eq.s32.totalorder %v7747_v43, 1  ;;  %v4610_v21 = vpack.c.bf16 %v2961_v55, %v2960_v39  ;;  %v7755_v23 = vld [vmem:[#allocation40_spill] sm:$0xff] }
 0x3bc   : > { %v2658_v50 = vld [vmem:[#allocation6 + $0x77] sm:$0xff]  ;;  %v7276_v1 = vpop.permute.xlu1 %3074  ;;  %vm7283_vm15 = vmpackc.low %vm7742_vm11, %vm7740_vm2  ;;  %v7302_v48 = vpop.permute.xlu0 %3077  ;;  %vm7750_vm2 = vcmp.eq.s32.totalorder %v7749_v4, 1  ;;  %vm7752_vm11 = vcmp.eq.s32.totalorder %v7751_v45, 1  ;;  %v7766_v14 = vld [vmem:[#allocation15_spill] sm:$0xff] }
 0x3bd   : > { %v2434_v10 = vld [vmem:[#allocation6 + $0x75] sm:$0xff]  ;;  %v2619_v35 = vld [vmem:[#allocation6 + $0x7e] sm:$0xff]  ;;  %vm4600_vm12 = vmpackc.low %vm2917_vm3, %vm2916_vm13  ;;  %vm3104_vm13 = vcmp.eq.s32.totalorder %v7240_v0, 1  ;;  %vm3105_vm3 = vcmp.eq.s32.totalorder %v7247_v46, 1 }
 0x3be   : > { %v2659_v42 = vld [vmem:[#allocation6 + $0x7f] sm:$0xff]  ;;  %v4520_v16 = vpack.c.bf16 %v2619_v35, %v2618_v51  ;;  %v2736_v0 = vld [vmem:[#allocation6 + $0x2a] sm:$0xff]  ;;  %v2741_v53 = vld [vmem:[#allocation6 + $0x52] sm:$0xff] }
 0x3bf   : > { %v2435_v54 = vld [vmem:[#allocation6 + $0x7d] sm:$0xff]  ;;  %v4547_v38 = vpack.c.bf16 %v2659_v42, %v2658_v50  ;;  %v7753_v56 = vld [vmem:[#allocation41_spill] sm:$0xff] }
 0x3c0   : > { %v4523_v28 = vpack.c.bf16 %v2435_v54, %v2434_v10  ;;  %4521 = vmatprep.mubr.msk.bf16.mxu0 %vm6831_vm6, %v4520_v16  ;;  %vm3102_vm6 = vcmp.eq.s32.totalorder %v7212_v37, 1  ;;  %v4604_v37 = vpack.c.bf16 %v2959_v47, %v2958_v31  ;;  %v7297_v41 = vpop.permute.xlu1 %2890  ;;  %v7314_v46 = vpop.permute.xlu0 %2893  ;;  %v2697_v15 = vld [vmem:[#allocation6 + $0x31] sm:$0xff]  ;;  %v2963_v51 = vld [vmem:[#allocation6 + $0x44] sm:$0xff]  ;;  %v7757_v16 = vld [vmem:[#allocation14_spill] sm:$0xff] }
 0x3c1   : > { %4548 = vmatmul.mubr.msk.bf16.gmra.mrb[60].mxu1 %vm4546_vm1, %v4547_v38  ;;  %vm3103_vm1 = vcmp.eq.s32.totalorder %v7217_v52, 1  ;;  %v2775_v52 = vld [vmem:[#allocation6 + $0x23] sm:$0xff]  ;;  %v2776_v50 = vld [vmem:[#allocation6 + $0x2b] sm:$0xff]  ;;  %v2742_v55 = vld [vmem:[#allocation6 + $0x5a] sm:$0xff] }
 0x3c2   : > { %4524 = vmatmul.mubr.msk.bf16.gmra.mrb[60].mxu0 %vm4522_vm8, %v4523_v28  ;;  %4599 = vmatprep.mubr.msk.bf16.mxu1 %vm4597_vm7, %v4598_v36  ;;  %vm4603_vm8 = vmpackc.low %vm3103_vm1, %vm3102_vm6  ;;  %vm7746_vm7 = vcmp.eq.s32.totalorder %v7745_v26, 1  ;;  %vm2919_vm6 = vcmp.eq.s32.totalorder %v7234_v27, 1  ;;  %v4607_v18 = vpack.c.bf16 %v2775_v52, %v2774_v30  ;;  %v4562_v27 = vpack.c.bf16 %v2737_v29, %v2736_v0  ;;  %v2739_v10 = vld [vmem:[#allocation6 + $0x42] sm:$0xff]  ;;  %v7759_v38 = vld [vmem:[#allocation13_spill] sm:$0xff] }
 0x3c3   : > { %4551 = vmatprep.mubr.msk.bf16.mxu0 %vm4549_vm9, %v4550_v59  ;;  %vm4555_vm0 = vmpackc.low %vm7748_vm5, %vm7746_vm7  ;;  %vm2918_vm9 = vcmp.eq.s32.totalorder %v7229_v49, 1  ;;  %v4559_v49 = vpack.c.bf16 %v2695_v60, %v2694_v12  ;;  %vm7756_vm7 = vcmp.eq.s32.totalorder %v7755_v23, 1  ;;  %v4613_v42 = vpack.c.bf16 %v2777_v8, %v2776_v50  ;;  %v2696_v54 = vld [vmem:[#allocation6 + $0x29] sm:$0xff]  ;;  %v2962_v28 = vld [vmem:[#allocation6 + $0x3c] sm:$0xff] }
 0x3c4   : > { %vm4606_vm1 = vmpackc.low %vm2919_vm6, %vm2918_vm9  ;;  %v3081_v62 = vpop.permute.xlu1 %3080  ;;  %vm3106_vm9 = vcmp.eq.s32.totalorder %v7273_v5, 1  ;;  %vm7758_vm6 = vcmp.eq.s32.totalorder %v7757_v16, 1  ;;  %v4616_v3 = vpack.c.bf16 %v2963_v51, %v2962_v28  ;;  %v2738_v36 = vld [vmem:[#allocation6 + $0x3a] sm:$0xff]  ;;  %v7761_v59 = vld [vmem:[#allocation44_spill] sm:$0xff] }
 0x3c5   : > { %v4568_v9 = vpack.c.bf16 %v2739_v10, %v2738_v36  ;;  %v2699_v5 = vld [vmem:[#allocation6 + $0x41] sm:$0xff]  ;;  %v2964_v58 = vld [vmem:[#allocation6 + $0x4c] sm:$0xff]  ;;  %v2969_v12 = vld [vmem:[#allocation6 + $0x74] sm:$0xff] }
 0x3c6   : > { %v4571_v44 = vpack.c.bf16 %v2699_v5, %v2698_v24  ;;  %v4622_v57 = vpack.c.bf16 %v2965_v22, %v2964_v58  ;;  %v2701_v7 = vld [vmem:[#allocation6 + $0x51] sm:$0xff]  ;;  %v2743_v26 = vld [vmem:[#allocation6 + $0x62] sm:$0xff]  ;;  %v7773_v0 = vld [vmem:[#allocation18_spill] sm:$0xff] }
 0x3c7   : > { %v2700_v52 = vld [vmem:[#allocation6 + $0x49] sm:$0xff]  ;;  %v4580_v29 = vpack.c.bf16 %v2743_v26, %v2742_v55  ;;  %v2782_v4 = vld [vmem:[#allocation6 + $0x5b] sm:$0xff]  ;;  %v2745_v45 = vld [vmem:[#allocation6 + $0x72] sm:$0xff] }
 0x3c8   : > { %v2897_v35 = vpop.permute.xlu1 %2896  ;;  %v2744_v8 = vld [vmem:[#allocation6 + $0x6a] sm:$0xff]  ;;  %v2785_v50 = vld [vmem:[#allocation6 + $0x73] sm:$0xff]  ;;  %v2747_v28 = vld [vmem:[#allocation6 + $0x82] sm:$0xff] }
 0x3c9   : > { %4602 = vmatmul.mubr.msk.bf16.vlgmr.msra.gmra.mrb[64].mxu1 %vm4600_vm12, %v4601_v33  ;;  %vm4609_vm12 = vmpackc.low %vm3105_vm3, %vm3104_vm13  ;;  %vm2921_vm13 = vcmp.eq.s32.totalorder %v7256_v25, 1  ;;  %v3084_v25 = vpop.permute.xlu0 %3083  ;;  %v2740_v33 = vld [vmem:[#allocation6 + $0x4a] sm:$0xff]  ;;  %v2707_v24 = vld [vmem:[#allocation6 + $0x81] sm:$0xff] }
 0x3ca   : > { %4554 = vmatmul.mubr.msk.bf16.vlgmr.msra.gmra.mrb[64].mxu0 %vm7283_vm15, %v4553_v11  ;;  %4605 = vmatprep.mubr.msk.bf16.mxu1 %vm4603_vm8, %v4604_v37  ;;  %vm4558_vm15 = vmpackc.low %vm7752_vm11, %vm7750_vm2  ;;  %vm7754_vm8 = vcmp.eq.s32.totalorder %v7753_v56, 1  ;;  %vm7760_vm2 = vcmp.eq.s32.totalorder %v7759_v38, 1  ;;  %v4574_v31 = vpack.c.bf16 %v2741_v53, %v2740_v33  ;;  %v2781_v37 = vld [vmem:[#allocation6 + $0x53] sm:$0xff]  ;;  %v2784_v16 = vld [vmem:[#allocation6 + $0x6b] sm:$0xff] }
 0x3cb   : > { %4557 = vmatprep.mubr.msk.bf16.mxu0 %vm4555_vm0, %v4556_v6  ;;  %vm4561_vm5 = vmpackc.low %vm7756_vm7, %vm7754_vm8  ;;  %vm2920_vm0 = vcmp.eq.s32.totalorder %v7252_v61, 1  ;;  %v4565_v61 = vpack.c.bf16 %v2697_v15, %v2696_v54  ;;  %vm7763_vm8 = vcmp.eq.s32.totalorder %v6252_v2, 1  ;;  %v7764_v2 = vld [vmem:[#allocation16_spill] sm:$0xff]  ;;  %v2746_v38 = vld [vmem:[#allocation6 + $0x7a] sm:$0xff] }
 0x3cc   : > { %vm4564_vm11 = vmpackc.low %vm7760_vm2, %vm7758_vm6  ;;  %v3087_v17 = vpop.permute.xlu1 %3086  ;;  %vm7767_vm6 = vcmp.eq.s32.totalorder %v7766_v14, 1  ;;  %v2780_v6 = vld [vmem:[#allocation6 + $0x4b] sm:$0xff]  ;;  %v2787_v53 = vld [vmem:[#allocation6 + $0x83] sm:$0xff] }
 0x3cd   : > { %vm4612_vm3 = vmpackc.low %vm2921_vm13, %vm2920_vm0  ;;  %vm3108_vm0 = vcmp.eq.s32.totalorder %v7302_v48, 1  ;;  %vm7765_vm13 = vcmp.eq.s32.totalorder %v7764_v2, 1  ;;  %v2900_v63 = vpop.permute.xlu0 %2899  ;;  %v2971_v54 = vld [vmem:[#allocation6 + $0x84] sm:$0xff]  ;;  %v7783_v58 = vld [vmem:[#allocation22_spill] sm:$0xff] }
 0x3ce   : > { %vm4570_vm2 = vmpackc.low %vm7767_vm6, %vm7765_vm13  ;;  %vm7771_vm13 = vcmp.eq.s32.totalorder %v5815_v32, 1  ;;  %v2703_v32 = vld [vmem:[#allocation6 + $0x61] sm:$0xff]  ;;  %v7778_v36 = vld [vmem:[#allocation20_spill] sm:$0xff] }
 0x3d0   : > { %v2903_v11 = vpop.permute.xlu1 %2902 }
 0x3d1   : > { %4608 = vmatmul.mubr.msk.bf16.gmra.mrb[68].mxu1 %vm4606_vm1, %v4607_v18  ;;  %v3090_v43 = vpop.permute.xlu0 %3089  ;;  %v2783_v18 = vld [vmem:[#allocation6 + $0x63] sm:$0xff] }
 0x3d2   : > { %4560 = vmatmul.mubr.msk.bf16.gmra.mrb[68].mxu0 %vm4558_vm15, %v4559_v49  ;;  %4611 = vmatprep.mubr.msk.bf16.mxu1 %vm4609_vm12, %v4610_v21  ;;  %vm3107_vm15 = vcmp.eq.s32.totalorder %v7276_v1, 1  ;;  %vm7762_vm12 = vcmp.eq.s32.totalorder %v7761_v59, 1  ;;  %v2778_v1 = vld [vmem:[#allocation6 + $0x3b] sm:$0xff]  ;;  %v4631_v49 = vpack.c.bf16 %v2783_v18, %v2782_v4 }
 0x3d3   : > { %4563 = vmatprep.mubr.msk.bf16.mxu0 %vm4561_vm5, %v4562_v27  ;;  %vm4615_vm1 = vmpackc.low %vm3107_vm15, %vm3106_vm9  ;;  %vm2922_vm5 = vcmp.eq.s32.totalorder %v7289_v34, 1  ;;  %vm2923_vm9 = vcmp.eq.s32.totalorder %v7297_v41, 1  ;;  %v4619_v47 = vpack.c.bf16 %v2779_v20, %v2778_v1  ;;  %v2967_v34 = vld [vmem:[#allocation6 + $0x64] sm:$0xff]  ;;  %v4625_v41 = vpack.c.bf16 %v2781_v37, %v2780_v6  ;;  %v2702_v21 = vld [vmem:[#allocation6 + $0x59] sm:$0xff] }
 0x3d4   : > { %vm4567_vm7 = vmpackc.low %vm7763_vm8, %vm7762_vm12  ;;  %vm7769_vm12 = vcmp.eq.s32.totalorder %v6360_v19, 1  ;;  %v2966_v19 = vld [vmem:[#allocation6 + $0x5c] sm:$0xff]  ;;  %v3093_v30 = vpop.permute.xlu1 %3092  ;;  %v2968_v27 = vld [vmem:[#allocation6 + $0x6c] sm:$0xff]  ;;  %v4583_v56 = vpack.c.bf16 %v2703_v32, %v2702_v21  ;;  %v4592_v20 = vpack.c.bf16 %v2747_v28, %v2746_v38 }
 0x3d5   : > { %vm4618_vm15 = vmpackc.low %vm2923_vm9, %vm2922_vm5  ;;  %vm3110_vm5 = vcmp.eq.s32.totalorder %v3084_v25, 1  ;;  %vm7770_vm9 = vcmp.eq.s32.totalorder %v5817_v40, 1  ;;  %v4628_v60 = vpack.c.bf16 %v2967_v34, %v2966_v19  ;;  %v2906_v40 = vpop.permute.xlu0 %2905  ;;  %v4634_v23 = vpack.c.bf16 %v2969_v12, %v2968_v27  ;;  %v2786_v1 = vld [vmem:[#allocation6 + $0x7b] sm:$0xff] }
 0x3d6   : > { %vm4576_vm6 = vmpackc.low %vm7771_vm13, %vm7770_vm9  ;;  %vm2928_vm13 = vcmp.eq.s32.totalorder %v2906_v40, 1  ;;  %v4643_v2 = vpack.c.bf16 %v2787_v53, %v2786_v1  ;;  %v7365_v37 = vld [vmem:[%s7464_s13] ss:$0 sm:$0xff] }
 0x3d8   : > { %v2909_v39 = vpop.permute.xlu1 %2908 }
 0x3d9   : > { %4614 = vmatmul.mubr.msk.bf16.gmra.mrb[72].mxu1 %vm4612_vm3, %v4613_v42  ;;  %v3096_v15 = vpop.permute.xlu0 %3095  ;;  %v2970_v42 = vld [vmem:[#allocation6 + $0x7c] sm:$0xff] }
 0x3da   : > { %4566 = vmatmul.mubr.msk.bf16.gmra.mrb[72].mxu0 %vm4564_vm11, %v4565_v61  ;;  %4617 = vmatprep.mubr.msk.bf16.mxu1 %vm4615_vm1, %v4616_v3  ;;  %vm3109_vm11 = vcmp.eq.s32.totalorder %v3081_v62, 1  ;;  %vm7768_vm1 = vcmp.eq.s32.totalorder %v6362_v13, 1  ;;  %v4577_v13 = vpack.c.bf16 %v2701_v7, %v2700_v52  ;;  %v7775_v62 = vld [vmem:[#allocation17_spill] sm:$0xff]  ;;  %v4637_v61 = vpack.c.bf16 %v2785_v50, %v2784_v16  ;;  %v2704_v3 = vld [vmem:[#allocation6 + $0x69] sm:$0xff] }
 0x3db   : > { %4569 = vmatprep.mubr.msk.bf16.mxu0 %vm4567_vm7, %v4568_v9  ;;  %vm4621_vm3 = vmpackc.low %vm3109_vm11, %vm3108_vm0  ;;  %vm2924_vm7 = vcmp.eq.s32.totalorder %v7314_v46, 1  ;;  %vm2925_vm0 = vcmp.eq.s32.totalorder %v2897_v35, 1  ;;  %v4586_v46 = vpack.c.bf16 %v2745_v45, %v2744_v8  ;;  %v2705_v35 = vld [vmem:[#allocation6 + $0x71] sm:$0xff]  ;;  %v7780_v9 = vld [vmem:[#allocation19_spill] sm:$0xff]  ;;  %v4640_v25 = vpack.c.bf16 %v2971_v54, %v2970_v42 }
 0x3dc   : > { %vm4573_vm8 = vmpackc.low %vm7769_vm12, %vm7768_vm1  ;;  %vm3112_vm1 = vcmp.eq.s32.totalorder %v3090_v43, 1  ;;  %vm2927_vm12 = vcmp.eq.s32.totalorder %v2903_v11, 1  ;;  %v3099_v10 = vpop.permute.xlu1 %3098  ;;  %v4589_v59 = vpack.c.bf16 %v2705_v35, %v2704_v3  ;;  %v7787_v8 = vmov 0.0  }
 0x3dd   : > { %vm4624_vm11 = vmpackc.low %vm2925_vm0, %vm2924_vm7  ;;  %vm7776_vm7 = vcmp.eq.s32.totalorder %v7775_v62, 1  ;;  %vm3113_vm0 = vcmp.eq.s32.totalorder %v3093_v30, 1 }
 0x3de   : > { %vm4633_vm9 = vmpackc.low %vm3113_vm0, %vm3112_vm1  ;;  %vm3115_vm1 = vcmp.eq.s32.totalorder %v3099_v10, 1  ;;  %vm7784_vm0 = vcmp.eq.s32.totalorder %v7783_v58, 1 }
 0x3e0   : > { %v2915_v22 = vpop.permute.xlu1 %2914 }
 0x3e1   : > { %4620 = vmatmul.mubr.msk.bf16.gmra.mrb[76].mxu1 %vm4618_vm15, %v4619_v47  ;;  %v2706_v47 = vld [vmem:[#allocation6 + $0x79] sm:$0xff] }
 0x3e2   : > { %4572 = vmatmul.mubr.msk.bf16.gmra.mrb[76].mxu0 %vm4570_vm2, %v4571_v44  ;;  %4623 = vmatprep.mubr.msk.bf16.mxu1 %vm4621_vm3, %v4622_v57  ;;  %vm3111_vm2 = vcmp.eq.s32.totalorder %v3087_v17, 1  ;;  %vm2926_vm3 = vcmp.eq.s32.totalorder %v2900_v63, 1  ;;  %v2912_v17 = vpop.permute.xlu0 %2911  ;;  %v4595_v14 = vpack.c.bf16 %v2707_v24, %v2706_v47  ;;  %v7785_v44 = vld [vmem:[#allocation21_spill] sm:$0xff]  ;;  %v5257_v57 = vmov 0.0|0.0  }
 0x3e3   : > { %4575 = vmatprep.mubr.msk.bf16.mxu0 %vm4573_vm8, %v4574_v31  ;;  %vm4627_vm15 = vmpackc.low %vm3111_vm2, %vm3110_vm5  ;;  %vm7774_vm8 = vcmp.eq.s32.totalorder %v7773_v0, 1  ;;  %vm2929_vm2 = vcmp.eq.s32.totalorder %v2909_v39, 1  ;;  %5083 = vmatprep.subr.bf16.mxu0 %v5257_v57 }
 0x3e4   : > { %vm4582_vm5 = vmpackc.low %vm7776_vm7, %vm7774_vm8  ;;  %vm2930_vm8 = vcmp.eq.s32.totalorder %v2912_v17, 1  ;;  %vm2931_vm7 = vcmp.eq.s32.totalorder %v2915_v22, 1 }
 0x3e9   : > { %4626 = vmatmul.mubr.msk.bf16.gmra.mrb[80].mxu1 %vm4624_vm11, %v4625_v41  ;;  %vm7779_vm11 = vcmp.eq.s32.totalorder %v7778_v36, 1 }
 0x3ea   : > { %4578 = vmatmul.mubr.msk.bf16.gmra.mrb[80].mxu0 %vm4576_vm6, %v4577_v13  ;;  %4629 = vmatprep.mubr.msk.bf16.mxu1 %vm4627_vm15, %v4628_v60  ;;  %vm3114_vm6 = vcmp.eq.s32.totalorder %v3096_v15, 1  ;;  %vm7781_vm15 = vcmp.eq.s32.totalorder %v7780_v9, 1 }
 0x3eb   : > { %4581 = vmatprep.mubr.msk.bf16.mxu0 %vm6693_vm4, %v4580_v29  ;;  %vm4630_vm4 = vmpackc.low %vm2927_vm12, %vm2926_vm3 }
 0x3ec   : > { %vm4588_vm3 = vmpackc.low %vm7781_vm15, %vm7779_vm11  ;;  %vm7788_vm11 = vcmask 523264   ;;  %vm4297_vm15 = vcmask 7168  }
 0x3ed   : > { %vm4639_vm12 = vmpackc.low %vm3115_vm1, %vm3114_vm6 }
 0x3f1   : > { %4632 = vmatmul.mubr.msk.bf16.gmra.mrb[84].mxu1 %vm4630_vm4, %v4631_v49  ;;  %vm7786_vm4 = vcmp.eq.s32.totalorder %v7785_v44, 1 }
 0x3f2   : > { %4584 = vmatmul.mubr.msk.bf16.gmra.mrb[84].mxu0 %vm4582_vm5, %v4583_v56  ;;  %4635 = vmatprep.mubr.msk.bf16.mxu1 %vm4633_vm9, %v4634_v23  ;;  %vm4642_vm5 = vmpackc.low %vm2931_vm7, %vm2930_vm8 }
 0x3f3   : > { %4587 = vmatprep.mubr.msk.bf16.mxu0 %vm6805_vm10, %v4586_v46  ;;  %vm4636_vm10 = vmpackc.low %vm2929_vm2, %vm2928_vm13 }
 0x3f4   : > { %vm4594_vm9 = vmpackc.low %vm7786_vm4, %vm7784_vm0 }
 0x3f9   : > { %4638 = vmatmul.mubr.msk.bf16.gmra.mrb[88].mxu1 %vm4636_vm10, %v4637_v61 }
 0x3fa   : > { %4590 = vmatmul.mubr.msk.bf16.gmra.mrb[88].mxu0 %vm4588_vm3, %v4589_v59  ;;  %4641 = vmatprep.mubr.msk.bf16.mxu1 %vm4639_vm12, %v4640_v25 }
 0x3fb   : > { %4593 = vmatprep.mubr.msk.bf16.mxu0 %vm6818_vm14, %v4592_v20  ;;  %vm5258_vm14 = vmmov 0  }
 0x401   : > { %4644 = vmatmul.mubr.msk.bf16.gmra.mrb[92].mxu1 %vm4642_vm5, %v4643_v2 }
 0x402   : > { %4596 = vmatmul.mubr.msk.bf16.gmra.mrb[92].mxu0 %vm4594_vm9, %v4595_v14 }
 0x403   : > { %5080 = vmatprep.mubr.msk.f32.mxu0 %vm5258_vm14, %v7787_v8 }
 0x442   : > { %v4811_v33 = vpop.f32.mrb[32].mxu1 }
 0x443   : > { %v4747_v63 = vpop.f32.mrb[32].mxu0  ;;  %v4812_v31 = vpop.f32.mrb[33].mxu1 }
 0x444   : > { %v4813_v11 = vadd.f32 %v4812_v31, %v4811_v33  ;;  %v4748_v7 = vpop.f32.mrb[33].mxu0  ;;  %v4814_v34 = vpop.f32.mrb[34].mxu1 }
 0x445   : > { %v4749_v6 = vadd.f32 %v4748_v7, %v4747_v63  ;;  %v4750_v26 = vpop.f32.mrb[34].mxu0  ;;  %v4815_v43 = vpop.f32.mrb[35].mxu1 }
 0x446   : > { %v4816_v41 = vadd.f32 %v4815_v43, %v4814_v34  ;;  %v4751_v52 = vpop.f32.mrb[35].mxu0 }
 0x447   : > { %v3822_v19 = vadd.f32 %v4749_v6, %v7365_v37  ;;  %v4752_v13 = vadd.f32 %v4751_v52, %v4750_v26 }
 0x449   : > { %v3825_v60 = vadd.f32 %v4752_v13, %v7365_v37  ;;  %v7369_v55 = vadd.f32 %v4813_v11, %v3822_v19 }
 0x44b   : > { %v7371_v30 = vadd.f32 %v4816_v41, %v3825_v60 }
 0x459   : > { %v4817_v29 = vpop.f32.mrb[36].mxu1 }
 0x45a   : > { %v4753_v48 = vpop.f32.mrb[36].mxu0  ;;  %v4818_v18 = vpop.f32.mrb[37].mxu1 }
 0x45b   : > { %v4819_v40 = vadd.f32 %v4818_v18, %v4817_v29  ;;  %v4754_v32 = vpop.f32.mrb[37].mxu0  ;;  %v4820_v12 = vpop.f32.mrb[38].mxu1 }
 0x45c   : > { %v4755_v4 = vadd.f32 %v4754_v32, %v4753_v48  ;;  %v4756_v45 = vpop.f32.mrb[38].mxu0  ;;  %v4821_v39 = vpop.f32.mrb[39].mxu1 }
 0x45d   : > { %v4822_v49 = vadd.f32 %v4821_v39, %v4820_v12  ;;  %v4757_v21 = vpop.f32.mrb[39].mxu0 }
 0x45e   : > { %v3830_v0 = vadd.f32 %v4755_v4, %v7365_v37  ;;  %v4758_v62 = vadd.f32 %v4757_v21, %v4756_v45 }
 0x460   : > { %v3833_v27 = vadd.f32 %v4758_v62, %v7365_v37  ;;  %v7375_v56 = vadd.f32 %v4819_v40, %v3830_v0 }
 0x462   : > { %v7377_v23 = vadd.f32 %v4822_v49, %v3833_v27 }
 0x46c   : > { %v4823_v46 = vpop.f32.mrb[40].mxu1 }
 0x46d   : > { %v4759_v15 = vpop.f32.mrb[40].mxu0  ;;  %v4824_v51 = vpop.f32.mrb[41].mxu1 }
 0x46e   : > { %v4825_v50 = vadd.f32 %v4824_v51, %v4823_v46  ;;  %v4760_v10 = vpop.f32.mrb[41].mxu0  ;;  %v4826_v35 = vpop.f32.mrb[42].mxu1 }
 0x46f   : > { %v4761_v42 = vadd.f32 %v4760_v10, %v4759_v15  ;;  %v4762_v54 = vpop.f32.mrb[42].mxu0  ;;  %v4827_v16 = vpop.f32.mrb[43].mxu1 }
 0x470   : > { %v4828_v38 = vadd.f32 %v4827_v16, %v4826_v35  ;;  %v4763_v28 = vpop.f32.mrb[43].mxu0 }
 0x471   : > { %v3838_v61 = vadd.f32 %v4761_v42, %v7365_v37  ;;  %v4764_v3 = vadd.f32 %v4763_v28, %v4762_v54 }
 0x473   : > { %v3841_v36 = vadd.f32 %v4764_v3, %v7365_v37  ;;  %v7382_v9 = vadd.f32 %v4825_v50, %v3838_v61 }
 0x474   : > { %v4829_v59 = vpop.f32.mrb[44].mxu1 }
 0x475   : > { %v4765_v25 = vpop.f32.mrb[44].mxu0  ;;  %v4830_v20 = vpop.f32.mrb[45].mxu1  ;;  %v7384_v17 = vadd.f32 %v4828_v38, %v3841_v36 }
 0x476   : > { %v4831_v5 = vadd.f32 %v4830_v20, %v4829_v59  ;;  %v4766_v22 = vpop.f32.mrb[45].mxu0  ;;  %v4832_v1 = vpop.f32.mrb[46].mxu1 }
 0x477   : > { %v4767_v53 = vadd.f32 %v4766_v22, %v4765_v25  ;;  %v4768_v47 = vpop.f32.mrb[46].mxu0  ;;  %v4833_v24 = vpop.f32.mrb[47].mxu1 }
 0x478   : > { %v4834_v2 = vadd.f32 %v4833_v24, %v4832_v1  ;;  %v4769_v14 = vpop.f32.mrb[47].mxu0 }
 0x479   : > { %v3846_v58 = vadd.f32 %v4767_v53, %v7365_v37  ;;  %v4770_v44 = vadd.f32 %v4769_v14, %v4768_v47 }
 0x47b   : > { %v3849_v33 = vadd.f32 %v4770_v44, %v7365_v37  ;;  %v7388_v63 = vadd.f32 %v4831_v5, %v3846_v58 }
 0x47c   : > { %v4835_v31 = vpop.f32.mrb[48].mxu1 }
 0x47d   : > { %v4771_v11 = vpop.f32.mrb[48].mxu0  ;;  %v4836_v7 = vpop.f32.mrb[49].mxu1  ;;  %v7390_v34 = vadd.f32 %v4834_v2, %v3849_v33 }
 0x47e   : > { %v4837_v6 = vadd.f32 %v4836_v7, %v4835_v31  ;;  %v4772_v26 = vpop.f32.mrb[49].mxu0  ;;  %v4838_v43 = vpop.f32.mrb[50].mxu1 }
 0x47f   : > { %v4773_v41 = vadd.f32 %v4772_v26, %v4771_v11  ;;  %v4774_v52 = vpop.f32.mrb[50].mxu0  ;;  %v4839_v19 = vpop.f32.mrb[51].mxu1 }
 0x480   : > { %v4840_v13 = vadd.f32 %v4839_v19, %v4838_v43  ;;  %v4775_v60 = vpop.f32.mrb[51].mxu0 }
 0x481   : > { %v3854_v29 = vadd.f32 %v4773_v41, %v7365_v37  ;;  %v4776_v48 = vadd.f32 %v4775_v60, %v4774_v52 }
 0x483   : > { %v3857_v18 = vadd.f32 %v4776_v48, %v7365_v37  ;;  %v7394_v40 = vadd.f32 %v4837_v6, %v3854_v29 }
 0x484   : > { %v4841_v32 = vpop.f32.mrb[52].mxu1 }
 0x485   : > { %v4777_v12 = vpop.f32.mrb[52].mxu0  ;;  %v4842_v4 = vpop.f32.mrb[53].mxu1  ;;  %v7396_v45 = vadd.f32 %v4840_v13, %v3857_v18 }
 0x486   : > { %v4843_v39 = vadd.f32 %v4842_v4, %v4841_v32  ;;  %v4778_v49 = vpop.f32.mrb[53].mxu0  ;;  %v4844_v21 = vpop.f32.mrb[54].mxu1 }
 0x487   : > { %v4779_v0 = vadd.f32 %v4778_v49, %v4777_v12  ;;  %v4780_v62 = vpop.f32.mrb[54].mxu0  ;;  %v4845_v27 = vpop.f32.mrb[55].mxu1 }
 0x488   : > { %v4846_v8 = vadd.f32 %v4845_v27, %v4844_v21  ;;  %v4781_v46 = vpop.f32.mrb[55].mxu0 }
 0x489   : > { %v3862_v15 = vadd.f32 %v4779_v0, %v7365_v37  ;;  %v4782_v51 = vadd.f32 %v4781_v46, %v4780_v62 }
 0x48b   : > { %v3865_v50 = vadd.f32 %v4782_v51, %v7365_v37  ;;  %v7400_v10 = vadd.f32 %v4843_v39, %v3862_v15 }
 0x48c   : > { %v4847_v35 = vpop.f32.mrb[56].mxu1 }
 0x48d   : > { %v4783_v42 = vpop.f32.mrb[56].mxu0  ;;  %v4848_v54 = vpop.f32.mrb[57].mxu1  ;;  %v7402_v16 = vadd.f32 %v4846_v8, %v3865_v50 }
 0x48e   : > { %v4849_v38 = vadd.f32 %v4848_v54, %v4847_v35  ;;  %v4784_v28 = vpop.f32.mrb[57].mxu0  ;;  %v4850_v61 = vpop.f32.mrb[58].mxu1 }
 0x48f   : > { %v4785_v3 = vadd.f32 %v4784_v28, %v4783_v42  ;;  %v4786_v36 = vpop.f32.mrb[58].mxu0  ;;  %v4851_v59 = vpop.f32.mrb[59].mxu1 }
 0x490   : > { %v4852_v25 = vadd.f32 %v4851_v59, %v4850_v61  ;;  %v4787_v20 = vpop.f32.mrb[59].mxu0 }
 0x491   : > { %v3870_v5 = vadd.f32 %v4785_v3, %v7365_v37  ;;  %v4788_v22 = vadd.f32 %v4787_v20, %v4786_v36 }
 0x493   : > { %v3873_v1 = vadd.f32 %v4788_v22, %v7365_v37  ;;  %v7406_v53 = vadd.f32 %v4849_v38, %v3870_v5 }
 0x494   : > { %v4853_v47 = vpop.f32.mrb[60].mxu1 }
 0x495   : > { %v4789_v24 = vpop.f32.mrb[60].mxu0  ;;  %v4854_v2 = vpop.f32.mrb[61].mxu1  ;;  %v7408_v14 = vadd.f32 %v4852_v25, %v3873_v1 }
 0x496   : > { %v4855_v58 = vadd.f32 %v4854_v2, %v4853_v47  ;;  %v4790_v44 = vpop.f32.mrb[61].mxu0  ;;  %v4856_v33 = vpop.f32.mrb[62].mxu1 }
 0x497   : > { %v4791_v31 = vadd.f32 %v4790_v44, %v4789_v24  ;;  %v4792_v11 = vpop.f32.mrb[62].mxu0  ;;  %v4857_v7 = vpop.f32.mrb[63].mxu1 }
 0x498   : > { %v4858_v6 = vadd.f32 %v4857_v7, %v4856_v33  ;;  %v4793_v26 = vpop.f32.mrb[63].mxu0 }
 0x499   : > { %v3878_v43 = vadd.f32 %v4791_v31, %v7365_v37  ;;  %v4794_v41 = vadd.f32 %v4793_v26, %v4792_v11 }
 0x49b   : > { %v3881_v52 = vadd.f32 %v4794_v41, %v7365_v37  ;;  %v7412_v19 = vadd.f32 %v4855_v58, %v3878_v43 }
 0x49c   : > { %v4939_v13 = vpop.f32.mrb[64].mxu1 }
 0x49d   : > { %v4875_v60 = vpop.f32.mrb[64].mxu0  ;;  %v4940_v29 = vpop.f32.mrb[65].mxu1  ;;  %v7414_v48 = vadd.f32 %v4858_v6, %v3881_v52 }
 0x49e   : > { %v4941_v18 = vadd.f32 %v4940_v29, %v4939_v13  ;;  %v4876_v32 = vpop.f32.mrb[65].mxu0  ;;  %v4942_v12 = vpop.f32.mrb[66].mxu1 }
 0x49f   : > { %v4877_v4 = vadd.f32 %v4876_v32, %v4875_v60  ;;  %v4878_v39 = vpop.f32.mrb[66].mxu0  ;;  %v4943_v49 = vpop.f32.mrb[67].mxu1 }
 0x4a0   : > { %v4944_v21 = vadd.f32 %v4943_v49, %v4942_v12  ;;  %v4879_v0 = vpop.f32.mrb[67].mxu0 }
 0x4a1   : > { %v4016_v62 = vadd.f32 %v4877_v4, %v7369_v55  ;;  %v4880_v27 = vadd.f32 %v4879_v0, %v4878_v39 }
 0x4a3   : > { %v4113_v8 = vadd.f32 %v4941_v18, %v4016_v62  ;;  %v4019_v37 = vadd.f32 %v4880_v27, %v7371_v30 }
 0x4a4   : > { %v4945_v46 = vpop.f32.mrb[68].mxu1 }
 0x4a5   : > { %v4116_v15 = vadd.f32 %v4944_v21, %v4019_v37  ;;  %v4881_v51 = vpop.f32.mrb[68].mxu0  ;;  %v4946_v50 = vpop.f32.mrb[69].mxu1  ;;  %v4175_v38 = vmax.f32 %v4113_v8, 0.0 }
 0x4a6   : > { %v4947_v35 = vadd.f32 %v4946_v50, %v4945_v46  ;;  %v4882_v42 = vpop.f32.mrb[69].mxu0  ;;  %v4948_v54 = vpop.f32.mrb[70].mxu1 }
 0x4a7   : > { %v4176_v28 = vmax.f32 %v4116_v15, 0.0  ;;  %v4883_v61 = vadd.f32 %v4882_v42, %v4881_v51  ;;  %v4884_v3 = vpop.f32.mrb[70].mxu0  ;;  %v4949_v36 = vpop.f32.mrb[71].mxu1 }
 0x4a8   : > { %v4950_v59 = vadd.f32 %v4949_v36, %v4948_v54  ;;  %v4885_v25 = vpop.f32.mrb[71].mxu0 }
 0x4a9   : > { %v5084_v20 = vpack.c.bf16 %v4176_v28, %v4175_v38  ;;  %v4024_v55 = vadd.f32 %v4883_v61, %v7375_v56  ;;  %v4886_v5 = vadd.f32 %v4885_v25, %v4884_v3 }
 0x4ab   : > { %v4121_v22 = vadd.f32 %v4947_v35, %v4024_v55  ;;  %v4027_v30 = vadd.f32 %v4886_v5, %v7377_v23  ;;  %5085 = vmatpush3.bf16.msra.mxu0 %v5084_v20 }
 0x4ac   : > { %v4951_v1 = vpop.f32.mrb[72].mxu1  ;;  %5086 = vmatprep.subr.bf16.mxu0 %v5257_v57 }
 0x4ad   : > { %v4124_v47 = vadd.f32 %v4950_v59, %v4027_v30  ;;  %v4887_v24 = vpop.f32.mrb[72].mxu0  ;;  %v4952_v2 = vpop.f32.mrb[73].mxu1  ;;  %v4177_v31 = vmax.f32 %v4121_v22, 0.0 }
 0x4ae   : > { %v4953_v58 = vadd.f32 %v4952_v2, %v4951_v1  ;;  %v4888_v44 = vpop.f32.mrb[73].mxu0  ;;  %v4954_v33 = vpop.f32.mrb[74].mxu1 }
 0x4af   : > { %v4178_v11 = vmax.f32 %v4124_v47, 0.0  ;;  %v4889_v7 = vadd.f32 %v4888_v44, %v4887_v24  ;;  %v4890_v6 = vpop.f32.mrb[74].mxu0  ;;  %v4955_v26 = vpop.f32.mrb[75].mxu1 }
 0x4b0   : > { %v4956_v56 = vadd.f32 %v4955_v26, %v4954_v33  ;;  %v4891_v43 = vpop.f32.mrb[75].mxu0 }
 0x4b1   : > { %v5087_v41 = vpack.c.bf16 %v4178_v11, %v4177_v31  ;;  %v4032_v23 = vadd.f32 %v4889_v7, %v7382_v9  ;;  %v4892_v52 = vadd.f32 %v4891_v43, %v4890_v6 }
 0x4b3   : > { %v4129_v13 = vadd.f32 %v4953_v58, %v4032_v23  ;;  %v4035_v60 = vadd.f32 %v4892_v52, %v7384_v17  ;;  %5088 = vmatpush3.bf16.msra.mxu0 %v5087_v41 }
 0x4b4   : > { %v4957_v29 = vpop.f32.mrb[76].mxu1  ;;  %5089 = vmatprep.subr.bf16.mxu0 %v5257_v57 }
 0x4b5   : > { %v4132_v18 = vadd.f32 %v4956_v56, %v4035_v60  ;;  %v4893_v32 = vpop.f32.mrb[76].mxu0  ;;  %v4958_v12 = vpop.f32.mrb[77].mxu1  ;;  %v4179_v21 = vmax.f32 %v4129_v13, 0.0 }
 0x4b6   : > { %v4959_v4 = vadd.f32 %v4958_v12, %v4957_v29  ;;  %v4894_v39 = vpop.f32.mrb[77].mxu0  ;;  %v4960_v49 = vpop.f32.mrb[78].mxu1 }
 0x4b7   : > { %v4180_v0 = vmax.f32 %v4132_v18, 0.0  ;;  %v4895_v62 = vadd.f32 %v4894_v39, %v4893_v32  ;;  %v4896_v27 = vpop.f32.mrb[78].mxu0  ;;  %v4961_v8 = vpop.f32.mrb[79].mxu1 }
 0x4b8   : > { %v4962_v9 = vadd.f32 %v4961_v8, %v4960_v49  ;;  %v4897_v37 = vpop.f32.mrb[79].mxu0 }
 0x4b9   : > { %v5090_v46 = vpack.c.bf16 %v4180_v0, %v4179_v21  ;;  %v4040_v17 = vadd.f32 %v4895_v62, %v7388_v63  ;;  %v4898_v15 = vadd.f32 %v4897_v37, %v4896_v27  ;;  %v4191_v37 = vlaneseq }
 0x4bb   : > { %v4137_v51 = vadd.f32 %v4959_v4, %v4040_v17  ;;  %v4043_v50 = vadd.f32 %v4898_v15, %v7390_v34  ;;  %5091 = vmatpush3.bf16.msra.mxu0 %v5090_v46 }
 0x4bc   : > { %v4963_v35 = vpop.f32.mrb[80].mxu1  ;;  %5092 = vmatprep.subr.bf16.mxu0 %v5257_v57 }
 0x4bd   : > { %v4140_v42 = vadd.f32 %v4962_v9, %v4043_v50  ;;  %v4899_v54 = vpop.f32.mrb[80].mxu0  ;;  %v4964_v38 = vpop.f32.mrb[81].mxu1  ;;  %v4181_v36 = vmax.f32 %v4137_v51, 0.0 }
 0x4be   : > { %v4965_v28 = vadd.f32 %v4964_v38, %v4963_v35  ;;  %v4900_v61 = vpop.f32.mrb[81].mxu0  ;;  %v4966_v3 = vpop.f32.mrb[82].mxu1  ;;  %v4192_v35 = vshrl.u32 %v4191_v37, 7 }
 0x4bf   : > { %v4182_v59 = vmax.f32 %v4140_v42, 0.0  ;;  %v4901_v25 = vadd.f32 %v4900_v61, %v4899_v54  ;;  %v4902_v20 = vpop.f32.mrb[82].mxu0  ;;  %v4967_v55 = vpop.f32.mrb[83].mxu1 }
 0x4c0   : > { %v4968_v63 = vadd.f32 %v4967_v55, %v4966_v3  ;;  %v4903_v5 = vpop.f32.mrb[83].mxu0 }
 0x4c1   : > { %v5093_v22 = vpack.c.bf16 %v4182_v59, %v4181_v36  ;;  %v4048_v34 = vadd.f32 %v4901_v25, %v7394_v40  ;;  %v4904_v30 = vadd.f32 %v4903_v5, %v4902_v20  ;;  %v4197_v5 = vadd.s32 1, %v4192_v35 }
 0x4c3   : > { %v4145_v1 = vadd.f32 %v4965_v28, %v4048_v34  ;;  %v4051_v47 = vadd.f32 %v4904_v30, %v7396_v45  ;;  %5094 = vmatpush3.bf16.msra.mxu0 %v5093_v22 }
 0x4c4   : > { %v4969_v24 = vpop.f32.mrb[84].mxu1  ;;  %5095 = vmatprep.subr.bf16.mxu0 %v5257_v57 }
 0x4c5   : > { %v4148_v2 = vadd.f32 %v4968_v63, %v4051_v47  ;;  %v4905_v58 = vpop.f32.mrb[84].mxu0  ;;  %v4970_v44 = vpop.f32.mrb[85].mxu1  ;;  %v4183_v7 = vmax.f32 %v4145_v1, 0.0  ;;  %v4194_v47 = vand.u32 127, %v4191_v37 }
 0x4c6   : > { %v4971_v33 = vadd.f32 %v4970_v44, %v4969_v24  ;;  %v4906_v31 = vpop.f32.mrb[85].mxu0  ;;  %v4972_v11 = vpop.f32.mrb[86].mxu1  ;;  %v4195_v24 = vmul.u32 16, %v4192_v35 }
 0x4c7   : > { %v4184_v6 = vmax.f32 %v4148_v2, 0.0  ;;  %v4907_v26 = vadd.f32 %v4906_v31, %v4905_v58  ;;  %v4908_v56 = vpop.f32.mrb[86].mxu0  ;;  %v4973_v43 = vpop.f32.mrb[87].mxu1  ;;  %v4198_v2 = vmul.u32 16, %v4197_v5 }
 0x4c8   : > { %v4974_v40 = vadd.f32 %v4973_v43, %v4972_v11  ;;  %v4909_v41 = vpop.f32.mrb[87].mxu0  ;;  %vm4196_vm13 = vcmp.ge.s32.totalorder %v4194_v47, %v4195_v24 }
 0x4c9   : > { %v5096_v23 = vpack.c.bf16 %v4184_v6, %v4183_v7  ;;  %v4056_v45 = vadd.f32 %v4907_v26, %v7400_v10  ;;  %v4910_v52 = vadd.f32 %v4909_v41, %v4908_v56  ;;  %vm4199_vm6 = vcmp.lt.s32.totalorder %v4194_v47, %v4198_v2  ;;  %v4473_v26 = vld [vmem:[#allocation8] ss:$0 sm:$0xff] }
 0x4ca   : > { %vm4200_vm2 = vmand %vm4196_vm13, %vm4199_vm6 }
 0x4cb   : > { %v4153_v13 = vadd.f32 %v4971_v33, %v4056_v45  ;;  %v4059_v60 = vadd.f32 %v4910_v52, %v7402_v16  ;;  %5097 = vmatpush3.bf16.msra.mxu0 %v5096_v23 }
 0x4cc   : > { %v4975_v29 = vpop.f32.mrb[88].mxu1  ;;  %5098 = vmatprep.subr.bf16.mxu0 %v5257_v57 }
 0x4cd   : > { %v4156_v18 = vadd.f32 %v4974_v40, %v4059_v60  ;;  %v4911_v32 = vpop.f32.mrb[88].mxu0  ;;  %v4976_v12 = vpop.f32.mrb[89].mxu1  ;;  %v4185_v21 = vmax.f32 %v4153_v13, 0.0 }
 0x4ce   : > { %v4977_v4 = vadd.f32 %v4976_v12, %v4975_v29  ;;  %v4912_v39 = vpop.f32.mrb[89].mxu0  ;;  %v4978_v49 = vpop.f32.mrb[90].mxu1 }
 0x4cf   : > { %v4186_v0 = vmax.f32 %v4156_v18, 0.0  ;;  %v4913_v62 = vadd.f32 %v4912_v39, %v4911_v32  ;;  %v4914_v27 = vpop.f32.mrb[90].mxu0  ;;  %v4979_v8 = vpop.f32.mrb[91].mxu1 }
 0x4d0   : > { %v4980_v10 = vadd.f32 %v4979_v8, %v4978_v49  ;;  %v4915_v9 = vpop.f32.mrb[91].mxu0 }
 0x4d1   : > { %v5099_v46 = vpack.c.bf16 %v4186_v0, %v4185_v21  ;;  %v4064_v16 = vadd.f32 %v4913_v62, %v7406_v53  ;;  %v4916_v17 = vadd.f32 %v4915_v9, %v4914_v27 }
 0x4d3   : > { %v4161_v15 = vadd.f32 %v4977_v4, %v4064_v16  ;;  %v4067_v51 = vadd.f32 %v4916_v17, %v7408_v14  ;;  %5100 = vmatpush3.bf16.msra.mxu0 %v5099_v46 }
 0x4d4   : > { %v4981_v50 = vpop.f32.mrb[92].mxu1  ;;  %5101 = vmatprep.subr.bf16.mxu0 %v5257_v57 }
 0x4d5   : > { %v4164_v42 = vadd.f32 %v4980_v10, %v4067_v51  ;;  %v4917_v54 = vpop.f32.mrb[92].mxu0  ;;  %v4982_v38 = vpop.f32.mrb[93].mxu1  ;;  %v4187_v36 = vmax.f32 %v4161_v15, 0.0 }
 0x4d6   : > { %v4983_v28 = vadd.f32 %v4982_v38, %v4981_v50  ;;  %v4918_v61 = vpop.f32.mrb[93].mxu0  ;;  %v4984_v3 = vpop.f32.mrb[94].mxu1 }
 0x4d7   : > { %v4188_v59 = vmax.f32 %v4164_v42, 0.0  ;;  %v4919_v25 = vadd.f32 %v4918_v61, %v4917_v54  ;;  %v4920_v20 = vpop.f32.mrb[94].mxu0  ;;  %v4985_v53 = vpop.f32.mrb[95].mxu1 }
 0x4d8   : > { %v4986_v55 = vadd.f32 %v4985_v53, %v4984_v3  ;;  %v4921_v63 = vpop.f32.mrb[95].mxu0 }
 0x4d9   : > { %v5102_v14 = vpack.c.bf16 %v4188_v59, %v4187_v36  ;;  %v4072_v22 = vadd.f32 %v4919_v25, %v7412_v19  ;;  %v4922_v34 = vadd.f32 %v4921_v63, %v4920_v20  ;;  %v5259_v19 = vmov 0.0625  }
 0x4db   : > { %v4169_v30 = vadd.f32 %v4983_v28, %v4072_v22  ;;  %v4075_v1 = vadd.f32 %v4922_v34, %v7414_v48  ;;  %5103 = vmatpush3.bf16.msra.mxu0 %v5102_v14  ;;  %v4472_v48 = vld [vmem:[%s7465_s14] ss:$0 sm:$0xff] }
 0x4dc   : > { %5104 = vmatprep.subr.bf16.mxu0 %v5257_v57 }
 0x4dd   : > { %v4172_v58 = vadd.f32 %v4986_v55, %v4075_v1  ;;  %v4189_v44 = vmax.f32 %v4169_v30, 0.0 }
 0x4df   : > { %v4190_v33 = vmax.f32 %v4172_v58, 0.0 }
 0x4e1   : > { %v5105_v31 = vpack.c.bf16 %v4190_v33, %v4189_v44 }
 0x4e3   : > { %5106 = vmatpush3.bf16.msra.mxu0 %v5105_v31 }
 0x4e6   : > { %5081 = vmatmul.mubr.msk.f32.vlgmr.msra.gmra.mrb[96].mxu0 %vm4200_vm2, %v5259_v19 }
 0x5b9   : > { %v4268_v57 = vpop.f32.mrb[96].mxu0 }
 0x5ba   : > { %v4279_v11 = vmul.f32 %v4472_v48, %v4268_v57  ;;  %v5082_v7 = vpop.f32.mrb[97].mxu0 }
 0x5bc   : > { %v4280_v6 = vsel %vm7788_vm11, %v4279_v11, 0.0 }
 0x5bd   : > { %4281 = vadd.xlane.f32.xlu0 %v4280_v6 }
 0x64a   : > { %v4282_v56 = vpop.xlane.xlu0 %4281 }
 0x64b   : > { %v4290_v43 = vadd.f32 %v4473_v26, %v4282_v56 }
 0x64d   : > { %v4474_v40 = vmul.f32 -1.442695, %v4290_v43 }
 0x64f   : > { %5212 = vpow2.f32 %v4474_v40 }
 0x659   : > { %v5213_v41 = vpop.eup %5212 }
 0x65a   : > { %v4294_v23 = vadd.f32 1.0, %v5213_v41 }
 0x65c   : > { %5214 = vrcp.f32 %v4294_v23 }
 0x666   : > { %v5215_v45 = vpop.eup %5214 }
 0x667   : > { %4298 = vst.msk [vmem:[%s523_s17] sm:$0xff] %vm4297_vm15, %v5215_v45 }
 0x668 PF: > { %s28_s23 = sadd.s32 1, %s5250_s23  }
 0x669   : > { %p25_p5 = scmp.ge.s32.totalorder %s28_s23, 4  }
 0x66b   :  { %27 = sbr.rel (!%p25_p5) target bundleno = 3 (0x3), region = 114 }

</bundles_post_ra>
